<compile_context>
chip_gen: v7x
topology: tpu7x:2x2x1
jax: 0.10.0
libtpu: 0.0.40
codegen_flags: <defaults>
</compile_context>

<pallas_src>
import jax
import jax.numpy as jnp
from jax.experimental import pallas as pl
from jax.experimental.pallas import tpu as pltpu


def _ceil_to(x, m):
    return ((x + m - 1) // m) * m


# ----------------------------------------------------------------------------
# Fused VqaModel kernel
# ----------------------------------------------------------------------------
def make_vqa_kernel(num_layers, seq_len, batch_pad, hidden_pad):
    L, T, Bp, Hp = num_layers, seq_len, batch_pad, hidden_pad

    def kernel(*refs):
        # ------------------------------ unpack ------------------------------
        img_ref, wb_ref, bb_ref, wifc_ref, bifc_ref, emb_ref = refs[:6]
        base = 6
        lstm_in = [(refs[base + 3 * l], refs[base + 3 * l + 1], refs[base + 3 * l + 2])
                   for l in range(L)]               # (wih_hbm, whh_hbm, bias_vmem)
        base += 3 * L
        (wqf_hbm, bqf_ref, w1_hbm, b1_ref, w2_hbm, b2_ref, out_ref) = refs[base:base + 7]
        base += 7
        wih_buf = [refs[base + 2 * l] for l in range(L)]
        whh_buf = [refs[base + 2 * l + 1] for l in range(L)]
        base += 2 * L
        wqf_buf, w1_buf, w2_buf, seq_a, seq_b, gih_buf, sems = refs[base:base + 7]

        # -------- prefetch big weights: start all DMAs now, wait at use -----
        sidx = 0
        layer_cp = []
        for l in range(L):
            c_ih = pltpu.make_async_copy(lstm_in[l][0], wih_buf[l], sems.at[sidx])
            c_hh = pltpu.make_async_copy(lstm_in[l][1], whh_buf[l], sems.at[sidx + 1])
            c_ih.start()
            c_hh.start()
            layer_cp.append((c_ih, c_hh))
            sidx += 2
        c_qf = pltpu.make_async_copy(wqf_hbm, wqf_buf, sems.at[sidx])
        c_w1 = pltpu.make_async_copy(w1_hbm, w1_buf, sems.at[sidx + 1])
        c_w2 = pltpu.make_async_copy(w2_hbm, w2_buf, sems.at[sidx + 2])
        c_qf.start(); c_w1.start(); c_w2.start()

        # -------------------- ImgEncoder (runs under the DMAs) --------------
        # TODO(synk): MobileNetV2 backbone replaced by GAP + linear stub
        # (the 1/(H*W) GAP scale is folded into wb at init).
        img = img_ref[...]                                   # [Bp, C, HWp], padded HW lanes are 0
        pooled = jnp.sum(img, axis=2)                        # global average pool (scale in wb)
        backbone = (jnp.dot(pooled.astype(jnp.bfloat16), wb_ref[...],
                            preferred_element_type=jnp.float32) + bb_ref[...])
        img_feat = (jnp.dot(backbone.astype(jnp.bfloat16), wifc_ref[...],
                            preferred_element_type=jnp.float32) + bifc_ref[...])
        sq = jnp.sum(img_feat * img_feat, axis=1, keepdims=True)
        img_feat = img_feat * jax.lax.rsqrt(sq + 1e-12)      # L2 norm via EUP rsqrt

        # ------------------------------ QstEncoder --------------------------
        x0 = jnp.tanh(emb_ref[...])                          # [T, Bp, Wp] f32, time-major
        seq_bufs = (seq_a, seq_b)
        h_final, c_final = [], []
        for l in range(L):
            _, _, b_ref = lstm_in[l]
            layer_in = x0 if l == 0 else seq_bufs[(l - 1) % 2][...]
            in_dim = layer_in.shape[-1]

            layer_cp[l][0].wait()
            layer_cp[l][1].wait()

            # Hoisted input-to-hidden projection: one matmul over all T steps,
            # staged through VMEM scratch to keep vreg pressure flat.
            gih_buf[...] = (jnp.dot(layer_in.astype(jnp.bfloat16).reshape(T * Bp, in_dim),
                                    wih_buf[l][...],
                                    preferred_element_type=jnp.float32)
                            + b_ref[...])                    # [T*Bp, 4*Hp]

            # TODO(synk): whh could stay staged in the MXU across timesteps
            # (matmul_push_rhs / matmul_acc_lhs); kept as jnp.dot for robustness.
            h = jnp.zeros((Bp, Hp), jnp.float32)
            c = jnp.zeros((Bp, Hp), jnp.float32)
            out_buf = seq_bufs[l % 2]
            for t in range(T):   # T small & static; hidden states go to VMEM scratch
                gates = (gih_buf[t * Bp:(t + 1) * Bp, :]
                         + jnp.dot(h.astype(jnp.bfloat16), whh_buf[l][...],
                                   preferred_element_type=jnp.float32))
                # packed gate order (i, f, o, g): one sigmoid over 3*Hp lanes.
                sig = jax.nn.sigmoid(gates[:, :3 * Hp])
                i_g = sig[:, :Hp]
                f_g = sig[:, Hp:2 * Hp]
                o_g = sig[:, 2 * Hp:3 * Hp]
                g_g = jnp.tanh(gates[:, 3 * Hp:])
                c = f_g * c + i_g * g_g
                h = o_g * jnp.tanh(c)
                if l < L - 1:
                    out_buf[t] = h                           # next layer's input, in VMEM
            h_final.append(h)
            c_final.append(c)

        # Final qst fc as per-piece matmul accumulation (order h0,c0,h1,c1,...
        # matches torch.cat((hidden, cell), 2).transpose(0,1).reshape(B,-1)).
        c_qf.wait()
        qst_feat = jnp.dot(jnp.tanh(h_final[0]).astype(jnp.bfloat16), wqf_buf[0],
                           preferred_element_type=jnp.float32)
        qst_feat = qst_feat + jnp.dot(jnp.tanh(c_final[0]).astype(jnp.bfloat16), wqf_buf[1],
                                      preferred_element_type=jnp.float32)
        for l in range(1, L):
            qst_feat = qst_feat + jnp.dot(jnp.tanh(h_final[l]).astype(jnp.bfloat16),
                                          wqf_buf[2 * l],
                                          preferred_element_type=jnp.float32)
            qst_feat = qst_feat + jnp.dot(jnp.tanh(c_final[l]).astype(jnp.bfloat16),
                                          wqf_buf[2 * l + 1],
                                          preferred_element_type=jnp.float32)
        qst_feat = qst_feat + bqf_ref[...]

        # --------------------------- fusion head ----------------------------
        combined = jnp.tanh(img_feat * qst_feat)             # dropout = identity (eval mode)
        c_w1.wait()
        hid = jnp.tanh(jnp.dot(combined.astype(jnp.bfloat16), w1_buf[...],
                               preferred_element_type=jnp.float32) + b1_ref[...])
        c_w2.wait()
        out_ref[...] = (jnp.dot(hid.astype(jnp.bfloat16), w2_buf[...],
                                preferred_element_type=jnp.float32) + b2_ref[...])

    return kernel


# ----------------------------------------------------------------------------
# VqaModel wrapper (padded parameters + forward)
# ----------------------------------------------------------------------------
class VqaModelPallas:
    LANE = 128
    SUB = 8
    GATE_ORDER = (0, 1, 3, 2)   # torch (i,f,g,o) -> packed (i,f,o,g)

    def __init__(self, key, embed_size, qst_vocab_size, ans_vocab_size,
                 word_embed_size, num_layers, hidden_size,
                 img_channels, backbone_features, img_hw):
        self.E, self.A = embed_size, ans_vocab_size
        self.H, self.L = hidden_size, num_layers
        self.img_hw = img_hw
        self.Ep = _ceil_to(embed_size, self.LANE)
        self.Ap = _ceil_to(ans_vocab_size, self.LANE)
        self.Hp = _ceil_to(hidden_size, self.LANE)
        self.Fp = _ceil_to(backbone_features, self.LANE)
        self.Wp = _ceil_to(word_embed_size, self.LANE)

        def init(k, shape, scale=0.1):
            return (scale * jax.random.normal(k, shape)).astype(jnp.float32)

        def pad2(x, r, c):
            return jnp.pad(x, ((0, r - x.shape[0]), (0, c - x.shape[1])))

        bf16 = jnp.bfloat16
        keys = iter(jax.random.split(key, 64))

        # --- ImgEncoder params (stub backbone + fc), zero-padded, bf16 weights ---
        inv_spatial = 1.0 / float(img_hw[0] * img_hw[1])     # GAP scale folded into wb
        self.wb = (pad2(init(next(keys), (img_channels, backbone_features)),
                        img_channels, self.Fp) * inv_spatial).astype(bf16)
        self.bb = pad2(init(next(keys), (1, backbone_features)), 1, self.Fp)
        self.w_img_fc = pad2(init(next(keys), (backbone_features, embed_size)),
                             self.Fp, self.Ep).astype(bf16)
        self.b_img_fc = pad2(init(next(keys), (1, embed_size)), 1, self.Ep)

        # --- QstEncoder params ---
        self.word2vec = pad2(init(next(keys), (qst_vocab_size, word_embed_size), 0.5),
                             qst_vocab_size, self.Wp)

        H = hidden_size

        def pad_gates(w, in_pad):
            # w: [in, 4H] in torch gate order i,f,g,o -> packed (i,f,o,g),
            # each gate zero-padded into its own lane-aligned Hp block.
            chunks = [pad2(w[:, g * H:(g + 1) * H], in_pad, self.Hp)
                      for g in self.GATE_ORDER]
            return jnp.concatenate(chunks, axis=1)

        self.lstm_w = []
        in_pad = self.Wp
        in_sz = word_embed_size
        for _ in range(num_layers):
            wih = init(next(keys), (in_sz, 4 * H))
            whh = init(next(keys), (H, 4 * H))
            b = init(next(keys), (1, 4 * H))                  # b_ih + b_hh combined
            self.lstm_w.append((pad_gates(wih, in_pad).astype(bf16),
                                pad_gates(whh, self.Hp).astype(bf16),
                                pad_gates(b, 1)))             # bias stays f32
            in_sz, in_pad = H, self.Hp

        wqf = init(next(keys), (2 * num_layers * H, embed_size))
        # Split into 2L blocks (rows: h0,c0,h1,c1,...), pad each, stack -> [2L, Hp, Ep]
        blocks = [pad2(wqf[i * H:(i + 1) * H], self.Hp, self.Ep)
                  for i in range(2 * num_layers)]
        self.w_qst_fc = jnp.stack(blocks, axis=0).astype(bf16)
        self.b_qst_fc = pad2(init(next(keys), (1, embed_size)), 1, self.Ep)

        # --- fusion head params ---
        self.w1 = pad2(init(next(keys), (embed_size, ans_vocab_size)),
                       self.Ep, self.Ap).astype(bf16)
        self.b1 = pad2(init(next(keys), (1, ans_vocab_size)), 1, self.Ap)
        self.w2 = pad2(init(next(keys), (ans_vocab_size, ans_vocab_size)),
                       self.Ap, self.Ap).astype(bf16)
        self.b2 = pad2(init(next(keys), (1, ans_vocab_size)), 1, self.Ap)

    def __call__(self, img, qst):
        B, C, Himg, Wimg = img.shape
        assert (Himg, Wimg) == self.img_hw, "GAP scale was folded for img_hw at init"
        T = qst.shape[1]
        Bp = _ceil_to(B, self.SUB)
        HW = Himg * Wimg
        HWp = _ceil_to(HW, self.LANE)

        # ---- glue: flatten / embed / pad to lane+sublane dense layouts ----
        # TODO(synk): embedding gather could be fused in-kernel via scalar
        # prefetch + DMA gather; kept as wrapper jnp.take at these sizes.
        img_flat = img.reshape(B, C, HW).astype(jnp.float32)
        img_flat = jnp.pad(img_flat, ((0, Bp - B), (0, 0), (0, HWp - HW)))

        emb = jnp.take(self.word2vec, qst, axis=0)            # [B, T, Wp]
        emb = jnp.transpose(emb, (1, 0, 2))                   # [T, B, Wp] (time-major)
        emb = jnp.pad(emb, ((0, 0), (0, Bp - B), (0, 0)))

        kernel = make_vqa_kernel(self.L, T, Bp, self.Hp)

        vmem = pl.BlockSpec(memory_space=pltpu.MemorySpace.VMEM)
        hbm = pl.BlockSpec(memory_space=pl.ANY)

        args = [img_flat, self.wb, self.bb, self.w_img_fc, self.b_img_fc, emb]
        in_specs = [vmem] * 6
        for wih, whh, b in self.lstm_w:
            args.extend([wih, whh, b])
            in_specs.extend([hbm, hbm, vmem])       # big LSTM weights stay in HBM
        args.extend([self.w_qst_fc, self.b_qst_fc,
                     self.w1, self.b1, self.w2, self.b2])
        in_specs.extend([hbm, vmem, hbm, vmem, hbm, vmem])

        # VMEM scratch: double-buffered weight landing zones + sequence ping-pong
        scratch_shapes = []
        in_pad = self.Wp
        for _ in range(self.L):
            scratch_shapes.append(pltpu.VMEM((in_pad, 4 * self.Hp), jnp.bfloat16))
            scratch_shapes.append(pltpu.VMEM((self.Hp, 4 * self.Hp), jnp.bfloat16))
            in_pad = self.Hp
        scratch_shapes.extend([
            pltpu.VMEM((2 * self.L, self.Hp, self.Ep), jnp.bfloat16),  # qst fc weight
            pltpu.VMEM((self.Ep, self.Ap), jnp.bfloat16),              # fc1 weight
            pltpu.VMEM((self.Ap, self.Ap), jnp.bfloat16),              # fc2 weight
            pltpu.VMEM((T, Bp, self.Hp), jnp.float32),                 # seq ping
            pltpu.VMEM((T, Bp, self.Hp), jnp.float32),                 # seq pong
            pltpu.VMEM((T * Bp, 4 * self.Hp), jnp.float32),            # hoisted ih proj
            pltpu.SemaphoreType.DMA((2 * self.L + 3,)),
        ])

        out_pad = pl.pallas_call(
            kernel,
            out_shape=jax.ShapeDtypeStruct((Bp, self.Ap), jnp.float32),
            in_specs=in_specs,
            out_specs=vmem,
            scratch_shapes=scratch_shapes,
        )(*args)
        return out_pad[:B, :self.A]


if __name__ == "__main__":
    # small shapes consistent with the module's forward
    B = 2
    C, Himg, Wimg = 4, 16, 16
    T = 8                       # question sequence length
    embed_size = 32
    qst_vocab_size = 50
    ans_vocab_size = 16
    word_embed_size = 24
    num_layers = 2
    hidden_size = 32
    backbone_features = 40      # stands in for MobileNetV2's in_features

    key = jax.random.PRNGKey(0)
    k_img, k_qst, k_params = jax.random.split(key, 3)

    img = jax.random.normal(k_img, (B, C, Himg, Wimg), dtype=jnp.float32)
    qst = jax.random.randint(k_qst, (B, T), 0, qst_vocab_size, dtype=jnp.int32)

    model = VqaModelPallas(
        k_params, embed_size, qst_vocab_size, ans_vocab_size,
        word_embed_size, num_layers, hidden_size,
        img_channels=C, backbone_features=backbone_features,
        img_hw=(Himg, Wimg),
    )

    out = model(img, qst)
    jax.block_until_ready(out)
    assert out.shape == (B, ans_vocab_size)
    assert jnp.all(jnp.isfinite(out))
    print("KERNEL_OK")
</pallas_src>

<mosaic_0001>
module attributes {stable_mosaic.version = 11 : i64} {
  func.func @kernel(%arg0: memref<8x4x256xf32, #tpu.memory_space<vmem>>, %arg1: memref<4x128xbf16, #tpu.memory_space<vmem>>, %arg2: memref<1x128xf32, #tpu.memory_space<vmem>>, %arg3: memref<128x128xbf16, #tpu.memory_space<vmem>>, %arg4: memref<1x128xf32, #tpu.memory_space<vmem>>, %arg5: memref<8x8x128xf32, #tpu.memory_space<vmem>>, %arg6: memref<128x512xbf16, #tpu.memory_space<any>>, %arg7: memref<128x512xbf16, #tpu.memory_space<any>>, %arg8: memref<1x512xf32, #tpu.memory_space<vmem>>, %arg9: memref<128x512xbf16, #tpu.memory_space<any>>, %arg10: memref<128x512xbf16, #tpu.memory_space<any>>, %arg11: memref<1x512xf32, #tpu.memory_space<vmem>>, %arg12: memref<4x128x128xbf16, #tpu.memory_space<any>>, %arg13: memref<1x128xf32, #tpu.memory_space<vmem>>, %arg14: memref<128x128xbf16, #tpu.memory_space<any>>, %arg15: memref<1x128xf32, #tpu.memory_space<vmem>>, %arg16: memref<128x128xbf16, #tpu.memory_space<any>>, %arg17: memref<1x128xf32, #tpu.memory_space<vmem>>, %arg18: memref<8x128xf32, #tpu.memory_space<vmem>>, %arg19: memref<128x512xbf16, #tpu.memory_space<vmem>>, %arg20: memref<128x512xbf16, #tpu.memory_space<vmem>>, %arg21: memref<128x512xbf16, #tpu.memory_space<vmem>>, %arg22: memref<128x512xbf16, #tpu.memory_space<vmem>>, %arg23: memref<4x128x128xbf16, #tpu.memory_space<vmem>>, %arg24: memref<128x128xbf16, #tpu.memory_space<vmem>>, %arg25: memref<128x128xbf16, #tpu.memory_space<vmem>>, %arg26: memref<8x8x128xf32, #tpu.memory_space<vmem>>, %arg27: memref<8x8x128xf32, #tpu.memory_space<vmem>>, %arg28: memref<64x512xf32, #tpu.memory_space<vmem>>, %arg29: memref<7x!tpu.dma_semaphore, #tpu.memory_space<semaphore_mem>>) attributes {dimension_semantics = [], scalar_prefetch = 0 : i64, scratch_operands = 11 : i64, tpu.core_type = #tpu.core_type<tc>} {
    %c0_i32 = arith.constant 0 : i32
    %0 = tpu.memref_slice %arg29[%c0_i32] : memref<7x!tpu.dma_semaphore, #tpu.memory_space<semaphore_mem>> -> memref<1x!tpu.dma_semaphore, #tpu.memory_space<semaphore_mem>>
    %1 = tpu.memref_squeeze %0 : memref<1x!tpu.dma_semaphore, #tpu.memory_space<semaphore_mem>> -> memref<!tpu.dma_semaphore, #tpu.memory_space<semaphore_mem>>
    tpu.enqueue_dma source(%arg6 : memref<128x512xbf16, #tpu.memory_space<any>>) target(%arg19 : memref<128x512xbf16, #tpu.memory_space<vmem>>) target_semaphore(%1 : memref<!tpu.dma_semaphore, #tpu.memory_space<semaphore_mem>>)
    %c1_i32 = arith.constant 1 : i32
    %2 = tpu.memref_slice %arg29[%c1_i32] : memref<7x!tpu.dma_semaphore, #tpu.memory_space<semaphore_mem>> -> memref<1x!tpu.dma_semaphore, #tpu.memory_space<semaphore_mem>>
    %3 = tpu.memref_squeeze %2 : memref<1x!tpu.dma_semaphore, #tpu.memory_space<semaphore_mem>> -> memref<!tpu.dma_semaphore, #tpu.memory_space<semaphore_mem>>
    tpu.enqueue_dma source(%arg7 : memref<128x512xbf16, #tpu.memory_space<any>>) target(%arg20 : memref<128x512xbf16, #tpu.memory_space<vmem>>) target_semaphore(%3 : memref<!tpu.dma_semaphore, #tpu.memory_space<semaphore_mem>>)
    %c2_i32 = arith.constant 2 : i32
    %4 = tpu.memref_slice %arg29[%c2_i32] : memref<7x!tpu.dma_semaphore, #tpu.memory_space<semaphore_mem>> -> memref<1x!tpu.dma_semaphore, #tpu.memory_space<semaphore_mem>>
    %5 = tpu.memref_squeeze %4 : memref<1x!tpu.dma_semaphore, #tpu.memory_space<semaphore_mem>> -> memref<!tpu.dma_semaphore, #tpu.memory_space<semaphore_mem>>
    tpu.enqueue_dma source(%arg9 : memref<128x512xbf16, #tpu.memory_space<any>>) target(%arg21 : memref<128x512xbf16, #tpu.memory_space<vmem>>) target_semaphore(%5 : memref<!tpu.dma_semaphore, #tpu.memory_space<semaphore_mem>>)
    %c3_i32 = arith.constant 3 : i32
    %6 = tpu.memref_slice %arg29[%c3_i32] : memref<7x!tpu.dma_semaphore, #tpu.memory_space<semaphore_mem>> -> memref<1x!tpu.dma_semaphore, #tpu.memory_space<semaphore_mem>>
    %7 = tpu.memref_squeeze %6 : memref<1x!tpu.dma_semaphore, #tpu.memory_space<semaphore_mem>> -> memref<!tpu.dma_semaphore, #tpu.memory_space<semaphore_mem>>
    tpu.enqueue_dma source(%arg10 : memref<128x512xbf16, #tpu.memory_space<any>>) target(%arg22 : memref<128x512xbf16, #tpu.memory_space<vmem>>) target_semaphore(%7 : memref<!tpu.dma_semaphore, #tpu.memory_space<semaphore_mem>>)
    %c4_i32 = arith.constant 4 : i32
    %8 = tpu.memref_slice %arg29[%c4_i32] : memref<7x!tpu.dma_semaphore, #tpu.memory_space<semaphore_mem>> -> memref<1x!tpu.dma_semaphore, #tpu.memory_space<semaphore_mem>>
    %9 = tpu.memref_squeeze %8 : memref<1x!tpu.dma_semaphore, #tpu.memory_space<semaphore_mem>> -> memref<!tpu.dma_semaphore, #tpu.memory_space<semaphore_mem>>
    tpu.enqueue_dma source(%arg12 : memref<4x128x128xbf16, #tpu.memory_space<any>>) target(%arg23 : memref<4x128x128xbf16, #tpu.memory_space<vmem>>) target_semaphore(%9 : memref<!tpu.dma_semaphore, #tpu.memory_space<semaphore_mem>>)
    %c5_i32 = arith.constant 5 : i32
    %10 = tpu.memref_slice %arg29[%c5_i32] : memref<7x!tpu.dma_semaphore, #tpu.memory_space<semaphore_mem>> -> memref<1x!tpu.dma_semaphore, #tpu.memory_space<semaphore_mem>>
    %11 = tpu.memref_squeeze %10 : memref<1x!tpu.dma_semaphore, #tpu.memory_space<semaphore_mem>> -> memref<!tpu.dma_semaphore, #tpu.memory_space<semaphore_mem>>
    tpu.enqueue_dma source(%arg14 : memref<128x128xbf16, #tpu.memory_space<any>>) target(%arg24 : memref<128x128xbf16, #tpu.memory_space<vmem>>) target_semaphore(%11 : memref<!tpu.dma_semaphore, #tpu.memory_space<semaphore_mem>>)
    %c6_i32 = arith.constant 6 : i32
    %12 = tpu.memref_slice %arg29[%c6_i32] : memref<7x!tpu.dma_semaphore, #tpu.memory_space<semaphore_mem>> -> memref<1x!tpu.dma_semaphore, #tpu.memory_space<semaphore_mem>>
    %13 = tpu.memref_squeeze %12 : memref<1x!tpu.dma_semaphore, #tpu.memory_space<semaphore_mem>> -> memref<!tpu.dma_semaphore, #tpu.memory_space<semaphore_mem>>
    tpu.enqueue_dma source(%arg16 : memref<128x128xbf16, #tpu.memory_space<any>>) target(%arg25 : memref<128x128xbf16, #tpu.memory_space<vmem>>) target_semaphore(%13 : memref<!tpu.dma_semaphore, #tpu.memory_space<semaphore_mem>>)
    %c0 = arith.constant 0 : index
    %c0_0 = arith.constant 0 : index
    %c0_1 = arith.constant 0 : index
    %14 = vector.load %arg0[%c0, %c0_0, %c0_1] : memref<8x4x256xf32, #tpu.memory_space<vmem>>, vector<8x4x256xf32>
    %cst = arith.constant dense<0.000000e+00> : vector<8x4xf32>
    %15 = vector.multi_reduction <add>, %14, %cst [2] : vector<8x4x256xf32> to vector<8x4xf32>
    %16 = arith.truncf %15 : vector<8x4xf32> to vector<8x4xbf16>
    %c0_2 = arith.constant 0 : index
    %c0_3 = arith.constant 0 : index
    %17 = vector.load %arg1[%c0_2, %c0_3] : memref<4x128xbf16, #tpu.memory_space<vmem>>, vector<4x128xbf16>
    %cst_4 = arith.constant dense<0.000000e+00> : vector<8x128xf32>
    %18 = tpu.matmul %16, %17, %cst_4 {dimension_numbers = #tpu.dot_dimension_numbers<[1], [0], [0], [1], [0, 0, 1, 1], [], []>} : vector<8x4xbf16>, vector<4x128xbf16>, vector<8x128xf32> -> vector<8x128xf32>
    %c0_5 = arith.constant 0 : index
    %c0_6 = arith.constant 0 : index
    %19 = vector.load %arg2[%c0_5, %c0_6] : memref<1x128xf32, #tpu.memory_space<vmem>>, vector<1x128xf32>
    %20 = vector.broadcast %19 : vector<1x128xf32> to vector<8x128xf32>
    %21 = arith.addf %18, %20 : vector<8x128xf32>
    %22 = arith.truncf %21 : vector<8x128xf32> to vector<8x128xbf16>
    %c0_7 = arith.constant 0 : index
    %c0_8 = arith.constant 0 : index
    %23 = vector.load %arg3[%c0_7, %c0_8] : memref<128x128xbf16, #tpu.memory_space<vmem>>, vector<128x128xbf16>
    %cst_9 = arith.constant dense<0.000000e+00> : vector<8x128xf32>
    %24 = tpu.matmul %22, %23, %cst_9 {dimension_numbers = #tpu.dot_dimension_numbers<[1], [0], [0], [1], [0, 0, 1, 1], [], []>} : vector<8x128xbf16>, vector<128x128xbf16>, vector<8x128xf32> -> vector<8x128xf32>
    %c0_10 = arith.constant 0 : index
    %c0_11 = arith.constant 0 : index
    %25 = vector.load %arg4[%c0_10, %c0_11] : memref<1x128xf32, #tpu.memory_space<vmem>>, vector<1x128xf32>
    %26 = vector.broadcast %25 : vector<1x128xf32> to vector<8x128xf32>
    %27 = arith.addf %24, %26 : vector<8x128xf32>
    %28 = arith.mulf %27, %27 : vector<8x128xf32>
    %cst_12 = arith.constant dense<0.000000e+00> : vector<8xf32>
    %29 = vector.multi_reduction <add>, %28, %cst_12 [1] : vector<8x128xf32> to vector<8xf32>
    %30 = vector.shape_cast %29 : vector<8xf32> to vector<8x1xf32>
    %cst_13 = arith.constant 9.99999996E-13 : f32
    %31 = vector.broadcast %cst_13 : f32 to vector<8x1xf32>
    %32 = arith.addf %30, %31 : vector<8x1xf32>
    %33 = math.rsqrt %32 : vector<8x1xf32>
    %34 = vector.broadcast %33 : vector<8x1xf32> to vector<8x128xf32>
    %35 = arith.mulf %27, %34 : vector<8x128xf32>
    %c0_14 = arith.constant 0 : index
    %c0_15 = arith.constant 0 : index
    %c0_16 = arith.constant 0 : index
    %36 = vector.load %arg5[%c0_14, %c0_15, %c0_16] : memref<8x8x128xf32, #tpu.memory_space<vmem>>, vector<8x8x128xf32>
    %37 = math.tanh %36 : vector<8x8x128xf32>
    %c0_i32_17 = arith.constant 0 : i32
    %38 = tpu.memref_slice %arg29[%c0_i32_17] : memref<7x!tpu.dma_semaphore, #tpu.memory_space<semaphore_mem>> -> memref<1x!tpu.dma_semaphore, #tpu.memory_space<semaphore_mem>>
    %39 = tpu.memref_squeeze %38 : memref<1x!tpu.dma_semaphore, #tpu.memory_space<semaphore_mem>> -> memref<!tpu.dma_semaphore, #tpu.memory_space<semaphore_mem>>
    tpu.wait_dma2 semaphore(%39 : memref<!tpu.dma_semaphore, #tpu.memory_space<semaphore_mem>>) src(%arg6 : memref<128x512xbf16, #tpu.memory_space<any>>) dst(%arg19 : memref<128x512xbf16, #tpu.memory_space<vmem>>)
    %c1_i32_18 = arith.constant 1 : i32
    %40 = tpu.memref_slice %arg29[%c1_i32_18] : memref<7x!tpu.dma_semaphore, #tpu.memory_space<semaphore_mem>> -> memref<1x!tpu.dma_semaphore, #tpu.memory_space<semaphore_mem>>
    %41 = tpu.memref_squeeze %40 : memref<1x!tpu.dma_semaphore, #tpu.memory_space<semaphore_mem>> -> memref<!tpu.dma_semaphore, #tpu.memory_space<semaphore_mem>>
    tpu.wait_dma2 semaphore(%41 : memref<!tpu.dma_semaphore, #tpu.memory_space<semaphore_mem>>) src(%arg7 : memref<128x512xbf16, #tpu.memory_space<any>>) dst(%arg20 : memref<128x512xbf16, #tpu.memory_space<vmem>>)
    %42 = arith.truncf %37 : vector<8x8x128xf32> to vector<8x8x128xbf16>
    %43 = vector.shape_cast %42 : vector<8x8x128xbf16> to vector<64x128xbf16>
    %c0_19 = arith.constant 0 : index
    %c0_20 = arith.constant 0 : index
    %44 = vector.load %arg19[%c0_19, %c0_20] : memref<128x512xbf16, #tpu.memory_space<vmem>>, vector<128x512xbf16>
    %cst_21 = arith.constant dense<0.000000e+00> : vector<64x512xf32>
    %45 = tpu.matmul %43, %44, %cst_21 {dimension_numbers = #tpu.dot_dimension_numbers<[1], [0], [0], [1], [0, 0, 1, 1], [], []>} : vector<64x128xbf16>, vector<128x512xbf16>, vector<64x512xf32> -> vector<64x512xf32>
    %c0_22 = arith.constant 0 : index
    %c0_23 = arith.constant 0 : index
    %46 = vector.load %arg8[%c0_22, %c0_23] : memref<1x512xf32, #tpu.memory_space<vmem>>, vector<1x512xf32>
    %47 = vector.broadcast %46 : vector<1x512xf32> to vector<64x512xf32>
    %48 = arith.addf %45, %47 : vector<64x512xf32>
    %c0_24 = arith.constant 0 : index
    %c0_25 = arith.constant 0 : index
    %49 = vector.load %arg28[%c0_24, %c0_25] : memref<64x512xf32, #tpu.memory_space<vmem>>, vector<64x512xf32>
    tpu.vector_store %arg28[%c0_24, %c0_25], %48 {strides = array<i32>} : memref<64x512xf32, #tpu.memory_space<vmem>>, vector<64x512xf32>,
    %cst_26 = arith.constant 0.000000e+00 : f32
    %50 = vector.broadcast %cst_26 : f32 to vector<8x128xf32>
    %cst_27 = arith.constant 0.000000e+00 : f32
    %51 = vector.broadcast %cst_27 : f32 to vector<8x128xf32>
    %c0_28 = arith.constant 0 : index
    %c0_29 = arith.constant 0 : index
    %52 = vector.load %arg28[%c0_28, %c0_29] : memref<64x512xf32, #tpu.memory_space<vmem>>, vector<8x512xf32>
    %53 = arith.truncf %50 : vector<8x128xf32> to vector<8x128xbf16>
    %c0_30 = arith.constant 0 : index
    %c0_31 = arith.constant 0 : index
    %54 = vector.load %arg20[%c0_30, %c0_31] : memref<128x512xbf16, #tpu.memory_space<vmem>>, vector<128x512xbf16>
    %cst_32 = arith.constant dense<0.000000e+00> : vector<8x512xf32>
    %55 = tpu.matmul %53, %54, %cst_32 {dimension_numbers = #tpu.dot_dimension_numbers<[1], [0], [0], [1], [0, 0, 1, 1], [], []>} : vector<8x128xbf16>, vector<128x512xbf16>, vector<8x512xf32> -> vector<8x512xf32>
    %56 = arith.addf %52, %55 : vector<8x512xf32>
    %57 = vector.extract_strided_slice %56 {offsets = [0, 0], sizes = [8, 384], strides = [1, 1]} : vector<8x512xf32> to vector<8x384xf32>
    %58 = arith.negf %57 : vector<8x384xf32>
    %59 = math.exp %58 : vector<8x384xf32>
    %cst_33 = arith.constant 1.000000e+00 : f32
    %60 = vector.broadcast %cst_33 : f32 to vector<8x384xf32>
    %61 = arith.addf %60, %59 : vector<8x384xf32>
    %62 = arith.divf %60, %61 : vector<8x384xf32>
    %63 = vector.extract_strided_slice %62 {offsets = [0, 0], sizes = [8, 128], strides = [1, 1]} : vector<8x384xf32> to vector<8x128xf32>
    %64 = vector.extract_strided_slice %62 {offsets = [0, 128], sizes = [8, 128], strides = [1, 1]} : vector<8x384xf32> to vector<8x128xf32>
    %65 = vector.extract_strided_slice %62 {offsets = [0, 256], sizes = [8, 128], strides = [1, 1]} : vector<8x384xf32> to vector<8x128xf32>
    %66 = vector.extract_strided_slice %56 {offsets = [0, 384], sizes = [8, 128], strides = [1, 1]} : vector<8x512xf32> to vector<8x128xf32>
    %67 = math.tanh %66 : vector<8x128xf32>
    %68 = arith.mulf %64, %51 : vector<8x128xf32>
    %69 = arith.mulf %63, %67 : vector<8x128xf32>
    %70 = arith.addf %68, %69 : vector<8x128xf32>
    %71 = math.tanh %70 : vector<8x128xf32>
    %72 = arith.mulf %65, %71 : vector<8x128xf32>
    %c0_34 = arith.constant 0 : index
    %c0_35 = arith.constant 0 : index
    %c0_36 = arith.constant 0 : index
    %73 = vector.load %arg26[%c0_34, %c0_35, %c0_36] : memref<8x8x128xf32, #tpu.memory_space<vmem>>, vector<1x8x128xf32>
    %74 = vector.shape_cast %73 : vector<1x8x128xf32> to vector<8x128xf32>
    %75 = vector.shape_cast %72 : vector<8x128xf32> to vector<1x8x128xf32>
    tpu.vector_store %arg26[%c0_34, %c0_35, %c0_36], %75 {strides = array<i32>} : memref<8x8x128xf32, #tpu.memory_space<vmem>>, vector<1x8x128xf32>,
    %c8 = arith.constant 8 : index
    %c0_37 = arith.constant 0 : index
    %76 = vector.load %arg28[%c8, %c0_37] : memref<64x512xf32, #tpu.memory_space<vmem>>, vector<8x512xf32>
    %77 = arith.truncf %72 : vector<8x128xf32> to vector<8x128xbf16>
    %c0_38 = arith.constant 0 : index
    %c0_39 = arith.constant 0 : index
    %78 = vector.load %arg20[%c0_38, %c0_39] : memref<128x512xbf16, #tpu.memory_space<vmem>>, vector<128x512xbf16>
    %cst_40 = arith.constant dense<0.000000e+00> : vector<8x512xf32>
    %79 = tpu.matmul %77, %78, %cst_40 {dimension_numbers = #tpu.dot_dimension_numbers<[1], [0], [0], [1], [0, 0, 1, 1], [], []>} : vector<8x128xbf16>, vector<128x512xbf16>, vector<8x512xf32> -> vector<8x512xf32>
    %80 = arith.addf %76, %79 : vector<8x512xf32>
    %81 = vector.extract_strided_slice %80 {offsets = [0, 0], sizes = [8, 384], strides = [1, 1]} : vector<8x512xf32> to vector<8x384xf32>
    %82 = arith.negf %81 : vector<8x384xf32>
    %83 = math.exp %82 : vector<8x384xf32>
    %cst_41 = arith.constant 1.000000e+00 : f32
    %84 = vector.broadcast %cst_41 : f32 to vector<8x384xf32>
    %85 = arith.addf %84, %83 : vector<8x384xf32>
    %86 = arith.divf %84, %85 : vector<8x384xf32>
    %87 = vector.extract_strided_slice %86 {offsets = [0, 0], sizes = [8, 128], strides = [1, 1]} : vector<8x384xf32> to vector<8x128xf32>
    %88 = vector.extract_strided_slice %86 {offsets = [0, 128], sizes = [8, 128], strides = [1, 1]} : vector<8x384xf32> to vector<8x128xf32>
    %89 = vector.extract_strided_slice %86 {offsets = [0, 256], sizes = [8, 128], strides = [1, 1]} : vector<8x384xf32> to vector<8x128xf32>
    %90 = vector.extract_strided_slice %80 {offsets = [0, 384], sizes = [8, 128], strides = [1, 1]} : vector<8x512xf32> to vector<8x128xf32>
    %91 = math.tanh %90 : vector<8x128xf32>
    %92 = arith.mulf %88, %70 : vector<8x128xf32>
    %93 = arith.mulf %87, %91 : vector<8x128xf32>
    %94 = arith.addf %92, %93 : vector<8x128xf32>
    %95 = math.tanh %94 : vector<8x128xf32>
    %96 = arith.mulf %89, %95 : vector<8x128xf32>
    %c1 = arith.constant 1 : index
    %c0_42 = arith.constant 0 : index
    %c0_43 = arith.constant 0 : index
    %97 = vector.load %arg26[%c1, %c0_42, %c0_43] : memref<8x8x128xf32, #tpu.memory_space<vmem>>, vector<1x8x128xf32>
    %98 = vector.shape_cast %97 : vector<1x8x128xf32> to vector<8x128xf32>
    %99 = vector.shape_cast %96 : vector<8x128xf32> to vector<1x8x128xf32>
    tpu.vector_store %arg26[%c1, %c0_42, %c0_43], %99 {strides = array<i32>} : memref<8x8x128xf32, #tpu.memory_space<vmem>>, vector<1x8x128xf32>,
    %c16 = arith.constant 16 : index
    %c0_44 = arith.constant 0 : index
    %100 = vector.load %arg28[%c16, %c0_44] : memref<64x512xf32, #tpu.memory_space<vmem>>, vector<8x512xf32>
    %101 = arith.truncf %96 : vector<8x128xf32> to vector<8x128xbf16>
    %c0_45 = arith.constant 0 : index
    %c0_46 = arith.constant 0 : index
    %102 = vector.load %arg20[%c0_45, %c0_46] : memref<128x512xbf16, #tpu.memory_space<vmem>>, vector<128x512xbf16>
    %cst_47 = arith.constant dense<0.000000e+00> : vector<8x512xf32>
    %103 = tpu.matmul %101, %102, %cst_47 {dimension_numbers = #tpu.dot_dimension_numbers<[1], [0], [0], [1], [0, 0, 1, 1], [], []>} : vector<8x128xbf16>, vector<128x512xbf16>, vector<8x512xf32> -> vector<8x512xf32>
    %104 = arith.addf %100, %103 : vector<8x512xf32>
    %105 = vector.extract_strided_slice %104 {offsets = [0, 0], sizes = [8, 384], strides = [1, 1]} : vector<8x512xf32> to vector<8x384xf32>
    %106 = arith.negf %105 : vector<8x384xf32>
    %107 = math.exp %106 : vector<8x384xf32>
    %cst_48 = arith.constant 1.000000e+00 : f32
    %108 = vector.broadcast %cst_48 : f32 to vector<8x384xf32>
    %109 = arith.addf %108, %107 : vector<8x384xf32>
    %110 = arith.divf %108, %109 : vector<8x384xf32>
    %111 = vector.extract_strided_slice %110 {offsets = [0, 0], sizes = [8, 128], strides = [1, 1]} : vector<8x384xf32> to vector<8x128xf32>
    %112 = vector.extract_strided_slice %110 {offsets = [0, 128], sizes = [8, 128], strides = [1, 1]} : vector<8x384xf32> to vector<8x128xf32>
    %113 = vector.extract_strided_slice %110 {offsets = [0, 256], sizes = [8, 128], strides = [1, 1]} : vector<8x384xf32> to vector<8x128xf32>
    %114 = vector.extract_strided_slice %104 {offsets = [0, 384], sizes = [8, 128], strides = [1, 1]} : vector<8x512xf32> to vector<8x128xf32>
    %115 = math.tanh %114 : vector<8x128xf32>
    %116 = arith.mulf %112, %94 : vector<8x128xf32>
    %117 = arith.mulf %111, %115 : vector<8x128xf32>
    %118 = arith.addf %116, %117 : vector<8x128xf32>
    %119 = math.tanh %118 : vector<8x128xf32>
    %120 = arith.mulf %113, %119 : vector<8x128xf32>
    %c2 = arith.constant 2 : index
    %c0_49 = arith.constant 0 : index
    %c0_50 = arith.constant 0 : index
    %121 = vector.load %arg26[%c2, %c0_49, %c0_50] : memref<8x8x128xf32, #tpu.memory_space<vmem>>, vector<1x8x128xf32>
    %122 = vector.shape_cast %121 : vector<1x8x128xf32> to vector<8x128xf32>
    %123 = vector.shape_cast %120 : vector<8x128xf32> to vector<1x8x128xf32>
    tpu.vector_store %arg26[%c2, %c0_49, %c0_50], %123 {strides = array<i32>} : memref<8x8x128xf32, #tpu.memory_space<vmem>>, vector<1x8x128xf32>,
    %c24 = arith.constant 24 : index
    %c0_51 = arith.constant 0 : index
    %124 = vector.load %arg28[%c24, %c0_51] : memref<64x512xf32, #tpu.memory_space<vmem>>, vector<8x512xf32>
    %125 = arith.truncf %120 : vector<8x128xf32> to vector<8x128xbf16>
    %c0_52 = arith.constant 0 : index
    %c0_53 = arith.constant 0 : index
    %126 = vector.load %arg20[%c0_52, %c0_53] : memref<128x512xbf16, #tpu.memory_space<vmem>>, vector<128x512xbf16>
    %cst_54 = arith.constant dense<0.000000e+00> : vector<8x512xf32>
    %127 = tpu.matmul %125, %126, %cst_54 {dimension_numbers = #tpu.dot_dimension_numbers<[1], [0], [0], [1], [0, 0, 1, 1], [], []>} : vector<8x128xbf16>, vector<128x512xbf16>, vector<8x512xf32> -> vector<8x512xf32>
    %128 = arith.addf %124, %127 : vector<8x512xf32>
    %129 = vector.extract_strided_slice %128 {offsets = [0, 0], sizes = [8, 384], strides = [1, 1]} : vector<8x512xf32> to vector<8x384xf32>
    %130 = arith.negf %129 : vector<8x384xf32>
    %131 = math.exp %130 : vector<8x384xf32>
    %cst_55 = arith.constant 1.000000e+00 : f32
    %132 = vector.broadcast %cst_55 : f32 to vector<8x384xf32>
    %133 = arith.addf %132, %131 : vector<8x384xf32>
    %134 = arith.divf %132, %133 : vector<8x384xf32>
    %135 = vector.extract_strided_slice %134 {offsets = [0, 0], sizes = [8, 128], strides = [1, 1]} : vector<8x384xf32> to vector<8x128xf32>
    %136 = vector.extract_strided_slice %134 {offsets = [0, 128], sizes = [8, 128], strides = [1, 1]} : vector<8x384xf32> to vector<8x128xf32>
    %137 = vector.extract_strided_slice %134 {offsets = [0, 256], sizes = [8, 128], strides = [1, 1]} : vector<8x384xf32> to vector<8x128xf32>
    %138 = vector.extract_strided_slice %128 {offsets = [0, 384], sizes = [8, 128], strides = [1, 1]} : vector<8x512xf32> to vector<8x128xf32>
    %139 = math.tanh %138 : vector<8x128xf32>
    %140 = arith.mulf %136, %118 : vector<8x128xf32>
    %141 = arith.mulf %135, %139 : vector<8x128xf32>
    %142 = arith.addf %140, %141 : vector<8x128xf32>
    %143 = math.tanh %142 : vector<8x128xf32>
    %144 = arith.mulf %137, %143 : vector<8x128xf32>
    %c3 = arith.constant 3 : index
    %c0_56 = arith.constant 0 : index
    %c0_57 = arith.constant 0 : index
    %145 = vector.load %arg26[%c3, %c0_56, %c0_57] : memref<8x8x128xf32, #tpu.memory_space<vmem>>, vector<1x8x128xf32>
    %146 = vector.shape_cast %145 : vector<1x8x128xf32> to vector<8x128xf32>
    %147 = vector.shape_cast %144 : vector<8x128xf32> to vector<1x8x128xf32>
    tpu.vector_store %arg26[%c3, %c0_56, %c0_57], %147 {strides = array<i32>} : memref<8x8x128xf32, #tpu.memory_space<vmem>>, vector<1x8x128xf32>,
    %c32 = arith.constant 32 : index
    %c0_58 = arith.constant 0 : index
    %148 = vector.load %arg28[%c32, %c0_58] : memref<64x512xf32, #tpu.memory_space<vmem>>, vector<8x512xf32>
    %149 = arith.truncf %144 : vector<8x128xf32> to vector<8x128xbf16>
    %c0_59 = arith.constant 0 : index
    %c0_60 = arith.constant 0 : index
    %150 = vector.load %arg20[%c0_59, %c0_60] : memref<128x512xbf16, #tpu.memory_space<vmem>>, vector<128x512xbf16>
    %cst_61 = arith.constant dense<0.000000e+00> : vector<8x512xf32>
    %151 = tpu.matmul %149, %150, %cst_61 {dimension_numbers = #tpu.dot_dimension_numbers<[1], [0], [0], [1], [0, 0, 1, 1], [], []>} : vector<8x128xbf16>, vector<128x512xbf16>, vector<8x512xf32> -> vector<8x512xf32>
    %152 = arith.addf %148, %151 : vector<8x512xf32>
    %153 = vector.extract_strided_slice %152 {offsets = [0, 0], sizes = [8, 384], strides = [1, 1]} : vector<8x512xf32> to vector<8x384xf32>
    %154 = arith.negf %153 : vector<8x384xf32>
    %155 = math.exp %154 : vector<8x384xf32>
    %cst_62 = arith.constant 1.000000e+00 : f32
    %156 = vector.broadcast %cst_62 : f32 to vector<8x384xf32>
    %157 = arith.addf %156, %155 : vector<8x384xf32>
    %158 = arith.divf %156, %157 : vector<8x384xf32>
    %159 = vector.extract_strided_slice %158 {offsets = [0, 0], sizes = [8, 128], strides = [1, 1]} : vector<8x384xf32> to vector<8x128xf32>
    %160 = vector.extract_strided_slice %158 {offsets = [0, 128], sizes = [8, 128], strides = [1, 1]} : vector<8x384xf32> to vector<8x128xf32>
    %161 = vector.extract_strided_slice %158 {offsets = [0, 256], sizes = [8, 128], strides = [1, 1]} : vector<8x384xf32> to vector<8x128xf32>
    %162 = vector.extract_strided_slice %152 {offsets = [0, 384], sizes = [8, 128], strides = [1, 1]} : vector<8x512xf32> to vector<8x128xf32>
    %163 = math.tanh %162 : vector<8x128xf32>
    %164 = arith.mulf %160, %142 : vector<8x128xf32>
    %165 = arith.mulf %159, %163 : vector<8x128xf32>
    %166 = arith.addf %164, %165 : vector<8x128xf32>
    %167 = math.tanh %166 : vector<8x128xf32>
    %168 = arith.mulf %161, %167 : vector<8x128xf32>
    %c4 = arith.constant 4 : index
    %c0_63 = arith.constant 0 : index
    %c0_64 = arith.constant 0 : index
    %169 = vector.load %arg26[%c4, %c0_63, %c0_64] : memref<8x8x128xf32, #tpu.memory_space<vmem>>, vector<1x8x128xf32>
    %170 = vector.shape_cast %169 : vector<1x8x128xf32> to vector<8x128xf32>
    %171 = vector.shape_cast %168 : vector<8x128xf32> to vector<1x8x128xf32>
    tpu.vector_store %arg26[%c4, %c0_63, %c0_64], %171 {strides = array<i32>} : memref<8x8x128xf32, #tpu.memory_space<vmem>>, vector<1x8x128xf32>,
    %c40 = arith.constant 40 : index
    %c0_65 = arith.constant 0 : index
    %172 = vector.load %arg28[%c40, %c0_65] : memref<64x512xf32, #tpu.memory_space<vmem>>, vector<8x512xf32>
    %173 = arith.truncf %168 : vector<8x128xf32> to vector<8x128xbf16>
    %c0_66 = arith.constant 0 : index
    %c0_67 = arith.constant 0 : index
    %174 = vector.load %arg20[%c0_66, %c0_67] : memref<128x512xbf16, #tpu.memory_space<vmem>>, vector<128x512xbf16>
    %cst_68 = arith.constant dense<0.000000e+00> : vector<8x512xf32>
    %175 = tpu.matmul %173, %174, %cst_68 {dimension_numbers = #tpu.dot_dimension_numbers<[1], [0], [0], [1], [0, 0, 1, 1], [], []>} : vector<8x128xbf16>, vector<128x512xbf16>, vector<8x512xf32> -> vector<8x512xf32>
    %176 = arith.addf %172, %175 : vector<8x512xf32>
    %177 = vector.extract_strided_slice %176 {offsets = [0, 0], sizes = [8, 384], strides = [1, 1]} : vector<8x512xf32> to vector<8x384xf32>
    %178 = arith.negf %177 : vector<8x384xf32>
    %179 = math.exp %178 : vector<8x384xf32>
    %cst_69 = arith.constant 1.000000e+00 : f32
    %180 = vector.broadcast %cst_69 : f32 to vector<8x384xf32>
    %181 = arith.addf %180, %179 : vector<8x384xf32>
    %182 = arith.divf %180, %181 : vector<8x384xf32>
    %183 = vector.extract_strided_slice %182 {offsets = [0, 0], sizes = [8, 128], strides = [1, 1]} : vector<8x384xf32> to vector<8x128xf32>
    %184 = vector.extract_strided_slice %182 {offsets = [0, 128], sizes = [8, 128], strides = [1, 1]} : vector<8x384xf32> to vector<8x128xf32>
    %185 = vector.extract_strided_slice %182 {offsets = [0, 256], sizes = [8, 128], strides = [1, 1]} : vector<8x384xf32> to vector<8x128xf32>
    %186 = vector.extract_strided_slice %176 {offsets = [0, 384], sizes = [8, 128], strides = [1, 1]} : vector<8x512xf32> to vector<8x128xf32>
    %187 = math.tanh %186 : vector<8x128xf32>
    %188 = arith.mulf %184, %166 : vector<8x128xf32>
    %189 = arith.mulf %183, %187 : vector<8x128xf32>
    %190 = arith.addf %188, %189 : vector<8x128xf32>
    %191 = math.tanh %190 : vector<8x128xf32>
    %192 = arith.mulf %185, %191 : vector<8x128xf32>
    %c5 = arith.constant 5 : index
    %c0_70 = arith.constant 0 : index
    %c0_71 = arith.constant 0 : index
    %193 = vector.load %arg26[%c5, %c0_70, %c0_71] : memref<8x8x128xf32, #tpu.memory_space<vmem>>, vector<1x8x128xf32>
    %194 = vector.shape_cast %193 : vector<1x8x128xf32> to vector<8x128xf32>
    %195 = vector.shape_cast %192 : vector<8x128xf32> to vector<1x8x128xf32>
    tpu.vector_store %arg26[%c5, %c0_70, %c0_71], %195 {strides = array<i32>} : memref<8x8x128xf32, #tpu.memory_space<vmem>>, vector<1x8x128xf32>,
    %c48 = arith.constant 48 : index
    %c0_72 = arith.constant 0 : index
    %196 = vector.load %arg28[%c48, %c0_72] : memref<64x512xf32, #tpu.memory_space<vmem>>, vector<8x512xf32>
    %197 = arith.truncf %192 : vector<8x128xf32> to vector<8x128xbf16>
    %c0_73 = arith.constant 0 : index
    %c0_74 = arith.constant 0 : index
    %198 = vector.load %arg20[%c0_73, %c0_74] : memref<128x512xbf16, #tpu.memory_space<vmem>>, vector<128x512xbf16>
    %cst_75 = arith.constant dense<0.000000e+00> : vector<8x512xf32>
    %199 = tpu.matmul %197, %198, %cst_75 {dimension_numbers = #tpu.dot_dimension_numbers<[1], [0], [0], [1], [0, 0, 1, 1], [], []>} : vector<8x128xbf16>, vector<128x512xbf16>, vector<8x512xf32> -> vector<8x512xf32>
    %200 = arith.addf %196, %199 : vector<8x512xf32>
    %201 = vector.extract_strided_slice %200 {offsets = [0, 0], sizes = [8, 384], strides = [1, 1]} : vector<8x512xf32> to vector<8x384xf32>
    %202 = arith.negf %201 : vector<8x384xf32>
    %203 = math.exp %202 : vector<8x384xf32>
    %cst_76 = arith.constant 1.000000e+00 : f32
    %204 = vector.broadcast %cst_76 : f32 to vector<8x384xf32>
    %205 = arith.addf %204, %203 : vector<8x384xf32>
    %206 = arith.divf %204, %205 : vector<8x384xf32>
    %207 = vector.extract_strided_slice %206 {offsets = [0, 0], sizes = [8, 128], strides = [1, 1]} : vector<8x384xf32> to vector<8x128xf32>
    %208 = vector.extract_strided_slice %206 {offsets = [0, 128], sizes = [8, 128], strides = [1, 1]} : vector<8x384xf32> to vector<8x128xf32>
    %209 = vector.extract_strided_slice %206 {offsets = [0, 256], sizes = [8, 128], strides = [1, 1]} : vector<8x384xf32> to vector<8x128xf32>
    %210 = vector.extract_strided_slice %200 {offsets = [0, 384], sizes = [8, 128], strides = [1, 1]} : vector<8x512xf32> to vector<8x128xf32>
    %211 = math.tanh %210 : vector<8x128xf32>
    %212 = arith.mulf %208, %190 : vector<8x128xf32>
    %213 = arith.mulf %207, %211 : vector<8x128xf32>
    %214 = arith.addf %212, %213 : vector<8x128xf32>
    %215 = math.tanh %214 : vector<8x128xf32>
    %216 = arith.mulf %209, %215 : vector<8x128xf32>
    %c6 = arith.constant 6 : index
    %c0_77 = arith.constant 0 : index
    %c0_78 = arith.constant 0 : index
    %217 = vector.load %arg26[%c6, %c0_77, %c0_78] : memref<8x8x128xf32, #tpu.memory_space<vmem>>, vector<1x8x128xf32>
    %218 = vector.shape_cast %217 : vector<1x8x128xf32> to vector<8x128xf32>
    %219 = vector.shape_cast %216 : vector<8x128xf32> to vector<1x8x128xf32>
    tpu.vector_store %arg26[%c6, %c0_77, %c0_78], %219 {strides = array<i32>} : memref<8x8x128xf32, #tpu.memory_space<vmem>>, vector<1x8x128xf32>,
    %c56 = arith.constant 56 : index
    %c0_79 = arith.constant 0 : index
    %220 = vector.load %arg28[%c56, %c0_79] : memref<64x512xf32, #tpu.memory_space<vmem>>, vector<8x512xf32>
    %221 = arith.truncf %216 : vector<8x128xf32> to vector<8x128xbf16>
    %c0_80 = arith.constant 0 : index
    %c0_81 = arith.constant 0 : index
    %222 = vector.load %arg20[%c0_80, %c0_81] : memref<128x512xbf16, #tpu.memory_space<vmem>>, vector<128x512xbf16>
    %cst_82 = arith.constant dense<0.000000e+00> : vector<8x512xf32>
    %223 = tpu.matmul %221, %222, %cst_82 {dimension_numbers = #tpu.dot_dimension_numbers<[1], [0], [0], [1], [0, 0, 1, 1], [], []>} : vector<8x128xbf16>, vector<128x512xbf16>, vector<8x512xf32> -> vector<8x512xf32>
    %224 = arith.addf %220, %223 : vector<8x512xf32>
    %225 = vector.extract_strided_slice %224 {offsets = [0, 0], sizes = [8, 384], strides = [1, 1]} : vector<8x512xf32> to vector<8x384xf32>
    %226 = arith.negf %225 : vector<8x384xf32>
    %227 = math.exp %226 : vector<8x384xf32>
    %cst_83 = arith.constant 1.000000e+00 : f32
    %228 = vector.broadcast %cst_83 : f32 to vector<8x384xf32>
    %229 = arith.addf %228, %227 : vector<8x384xf32>
    %230 = arith.divf %228, %229 : vector<8x384xf32>
    %231 = vector.extract_strided_slice %230 {offsets = [0, 0], sizes = [8, 128], strides = [1, 1]} : vector<8x384xf32> to vector<8x128xf32>
    %232 = vector.extract_strided_slice %230 {offsets = [0, 128], sizes = [8, 128], strides = [1, 1]} : vector<8x384xf32> to vector<8x128xf32>
    %233 = vector.extract_strided_slice %230 {offsets = [0, 256], sizes = [8, 128], strides = [1, 1]} : vector<8x384xf32> to vector<8x128xf32>
    %234 = vector.extract_strided_slice %224 {offsets = [0, 384], sizes = [8, 128], strides = [1, 1]} : vector<8x512xf32> to vector<8x128xf32>
    %235 = math.tanh %234 : vector<8x128xf32>
    %236 = arith.mulf %232, %214 : vector<8x128xf32>
    %237 = arith.mulf %231, %235 : vector<8x128xf32>
    %238 = arith.addf %236, %237 : vector<8x128xf32>
    %239 = math.tanh %238 : vector<8x128xf32>
    %240 = arith.mulf %233, %239 : vector<8x128xf32>
    %c7 = arith.constant 7 : index
    %c0_84 = arith.constant 0 : index
    %c0_85 = arith.constant 0 : index
    %241 = vector.load %arg26[%c7, %c0_84, %c0_85] : memref<8x8x128xf32, #tpu.memory_space<vmem>>, vector<1x8x128xf32>
    %242 = vector.shape_cast %241 : vector<1x8x128xf32> to vector<8x128xf32>
    %243 = vector.shape_cast %240 : vector<8x128xf32> to vector<1x8x128xf32>
    tpu.vector_store %arg26[%c7, %c0_84, %c0_85], %243 {strides = array<i32>} : memref<8x8x128xf32, #tpu.memory_space<vmem>>, vector<1x8x128xf32>,
    %c0_86 = arith.constant 0 : index
    %c0_87 = arith.constant 0 : index
    %c0_88 = arith.constant 0 : index
    %244 = vector.load %arg26[%c0_86, %c0_87, %c0_88] : memref<8x8x128xf32, #tpu.memory_space<vmem>>, vector<8x8x128xf32>
    %c2_i32_89 = arith.constant 2 : i32
    %245 = tpu.memref_slice %arg29[%c2_i32_89] : memref<7x!tpu.dma_semaphore, #tpu.memory_space<semaphore_mem>> -> memref<1x!tpu.dma_semaphore, #tpu.memory_space<semaphore_mem>>
    %246 = tpu.memref_squeeze %245 : memref<1x!tpu.dma_semaphore, #tpu.memory_space<semaphore_mem>> -> memref<!tpu.dma_semaphore, #tpu.memory_space<semaphore_mem>>
    tpu.wait_dma2 semaphore(%246 : memref<!tpu.dma_semaphore, #tpu.memory_space<semaphore_mem>>) src(%arg9 : memref<128x512xbf16, #tpu.memory_space<any>>) dst(%arg21 : memref<128x512xbf16, #tpu.memory_space<vmem>>)
    %c3_i32_90 = arith.constant 3 : i32
    %247 = tpu.memref_slice %arg29[%c3_i32_90] : memref<7x!tpu.dma_semaphore, #tpu.memory_space<semaphore_mem>> -> memref<1x!tpu.dma_semaphore, #tpu.memory_space<semaphore_mem>>
    %248 = tpu.memref_squeeze %247 : memref<1x!tpu.dma_semaphore, #tpu.memory_space<semaphore_mem>> -> memref<!tpu.dma_semaphore, #tpu.memory_space<semaphore_mem>>
    tpu.wait_dma2 semaphore(%248 : memref<!tpu.dma_semaphore, #tpu.memory_space<semaphore_mem>>) src(%arg10 : memref<128x512xbf16, #tpu.memory_space<any>>) dst(%arg22 : memref<128x512xbf16, #tpu.memory_space<vmem>>)
    %249 = arith.truncf %244 : vector<8x8x128xf32> to vector<8x8x128xbf16>
    %250 = vector.shape_cast %249 : vector<8x8x128xbf16> to vector<64x128xbf16>
    %c0_91 = arith.constant 0 : index
    %c0_92 = arith.constant 0 : index
    %251 = vector.load %arg21[%c0_91, %c0_92] : memref<128x512xbf16, #tpu.memory_space<vmem>>, vector<128x512xbf16>
    %cst_93 = arith.constant dense<0.000000e+00> : vector<64x512xf32>
    %252 = tpu.matmul %250, %251, %cst_93 {dimension_numbers = #tpu.dot_dimension_numbers<[1], [0], [0], [1], [0, 0, 1, 1], [], []>} : vector<64x128xbf16>, vector<128x512xbf16>, vector<64x512xf32> -> vector<64x512xf32>
    %c0_94 = arith.constant 0 : index
    %c0_95 = arith.constant 0 : index
    %253 = vector.load %arg11[%c0_94, %c0_95] : memref<1x512xf32, #tpu.memory_space<vmem>>, vector<1x512xf32>
    %254 = vector.broadcast %253 : vector<1x512xf32> to vector<64x512xf32>
    %255 = arith.addf %252, %254 : vector<64x512xf32>
    %c0_96 = arith.constant 0 : index
    %c0_97 = arith.constant 0 : index
    %256 = vector.load %arg28[%c0_96, %c0_97] : memref<64x512xf32, #tpu.memory_space<vmem>>, vector<64x512xf32>
    tpu.vector_store %arg28[%c0_96, %c0_97], %255 {strides = array<i32>} : memref<64x512xf32, #tpu.memory_space<vmem>>, vector<64x512xf32>,
    %cst_98 = arith.constant 0.000000e+00 : f32
    %257 = vector.broadcast %cst_98 : f32 to vector<8x128xf32>
    %cst_99 = arith.constant 0.000000e+00 : f32
    %258 = vector.broadcast %cst_99 : f32 to vector<8x128xf32>
    %c0_100 = arith.constant 0 : index
    %c0_101 = arith.constant 0 : index
    %259 = vector.load %arg28[%c0_100, %c0_101] : memref<64x512xf32, #tpu.memory_space<vmem>>, vector<8x512xf32>
    %260 = arith.truncf %257 : vector<8x128xf32> to vector<8x128xbf16>
    %c0_102 = arith.constant 0 : index
    %c0_103 = arith.constant 0 : index
    %261 = vector.load %arg22[%c0_102, %c0_103] : memref<128x512xbf16, #tpu.memory_space<vmem>>, vector<128x512xbf16>
    %cst_104 = arith.constant dense<0.000000e+00> : vector<8x512xf32>
    %262 = tpu.matmul %260, %261, %cst_104 {dimension_numbers = #tpu.dot_dimension_numbers<[1], [0], [0], [1], [0, 0, 1, 1], [], []>} : vector<8x128xbf16>, vector<128x512xbf16>, vector<8x512xf32> -> vector<8x512xf32>
    %263 = arith.addf %259, %262 : vector<8x512xf32>
    %264 = vector.extract_strided_slice %263 {offsets = [0, 0], sizes = [8, 384], strides = [1, 1]} : vector<8x512xf32> to vector<8x384xf32>
    %265 = arith.negf %264 : vector<8x384xf32>
    %266 = math.exp %265 : vector<8x384xf32>
    %cst_105 = arith.constant 1.000000e+00 : f32
    %267 = vector.broadcast %cst_105 : f32 to vector<8x384xf32>
    %268 = arith.addf %267, %266 : vector<8x384xf32>
    %269 = arith.divf %267, %268 : vector<8x384xf32>
    %270 = vector.extract_strided_slice %269 {offsets = [0, 0], sizes = [8, 128], strides = [1, 1]} : vector<8x384xf32> to vector<8x128xf32>
    %271 = vector.extract_strided_slice %269 {offsets = [0, 128], sizes = [8, 128], strides = [1, 1]} : vector<8x384xf32> to vector<8x128xf32>
    %272 = vector.extract_strided_slice %269 {offsets = [0, 256], sizes = [8, 128], strides = [1, 1]} : vector<8x384xf32> to vector<8x128xf32>
    %273 = vector.extract_strided_slice %263 {offsets = [0, 384], sizes = [8, 128], strides = [1, 1]} : vector<8x512xf32> to vector<8x128xf32>
    %274 = math.tanh %273 : vector<8x128xf32>
    %275 = arith.mulf %271, %258 : vector<8x128xf32>
    %276 = arith.mulf %270, %274 : vector<8x128xf32>
    %277 = arith.addf %275, %276 : vector<8x128xf32>
    %278 = math.tanh %277 : vector<8x128xf32>
    %279 = arith.mulf %272, %278 : vector<8x128xf32>
    %c8_106 = arith.constant 8 : index
    %c0_107 = arith.constant 0 : index
    %280 = vector.load %arg28[%c8_106, %c0_107] : memref<64x512xf32, #tpu.memory_space<vmem>>, vector<8x512xf32>
    %281 = arith.truncf %279 : vector<8x128xf32> to vector<8x128xbf16>
    %c0_108 = arith.constant 0 : index
    %c0_109 = arith.constant 0 : index
    %282 = vector.load %arg22[%c0_108, %c0_109] : memref<128x512xbf16, #tpu.memory_space<vmem>>, vector<128x512xbf16>
    %cst_110 = arith.constant dense<0.000000e+00> : vector<8x512xf32>
    %283 = tpu.matmul %281, %282, %cst_110 {dimension_numbers = #tpu.dot_dimension_numbers<[1], [0], [0], [1], [0, 0, 1, 1], [], []>} : vector<8x128xbf16>, vector<128x512xbf16>, vector<8x512xf32> -> vector<8x512xf32>
    %284 = arith.addf %280, %283 : vector<8x512xf32>
    %285 = vector.extract_strided_slice %284 {offsets = [0, 0], sizes = [8, 384], strides = [1, 1]} : vector<8x512xf32> to vector<8x384xf32>
    %286 = arith.negf %285 : vector<8x384xf32>
    %287 = math.exp %286 : vector<8x384xf32>
    %cst_111 = arith.constant 1.000000e+00 : f32
    %288 = vector.broadcast %cst_111 : f32 to vector<8x384xf32>
    %289 = arith.addf %288, %287 : vector<8x384xf32>
    %290 = arith.divf %288, %289 : vector<8x384xf32>
    %291 = vector.extract_strided_slice %290 {offsets = [0, 0], sizes = [8, 128], strides = [1, 1]} : vector<8x384xf32> to vector<8x128xf32>
    %292 = vector.extract_strided_slice %290 {offsets = [0, 128], sizes = [8, 128], strides = [1, 1]} : vector<8x384xf32> to vector<8x128xf32>
    %293 = vector.extract_strided_slice %290 {offsets = [0, 256], sizes = [8, 128], strides = [1, 1]} : vector<8x384xf32> to vector<8x128xf32>
    %294 = vector.extract_strided_slice %284 {offsets = [0, 384], sizes = [8, 128], strides = [1, 1]} : vector<8x512xf32> to vector<8x128xf32>
    %295 = math.tanh %294 : vector<8x128xf32>
    %296 = arith.mulf %292, %277 : vector<8x128xf32>
    %297 = arith.mulf %291, %295 : vector<8x128xf32>
    %298 = arith.addf %296, %297 : vector<8x128xf32>
    %299 = math.tanh %298 : vector<8x128xf32>
    %300 = arith.mulf %293, %299 : vector<8x128xf32>
    %c16_112 = arith.constant 16 : index
    %c0_113 = arith.constant 0 : index
    %301 = vector.load %arg28[%c16_112, %c0_113] : memref<64x512xf32, #tpu.memory_space<vmem>>, vector<8x512xf32>
    %302 = arith.truncf %300 : vector<8x128xf32> to vector<8x128xbf16>
    %c0_114 = arith.constant 0 : index
    %c0_115 = arith.constant 0 : index
    %303 = vector.load %arg22[%c0_114, %c0_115] : memref<128x512xbf16, #tpu.memory_space<vmem>>, vector<128x512xbf16>
    %cst_116 = arith.constant dense<0.000000e+00> : vector<8x512xf32>
    %304 = tpu.matmul %302, %303, %cst_116 {dimension_numbers = #tpu.dot_dimension_numbers<[1], [0], [0], [1], [0, 0, 1, 1], [], []>} : vector<8x128xbf16>, vector<128x512xbf16>, vector<8x512xf32> -> vector<8x512xf32>
    %305 = arith.addf %301, %304 : vector<8x512xf32>
    %306 = vector.extract_strided_slice %305 {offsets = [0, 0], sizes = [8, 384], strides = [1, 1]} : vector<8x512xf32> to vector<8x384xf32>
    %307 = arith.negf %306 : vector<8x384xf32>
    %308 = math.exp %307 : vector<8x384xf32>
    %cst_117 = arith.constant 1.000000e+00 : f32
    %309 = vector.broadcast %cst_117 : f32 to vector<8x384xf32>
    %310 = arith.addf %309, %308 : vector<8x384xf32>
    %311 = arith.divf %309, %310 : vector<8x384xf32>
    %312 = vector.extract_strided_slice %311 {offsets = [0, 0], sizes = [8, 128], strides = [1, 1]} : vector<8x384xf32> to vector<8x128xf32>
    %313 = vector.extract_strided_slice %311 {offsets = [0, 128], sizes = [8, 128], strides = [1, 1]} : vector<8x384xf32> to vector<8x128xf32>
    %314 = vector.extract_strided_slice %311 {offsets = [0, 256], sizes = [8, 128], strides = [1, 1]} : vector<8x384xf32> to vector<8x128xf32>
    %315 = vector.extract_strided_slice %305 {offsets = [0, 384], sizes = [8, 128], strides = [1, 1]} : vector<8x512xf32> to vector<8x128xf32>
    %316 = math.tanh %315 : vector<8x128xf32>
    %317 = arith.mulf %313, %298 : vector<8x128xf32>
    %318 = arith.mulf %312, %316 : vector<8x128xf32>
    %319 = arith.addf %317, %318 : vector<8x128xf32>
    %320 = math.tanh %319 : vector<8x128xf32>
    %321 = arith.mulf %314, %320 : vector<8x128xf32>
    %c24_118 = arith.constant 24 : index
    %c0_119 = arith.constant 0 : index
    %322 = vector.load %arg28[%c24_118, %c0_119] : memref<64x512xf32, #tpu.memory_space<vmem>>, vector<8x512xf32>
    %323 = arith.truncf %321 : vector<8x128xf32> to vector<8x128xbf16>
    %c0_120 = arith.constant 0 : index
    %c0_121 = arith.constant 0 : index
    %324 = vector.load %arg22[%c0_120, %c0_121] : memref<128x512xbf16, #tpu.memory_space<vmem>>, vector<128x512xbf16>
    %cst_122 = arith.constant dense<0.000000e+00> : vector<8x512xf32>
    %325 = tpu.matmul %323, %324, %cst_122 {dimension_numbers = #tpu.dot_dimension_numbers<[1], [0], [0], [1], [0, 0, 1, 1], [], []>} : vector<8x128xbf16>, vector<128x512xbf16>, vector<8x512xf32> -> vector<8x512xf32>
    %326 = arith.addf %322, %325 : vector<8x512xf32>
    %327 = vector.extract_strided_slice %326 {offsets = [0, 0], sizes = [8, 384], strides = [1, 1]} : vector<8x512xf32> to vector<8x384xf32>
    %328 = arith.negf %327 : vector<8x384xf32>
    %329 = math.exp %328 : vector<8x384xf32>
    %cst_123 = arith.constant 1.000000e+00 : f32
    %330 = vector.broadcast %cst_123 : f32 to vector<8x384xf32>
    %331 = arith.addf %330, %329 : vector<8x384xf32>
    %332 = arith.divf %330, %331 : vector<8x384xf32>
    %333 = vector.extract_strided_slice %332 {offsets = [0, 0], sizes = [8, 128], strides = [1, 1]} : vector<8x384xf32> to vector<8x128xf32>
    %334 = vector.extract_strided_slice %332 {offsets = [0, 128], sizes = [8, 128], strides = [1, 1]} : vector<8x384xf32> to vector<8x128xf32>
    %335 = vector.extract_strided_slice %332 {offsets = [0, 256], sizes = [8, 128], strides = [1, 1]} : vector<8x384xf32> to vector<8x128xf32>
    %336 = vector.extract_strided_slice %326 {offsets = [0, 384], sizes = [8, 128], strides = [1, 1]} : vector<8x512xf32> to vector<8x128xf32>
    %337 = math.tanh %336 : vector<8x128xf32>
    %338 = arith.mulf %334, %319 : vector<8x128xf32>
    %339 = arith.mulf %333, %337 : vector<8x128xf32>
    %340 = arith.addf %338, %339 : vector<8x128xf32>
    %341 = math.tanh %340 : vector<8x128xf32>
    %342 = arith.mulf %335, %341 : vector<8x128xf32>
    %c32_124 = arith.constant 32 : index
    %c0_125 = arith.constant 0 : index
    %343 = vector.load %arg28[%c32_124, %c0_125] : memref<64x512xf32, #tpu.memory_space<vmem>>, vector<8x512xf32>
    %344 = arith.truncf %342 : vector<8x128xf32> to vector<8x128xbf16>
    %c0_126 = arith.constant 0 : index
    %c0_127 = arith.constant 0 : index
    %345 = vector.load %arg22[%c0_126, %c0_127] : memref<128x512xbf16, #tpu.memory_space<vmem>>, vector<128x512xbf16>
    %cst_128 = arith.constant dense<0.000000e+00> : vector<8x512xf32>
    %346 = tpu.matmul %344, %345, %cst_128 {dimension_numbers = #tpu.dot_dimension_numbers<[1], [0], [0], [1], [0, 0, 1, 1], [], []>} : vector<8x128xbf16>, vector<128x512xbf16>, vector<8x512xf32> -> vector<8x512xf32>
    %347 = arith.addf %343, %346 : vector<8x512xf32>
    %348 = vector.extract_strided_slice %347 {offsets = [0, 0], sizes = [8, 384], strides = [1, 1]} : vector<8x512xf32> to vector<8x384xf32>
    %349 = arith.negf %348 : vector<8x384xf32>
    %350 = math.exp %349 : vector<8x384xf32>
    %cst_129 = arith.constant 1.000000e+00 : f32
    %351 = vector.broadcast %cst_129 : f32 to vector<8x384xf32>
    %352 = arith.addf %351, %350 : vector<8x384xf32>
    %353 = arith.divf %351, %352 : vector<8x384xf32>
    %354 = vector.extract_strided_slice %353 {offsets = [0, 0], sizes = [8, 128], strides = [1, 1]} : vector<8x384xf32> to vector<8x128xf32>
    %355 = vector.extract_strided_slice %353 {offsets = [0, 128], sizes = [8, 128], strides = [1, 1]} : vector<8x384xf32> to vector<8x128xf32>
    %356 = vector.extract_strided_slice %353 {offsets = [0, 256], sizes = [8, 128], strides = [1, 1]} : vector<8x384xf32> to vector<8x128xf32>
    %357 = vector.extract_strided_slice %347 {offsets = [0, 384], sizes = [8, 128], strides = [1, 1]} : vector<8x512xf32> to vector<8x128xf32>
    %358 = math.tanh %357 : vector<8x128xf32>
    %359 = arith.mulf %355, %340 : vector<8x128xf32>
    %360 = arith.mulf %354, %358 : vector<8x128xf32>
    %361 = arith.addf %359, %360 : vector<8x128xf32>
    %362 = math.tanh %361 : vector<8x128xf32>
    %363 = arith.mulf %356, %362 : vector<8x128xf32>
    %c40_130 = arith.constant 40 : index
    %c0_131 = arith.constant 0 : index
    %364 = vector.load %arg28[%c40_130, %c0_131] : memref<64x512xf32, #tpu.memory_space<vmem>>, vector<8x512xf32>
    %365 = arith.truncf %363 : vector<8x128xf32> to vector<8x128xbf16>
    %c0_132 = arith.constant 0 : index
    %c0_133 = arith.constant 0 : index
    %366 = vector.load %arg22[%c0_132, %c0_133] : memref<128x512xbf16, #tpu.memory_space<vmem>>, vector<128x512xbf16>
    %cst_134 = arith.constant dense<0.000000e+00> : vector<8x512xf32>
    %367 = tpu.matmul %365, %366, %cst_134 {dimension_numbers = #tpu.dot_dimension_numbers<[1], [0], [0], [1], [0, 0, 1, 1], [], []>} : vector<8x128xbf16>, vector<128x512xbf16>, vector<8x512xf32> -> vector<8x512xf32>
    %368 = arith.addf %364, %367 : vector<8x512xf32>
    %369 = vector.extract_strided_slice %368 {offsets = [0, 0], sizes = [8, 384], strides = [1, 1]} : vector<8x512xf32> to vector<8x384xf32>
    %370 = arith.negf %369 : vector<8x384xf32>
    %371 = math.exp %370 : vector<8x384xf32>
    %cst_135 = arith.constant 1.000000e+00 : f32
    %372 = vector.broadcast %cst_135 : f32 to vector<8x384xf32>
    %373 = arith.addf %372, %371 : vector<8x384xf32>
    %374 = arith.divf %372, %373 : vector<8x384xf32>
    %375 = vector.extract_strided_slice %374 {offsets = [0, 0], sizes = [8, 128], strides = [1, 1]} : vector<8x384xf32> to vector<8x128xf32>
    %376 = vector.extract_strided_slice %374 {offsets = [0, 128], sizes = [8, 128], strides = [1, 1]} : vector<8x384xf32> to vector<8x128xf32>
    %377 = vector.extract_strided_slice %374 {offsets = [0, 256], sizes = [8, 128], strides = [1, 1]} : vector<8x384xf32> to vector<8x128xf32>
    %378 = vector.extract_strided_slice %368 {offsets = [0, 384], sizes = [8, 128], strides = [1, 1]} : vector<8x512xf32> to vector<8x128xf32>
    %379 = math.tanh %378 : vector<8x128xf32>
    %380 = arith.mulf %376, %361 : vector<8x128xf32>
    %381 = arith.mulf %375, %379 : vector<8x128xf32>
    %382 = arith.addf %380, %381 : vector<8x128xf32>
    %383 = math.tanh %382 : vector<8x128xf32>
    %384 = arith.mulf %377, %383 : vector<8x128xf32>
    %c48_136 = arith.constant 48 : index
    %c0_137 = arith.constant 0 : index
    %385 = vector.load %arg28[%c48_136, %c0_137] : memref<64x512xf32, #tpu.memory_space<vmem>>, vector<8x512xf32>
    %386 = arith.truncf %384 : vector<8x128xf32> to vector<8x128xbf16>
    %c0_138 = arith.constant 0 : index
    %c0_139 = arith.constant 0 : index
    %387 = vector.load %arg22[%c0_138, %c0_139] : memref<128x512xbf16, #tpu.memory_space<vmem>>, vector<128x512xbf16>
    %cst_140 = arith.constant dense<0.000000e+00> : vector<8x512xf32>
    %388 = tpu.matmul %386, %387, %cst_140 {dimension_numbers = #tpu.dot_dimension_numbers<[1], [0], [0], [1], [0, 0, 1, 1], [], []>} : vector<8x128xbf16>, vector<128x512xbf16>, vector<8x512xf32> -> vector<8x512xf32>
    %389 = arith.addf %385, %388 : vector<8x512xf32>
    %390 = vector.extract_strided_slice %389 {offsets = [0, 0], sizes = [8, 384], strides = [1, 1]} : vector<8x512xf32> to vector<8x384xf32>
    %391 = arith.negf %390 : vector<8x384xf32>
    %392 = math.exp %391 : vector<8x384xf32>
    %cst_141 = arith.constant 1.000000e+00 : f32
    %393 = vector.broadcast %cst_141 : f32 to vector<8x384xf32>
    %394 = arith.addf %393, %392 : vector<8x384xf32>
    %395 = arith.divf %393, %394 : vector<8x384xf32>
    %396 = vector.extract_strided_slice %395 {offsets = [0, 0], sizes = [8, 128], strides = [1, 1]} : vector<8x384xf32> to vector<8x128xf32>
    %397 = vector.extract_strided_slice %395 {offsets = [0, 128], sizes = [8, 128], strides = [1, 1]} : vector<8x384xf32> to vector<8x128xf32>
    %398 = vector.extract_strided_slice %395 {offsets = [0, 256], sizes = [8, 128], strides = [1, 1]} : vector<8x384xf32> to vector<8x128xf32>
    %399 = vector.extract_strided_slice %389 {offsets = [0, 384], sizes = [8, 128], strides = [1, 1]} : vector<8x512xf32> to vector<8x128xf32>
    %400 = math.tanh %399 : vector<8x128xf32>
    %401 = arith.mulf %397, %382 : vector<8x128xf32>
    %402 = arith.mulf %396, %400 : vector<8x128xf32>
    %403 = arith.addf %401, %402 : vector<8x128xf32>
    %404 = math.tanh %403 : vector<8x128xf32>
    %405 = arith.mulf %398, %404 : vector<8x128xf32>
    %c56_142 = arith.constant 56 : index
    %c0_143 = arith.constant 0 : index
    %406 = vector.load %arg28[%c56_142, %c0_143] : memref<64x512xf32, #tpu.memory_space<vmem>>, vector<8x512xf32>
    %407 = arith.truncf %405 : vector<8x128xf32> to vector<8x128xbf16>
    %c0_144 = arith.constant 0 : index
    %c0_145 = arith.constant 0 : index
    %408 = vector.load %arg22[%c0_144, %c0_145] : memref<128x512xbf16, #tpu.memory_space<vmem>>, vector<128x512xbf16>
    %cst_146 = arith.constant dense<0.000000e+00> : vector<8x512xf32>
    %409 = tpu.matmul %407, %408, %cst_146 {dimension_numbers = #tpu.dot_dimension_numbers<[1], [0], [0], [1], [0, 0, 1, 1], [], []>} : vector<8x128xbf16>, vector<128x512xbf16>, vector<8x512xf32> -> vector<8x512xf32>
    %410 = arith.addf %406, %409 : vector<8x512xf32>
    %411 = vector.extract_strided_slice %410 {offsets = [0, 0], sizes = [8, 384], strides = [1, 1]} : vector<8x512xf32> to vector<8x384xf32>
    %412 = arith.negf %411 : vector<8x384xf32>
    %413 = math.exp %412 : vector<8x384xf32>
    %cst_147 = arith.constant 1.000000e+00 : f32
    %414 = vector.broadcast %cst_147 : f32 to vector<8x384xf32>
    %415 = arith.addf %414, %413 : vector<8x384xf32>
    %416 = arith.divf %414, %415 : vector<8x384xf32>
    %417 = vector.extract_strided_slice %416 {offsets = [0, 0], sizes = [8, 128], strides = [1, 1]} : vector<8x384xf32> to vector<8x128xf32>
    %418 = vector.extract_strided_slice %416 {offsets = [0, 128], sizes = [8, 128], strides = [1, 1]} : vector<8x384xf32> to vector<8x128xf32>
    %419 = vector.extract_strided_slice %416 {offsets = [0, 256], sizes = [8, 128], strides = [1, 1]} : vector<8x384xf32> to vector<8x128xf32>
    %420 = vector.extract_strided_slice %410 {offsets = [0, 384], sizes = [8, 128], strides = [1, 1]} : vector<8x512xf32> to vector<8x128xf32>
    %421 = math.tanh %420 : vector<8x128xf32>
    %422 = arith.mulf %418, %403 : vector<8x128xf32>
    %423 = arith.mulf %417, %421 : vector<8x128xf32>
    %424 = arith.addf %422, %423 : vector<8x128xf32>
    %425 = math.tanh %424 : vector<8x128xf32>
    %426 = arith.mulf %419, %425 : vector<8x128xf32>
    %c4_i32_148 = arith.constant 4 : i32
    %427 = tpu.memref_slice %arg29[%c4_i32_148] : memref<7x!tpu.dma_semaphore, #tpu.memory_space<semaphore_mem>> -> memref<1x!tpu.dma_semaphore, #tpu.memory_space<semaphore_mem>>
    %428 = tpu.memref_squeeze %427 : memref<1x!tpu.dma_semaphore, #tpu.memory_space<semaphore_mem>> -> memref<!tpu.dma_semaphore, #tpu.memory_space<semaphore_mem>>
    tpu.wait_dma2 semaphore(%428 : memref<!tpu.dma_semaphore, #tpu.memory_space<semaphore_mem>>) src(%arg12 : memref<4x128x128xbf16, #tpu.memory_space<any>>) dst(%arg23 : memref<4x128x128xbf16, #tpu.memory_space<vmem>>)
    %429 = math.tanh %240 : vector<8x128xf32>
    %430 = arith.truncf %429 : vector<8x128xf32> to vector<8x128xbf16>
    %c0_149 = arith.constant 0 : index
    %c0_150 = arith.constant 0 : index
    %c0_151 = arith.constant 0 : index
    %431 = vector.load %arg23[%c0_149, %c0_150, %c0_151] : memref<4x128x128xbf16, #tpu.memory_space<vmem>>, vector<1x128x128xbf16>
    %432 = vector.shape_cast %431 : vector<1x128x128xbf16> to vector<128x128xbf16>
    %cst_152 = arith.constant dense<0.000000e+00> : vector<8x128xf32>
    %433 = tpu.matmul %430, %432, %cst_152 {dimension_numbers = #tpu.dot_dimension_numbers<[1], [0], [0], [1], [0, 0, 1, 1], [], []>} : vector<8x128xbf16>, vector<128x128xbf16>, vector<8x128xf32> -> vector<8x128xf32>
    %434 = math.tanh %238 : vector<8x128xf32>
    %435 = arith.truncf %434 : vector<8x128xf32> to vector<8x128xbf16>
    %c1_153 = arith.constant 1 : index
    %c0_154 = arith.constant 0 : index
    %c0_155 = arith.constant 0 : index
    %436 = vector.load %arg23[%c1_153, %c0_154, %c0_155] : memref<4x128x128xbf16, #tpu.memory_space<vmem>>, vector<1x128x128xbf16>
    %437 = vector.shape_cast %436 : vector<1x128x128xbf16> to vector<128x128xbf16>
    %cst_156 = arith.constant dense<0.000000e+00> : vector<8x128xf32>
    %438 = tpu.matmul %435, %437, %cst_156 {dimension_numbers = #tpu.dot_dimension_numbers<[1], [0], [0], [1], [0, 0, 1, 1], [], []>} : vector<8x128xbf16>, vector<128x128xbf16>, vector<8x128xf32> -> vector<8x128xf32>
    %439 = arith.addf %433, %438 : vector<8x128xf32>
    %440 = math.tanh %426 : vector<8x128xf32>
    %441 = arith.truncf %440 : vector<8x128xf32> to vector<8x128xbf16>
    %c2_157 = arith.constant 2 : index
    %c0_158 = arith.constant 0 : index
    %c0_159 = arith.constant 0 : index
    %442 = vector.load %arg23[%c2_157, %c0_158, %c0_159] : memref<4x128x128xbf16, #tpu.memory_space<vmem>>, vector<1x128x128xbf16>
    %443 = vector.shape_cast %442 : vector<1x128x128xbf16> to vector<128x128xbf16>
    %cst_160 = arith.constant dense<0.000000e+00> : vector<8x128xf32>
    %444 = tpu.matmul %441, %443, %cst_160 {dimension_numbers = #tpu.dot_dimension_numbers<[1], [0], [0], [1], [0, 0, 1, 1], [], []>} : vector<8x128xbf16>, vector<128x128xbf16>, vector<8x128xf32> -> vector<8x128xf32>
    %445 = arith.addf %439, %444 : vector<8x128xf32>
    %446 = math.tanh %424 : vector<8x128xf32>
    %447 = arith.truncf %446 : vector<8x128xf32> to vector<8x128xbf16>
    %c3_161 = arith.constant 3 : index
    %c0_162 = arith.constant 0 : index
    %c0_163 = arith.constant 0 : index
    %448 = vector.load %arg23[%c3_161, %c0_162, %c0_163] : memref<4x128x128xbf16, #tpu.memory_space<vmem>>, vector<1x128x128xbf16>
    %449 = vector.shape_cast %448 : vector<1x128x128xbf16> to vector<128x128xbf16>
    %cst_164 = arith.constant dense<0.000000e+00> : vector<8x128xf32>
    %450 = tpu.matmul %447, %449, %cst_164 {dimension_numbers = #tpu.dot_dimension_numbers<[1], [0], [0], [1], [0, 0, 1, 1], [], []>} : vector<8x128xbf16>, vector<128x128xbf16>, vector<8x128xf32> -> vector<8x128xf32>
    %451 = arith.addf %445, %450 : vector<8x128xf32>
    %c0_165 = arith.constant 0 : index
    %c0_166 = arith.constant 0 : index
    %452 = vector.load %arg13[%c0_165, %c0_166] : memref<1x128xf32, #tpu.memory_space<vmem>>, vector<1x128xf32>
    %453 = vector.broadcast %452 : vector<1x128xf32> to vector<8x128xf32>
    %454 = arith.addf %451, %453 : vector<8x128xf32>
    %455 = arith.mulf %35, %454 : vector<8x128xf32>
    %456 = math.tanh %455 : vector<8x128xf32>
    %c5_i32_167 = arith.constant 5 : i32
    %457 = tpu.memref_slice %arg29[%c5_i32_167] : memref<7x!tpu.dma_semaphore, #tpu.memory_space<semaphore_mem>> -> memref<1x!tpu.dma_semaphore, #tpu.memory_space<semaphore_mem>>
    %458 = tpu.memref_squeeze %457 : memref<1x!tpu.dma_semaphore, #tpu.memory_space<semaphore_mem>> -> memref<!tpu.dma_semaphore, #tpu.memory_space<semaphore_mem>>
    tpu.wait_dma2 semaphore(%458 : memref<!tpu.dma_semaphore, #tpu.memory_space<semaphore_mem>>) src(%arg14 : memref<128x128xbf16, #tpu.memory_space<any>>) dst(%arg24 : memref<128x128xbf16, #tpu.memory_space<vmem>>)
    %459 = arith.truncf %456 : vector<8x128xf32> to vector<8x128xbf16>
    %c0_168 = arith.constant 0 : index
    %c0_169 = arith.constant 0 : index
    %460 = vector.load %arg24[%c0_168, %c0_169] : memref<128x128xbf16, #tpu.memory_space<vmem>>, vector<128x128xbf16>
    %cst_170 = arith.constant dense<0.000000e+00> : vector<8x128xf32>
    %461 = tpu.matmul %459, %460, %cst_170 {dimension_numbers = #tpu.dot_dimension_numbers<[1], [0], [0], [1], [0, 0, 1, 1], [], []>} : vector<8x128xbf16>, vector<128x128xbf16>, vector<8x128xf32> -> vector<8x128xf32>
    %c0_171 = arith.constant 0 : index
    %c0_172 = arith.constant 0 : index
    %462 = vector.load %arg15[%c0_171, %c0_172] : memref<1x128xf32, #tpu.memory_space<vmem>>, vector<1x128xf32>
    %463 = vector.broadcast %462 : vector<1x128xf32> to vector<8x128xf32>
    %464 = arith.addf %461, %463 : vector<8x128xf32>
    %465 = math.tanh %464 : vector<8x128xf32>
    %c6_i32_173 = arith.constant 6 : i32
    %466 = tpu.memref_slice %arg29[%c6_i32_173] : memref<7x!tpu.dma_semaphore, #tpu.memory_space<semaphore_mem>> -> memref<1x!tpu.dma_semaphore, #tpu.memory_space<semaphore_mem>>
    %467 = tpu.memref_squeeze %466 : memref<1x!tpu.dma_semaphore, #tpu.memory_space<semaphore_mem>> -> memref<!tpu.dma_semaphore, #tpu.memory_space<semaphore_mem>>
    tpu.wait_dma2 semaphore(%467 : memref<!tpu.dma_semaphore, #tpu.memory_space<semaphore_mem>>) src(%arg16 : memref<128x128xbf16, #tpu.memory_space<any>>) dst(%arg25 : memref<128x128xbf16, #tpu.memory_space<vmem>>)
    %468 = arith.truncf %465 : vector<8x128xf32> to vector<8x128xbf16>
    %c0_174 = arith.constant 0 : index
    %c0_175 = arith.constant 0 : index
    %469 = vector.load %arg25[%c0_174, %c0_175] : memref<128x128xbf16, #tpu.memory_space<vmem>>, vector<128x128xbf16>
    %cst_176 = arith.constant dense<0.000000e+00> : vector<8x128xf32>
    %470 = tpu.matmul %468, %469, %cst_176 {dimension_numbers = #tpu.dot_dimension_numbers<[1], [0], [0], [1], [0, 0, 1, 1], [], []>} : vector<8x128xbf16>, vector<128x128xbf16>, vector<8x128xf32> -> vector<8x128xf32>
    %c0_177 = arith.constant 0 : index
    %c0_178 = arith.constant 0 : index
    %471 = vector.load %arg17[%c0_177, %c0_178] : memref<1x128xf32, #tpu.memory_space<vmem>>, vector<1x128xf32>
    %472 = vector.broadcast %471 : vector<1x128xf32> to vector<8x128xf32>
    %473 = arith.addf %470, %472 : vector<8x128xf32>
    %c0_179 = arith.constant 0 : index
    %c0_180 = arith.constant 0 : index
    %474 = vector.load %arg18[%c0_179, %c0_180] : memref<8x128xf32, #tpu.memory_space<vmem>>, vector<8x128xf32>
    tpu.vector_store %arg18[%c0_179, %c0_180], %473 {strides = array<i32>} : memref<8x128xf32, #tpu.memory_space<vmem>>, vector<8x128xf32>,
    return
  }
}

</mosaic_0001>

<bundles_post_ra>
// kernel: tpu_custom_call.1
= control target key start
LH: loop header
LB: loop body
LE: loop exit
PB: predicated region body
PF: predicated region fallthrough
CT: control target
= control target key end

     0   :  { %s6037_s0 = inlined_call_operand.hbm [shape: f32[8,4,256], index: 0, kind: input, shape index: {}]   ;;  %s6038_s1 = inlined_call_operand.vmem [shape: bf16[4,128], index: 1, kind: input, shape index: {}]   ;;  %s6039_s2 = inlined_call_operand.vmem [shape: f32[1,128], index: 2, kind: input, shape index: {}]   ;;  %s6040_s3 = inlined_call_operand.hbm [shape: bf16[128,128], index: 3, kind: input, shape index: {}]   ;;  %s6041_s4 = inlined_call_operand.vmem [shape: f32[1,128], index: 4, kind: input, shape index: {}]   ;;  %s6042_s5 = inlined_call_operand.hbm [shape: f32[8,8,128], index: 5, kind: input, shape index: {}]   ;;  %s6043_s6 = inlined_call_operand.hbm [shape: bf16[128,512], index: 6, kind: input, shape index: {}]   ;;  %s6044_s7 = inlined_call_operand.hbm [shape: bf16[128,512], index: 7, kind: input, shape index: {}]   ;;  %s6045_s8 = inlined_call_operand.vmem [shape: f32[1,512], index: 8, kind: input, shape index: {}]   ;;  %s6046_s9 = inlined_call_operand.hbm [shape: bf16[128,512], index: 9, kind: input, shape index: {}]   ;;  %s6047_s10 = inlined_call_operand.hbm [shape: bf16[128,512], index: 10, kind: input, shape index: {}]   ;;  %s6048_s11 = inlined_call_operand.vmem [shape: f32[1,512], index: 11, kind: input, shape index: {}]   ;;  %s6049_s12 = inlined_call_operand.hbm [shape: bf16[4,128,128], index: 12, kind: input, shape index: {}]   ;;  %s6050_s13 = inlined_call_operand.vmem [shape: f32[1,128], index: 13, kind: input, shape index: {}]   ;;  %s6051_s14 = inlined_call_operand.hbm [shape: bf16[128,128], index: 14, kind: input, shape index: {}]   ;;  %s6052_s15 = inlined_call_operand.vmem [shape: f32[1,128], index: 15, kind: input, shape index: {}]   ;;  %s6053_s16 = inlined_call_operand.hbm [shape: bf16[128,128], index: 16, kind: input, shape index: {}]   ;;  %s6054_s17 = inlined_call_operand.vmem [shape: f32[1,128], index: 17, kind: input, shape index: {}]   ;;  %s6055_s18 = inlined_call_operand.hbm [shape: f32[8,128], index: 18, kind: output, shape index: {}]  }
   0x1   :  { %6072 = sst [smem:[#allocation71_spill]] %s6037_s0 }
   0x2   :  { %6073 = sst [smem:[#allocation72_spill]] %s6038_s1 }
   0x3   :  { %6074 = sst [smem:[#allocation73_spill]] %s6039_s2 }
   0x4   :  { %6075 = sst [smem:[#allocation74_spill]] %s6055_s18 }
   0x5   :  { %23 = vsyncpa [#allocation14], 0 }
   0x6   :  { %24 = vsyncpa [#allocation17], 0 }
   0x7   :  { %25 = vsyncpa [#allocation15], 0  ;;  %s4525_s27 = smov [#allocation16]   ;;  %s4351_s0 = scalar_lea.hbm %s6040_s3, 1024 }
   0x8   :  { %s47_s28 = sshll.u32 %s4525_s27, 4  ;;  %p4352_p0 = scmp.ne.s32.totalorder %s6040_s3, %s4351_s0  ;;  %s48_s28 = int_to_ptr.vmem [resolvable:$true] %s47_s28 }
   0x9   :  { %p4355_p1 = scmp.lt.u32.totalorder %s4351_s0, %s6040_s3 }
   0xb   :  { %p4357_p2 = pnand %p4355_p1, %p4352_p0 }
   0xd   :  { %4360 = shalt.err (!%p4357_p2)
}
   0xe   :  { %s4361_s22 = scalar_lea.vmem %s48_s28, 1024  ;;  %p4366_p4 = scmp.lt.s32.totalorder %s48_s28, %s48_s28 }
   0xf   :  { %p4362_p3 = scmp.ne.s32.totalorder %s48_s28, %s4361_s22  ;;  %p4367_p5 = scmp.lt.s32.totalorder %s4361_s22, %s4361_s22 }
  0x11   :  { %p4368_p6 = por %p4367_p5, %p4366_p4 }
  0x13   :  { %p4369_p7 = pnand %p4368_p6, %p4362_p3 }
  0x15   :  { %4372 = shalt.err (!%p4369_p7)
}
  0x16   :  { %s6058_s2 = smov 64   ;;  %s4527_s23 = smov 4  }
  0x17   :  { %53 = dma.hbm_to_vmem [thread:$0]  %s6040_s3, 1024, %s48_s28, [#allocation17], %s6058_s2, %s6058_s2, %s4527_s23  }
  0x18   :  { %s4528_s26 = smov [#allocation13]   ;;  %s6076_s0 = sld [smem:[#allocation71_spill]] }
  0x19   :  { %s31_s27 = sshll.u32 %s4528_s26, 4  ;;  %s32_s27 = int_to_ptr.vmem [resolvable:$true] %s31_s27 }
  0x1e   :  { %s4373_s19 = scalar_lea.hbm %s6076_s0, 1024 }
  0x1f   :  { %p4374_p8 = scmp.ne.s32.totalorder %s6076_s0, %s4373_s19  ;;  %p4377_p9 = scmp.lt.u32.totalorder %s4373_s19, %s6076_s0 }
  0x21   :  { %p4379_p10 = pnand %p4377_p9, %p4374_p8 }
  0x23   :  { %4382 = shalt.err (!%p4379_p10)
}
  0x24   :  { %s4383_s18 = scalar_lea.vmem %s32_s27, 1024  ;;  %p4388_p12 = scmp.lt.s32.totalorder %s32_s27, %s32_s27 }
  0x25   :  { %p4384_p11 = scmp.ne.s32.totalorder %s32_s27, %s4383_s18  ;;  %p4389_p13 = scmp.lt.s32.totalorder %s4383_s18, %s4383_s18 }
  0x27   :  { %p4390_p0 = por %p4389_p13, %p4388_p12 }
  0x29   :  { %p4391_p1 = pnand %p4390_p0, %p4384_p11 }
  0x2b   :  { %4394 = shalt.err (!%p4391_p1)
}
  0x2c   :  { %s4529_s3 = smov 128   ;;  %s4530_s28 = smov 8  }
  0x2d   :  { %37 = dma.hbm_to_vmem [thread:$0]  %s6076_s0, 1024, %s32_s27, [#allocation14], %s4529_s3, %s4529_s3, %s4530_s28  }
  0x2e   :  { %s4531_s26 = smov [#allocation18]   ;;  %s4395_s1 = scalar_lea.hbm %s6042_s5, 1024 }
  0x2f   :  { %s61_s29 = sshll.u32 %s4531_s26, 4  ;;  %p4396_p2 = scmp.ne.s32.totalorder %s6042_s5, %s4395_s1  ;;  %s62_s29 = int_to_ptr.vmem [resolvable:$true] %s61_s29 }
  0x30   :  { %p4399_p3 = scmp.lt.u32.totalorder %s4395_s1, %s6042_s5 }
  0x32   :  { %p4401_p4 = pnand %p4399_p3, %p4396_p2 }
  0x34   :  { %4404 = shalt.err (!%p4401_p4)
}
  0x35   :  { %s4405_s2 = scalar_lea.vmem %s62_s29, 1024  ;;  %p4410_p6 = scmp.lt.s32.totalorder %s62_s29, %s62_s29 }
  0x36   :  { %p4406_p5 = scmp.ne.s32.totalorder %s62_s29, %s4405_s2  ;;  %p4411_p7 = scmp.lt.s32.totalorder %s4405_s2, %s4405_s2 }
  0x38   :  { %p4412_p8 = por %p4411_p7, %p4410_p6 }
  0x3a   :  { %p4413_p9 = pnand %p4412_p8, %p4406_p5 }
  0x3c   :  { %4416 = shalt.err (!%p4413_p9)
}
  0x3d   :  { %67 = dma.hbm_to_vmem [thread:$0]  %s6042_s5, 1024, %s62_s29, [#allocation17], %s4529_s3, %s4529_s3, %s4530_s28  }
  0x3e   :  { %4505 = dma.done.wait [#allocation14], 1024  }
  0x3f   :  { %4506 = vsyncadd [#allocation14], 4294966272 }
  0x40   :  { %4507 = dma.done.wait [#allocation17], 2048  }
  0x41   :  { %4508 = vsyncadd [#allocation17], 4294965248  ;;  %s92_s24 = sld [smem:[#allocation0]]   ;;  %s4532_s25 = smov 512   ;;  %vm296_vm0 = vcmask 1043456   ;;  %vm422_vm1 = vcmask 1041408  }
  0x42   :  { %104 = sst [smem:[#allocation21]] %s4532_s25  ;;  %s4533_s2 = smov [#allocation2]   ;;  %v6060_v57 = vmov 0.0   ;;  %vm4548_vm2 = vmmov 0   ;;  %vm403_vm3 = vcmask 1041409   ;;  %vm405_vm4 = vcmask 1042434  }
  0x43   :  { %106 = sst [smem:[#allocation21 + $0x1]] %s4532_s25  ;;  %s100_s26 = sshll.u32 %s4533_s2, 4  ;;  %3846 = vmatprep.subr.bf16.mxu0 %v6060_v57  ;;  %3852 = vmatprep.subr.bf16.mxu1 %v6060_v57  ;;  %vm407_vm5 = vcmask 1043459   ;;  %vm409_vm6 = vcmask 1044484   ;;  %vm411_vm7 = vcmask 1045509   ;;  %vm413_vm8 = vcmask 1046534   ;;  %s101_s26 = int_to_ptr.vmem [resolvable:$true] %s100_s26 }
  0x44   :  { %108 = sst [smem:[#allocation21 + $0x2]] %s4527_s23  ;;  %s6077_s30 = smov 64   ;;  %3848 = vmatprep.mubr.msk.bf16.mxu0 %vm4548_vm2, %v6060_v57  ;;  %3868 = vmatprep.mubr.msk.bf16.mxu1 %vm4548_vm2, %v6060_v57  ;;  %vm415_vm9 = vcmask 1047559   ;;  %vm418_vm10 = vcmask 31744  }
  0x45   :  { %110 = sst [smem:[#allocation21 + $0x3]] %s6077_s30  ;;  %s4534_s29 = smov 2  }
  0x46   :  { %112 = sst [smem:[#allocation21 + $0x4]] %s4529_s3  ;;  %s4535_s19 = smov 256  }
  0x47   :  { %118 = sst [smem:[#allocation21 + $0x7]] %s6077_s30  ;;  %s3688_s5 = sshll.u32 %s92_s24, 26 }
  0x48   :  { %120 = sst [smem:[#allocation21 + $0x8]] %s4527_s23  ;;  %s4699_s28 = sadd.s32 134217728, %s3688_s5 }
  0x49   :  { %114 = sst [smem:[#allocation21 + $0x5]] %s4534_s29  ;;  %s4536_s1 = smov [#allocation12]  }
  0x4a   :  { %116 = sst [smem:[#allocation21 + $0x6]] %s4535_s19  ;;  %s4537_s20 = smov [#allocation20]  }
  0x4b   :  { %122 = dma.general %s6043_s6, 4096, %s101_s26, %s4536_s1, %s4537_s20, [#allocation21], %s4699_s28, 0  }
  0x4c   :  { %139 = sst [smem:[#allocation23]] %s4532_s25  ;;  %s4538_s22 = smov [#allocation3]  }
  0x4d   :  { %141 = sst [smem:[#allocation23 + $0x1]] %s4532_s25  ;;  %s135_s27 = sshll.u32 %s4538_s22, 4  ;;  %s136_s27 = int_to_ptr.vmem [resolvable:$true] %s135_s27 }
  0x4e   :  { %143 = sst [smem:[#allocation23 + $0x2]] %s4527_s23  ;;  %s4539_s6 = smov [#allocation12 + $0x1]  }
  0x4f   :  { %145 = sst [smem:[#allocation23 + $0x3]] %s6077_s30  ;;  %s4540_s0 = smov [#allocation22]  }
  0x50   :  { %147 = sst [smem:[#allocation23 + $0x4]] %s4529_s3  ;;  %s4541_s26 = smov [#allocation4]  }
  0x51   :  { %149 = sst [smem:[#allocation23 + $0x5]] %s4534_s29  ;;  %s170_s5 = sshll.u32 %s4541_s26, 4  ;;  %s171_s5 = int_to_ptr.vmem [resolvable:$true] %s170_s5 }
  0x52   :  { %151 = sst [smem:[#allocation23 + $0x6]] %s4535_s19  ;;  %s4543_s1 = smov [#allocation24]  }
  0x53   :  { %153 = sst [smem:[#allocation23 + $0x7]] %s6077_s30  ;;  %s4544_s21 = smov [#allocation5]  }
  0x54   :  { %155 = sst [smem:[#allocation23 + $0x8]] %s4527_s23  ;;  %s205_s22 = sshll.u32 %s4544_s21, 4  ;;  %s206_s22 = int_to_ptr.vmem [resolvable:$true] %s205_s22 }
  0x55   :  { %157 = dma.general %s6044_s7, 4096, %s136_s27, %s4539_s6, %s4540_s0, [#allocation23], %s4699_s28, 0  }
  0x56   :  { %174 = sst [smem:[#allocation25]] %s4532_s25  ;;  %s4542_s7 = smov [#allocation12 + $0x2]  }
  0x57   :  { %176 = sst [smem:[#allocation25 + $0x1]] %s4532_s25  ;;  %s4546_s27 = smov [#allocation26]  }
  0x58   :  { %178 = sst [smem:[#allocation25 + $0x2]] %s4527_s23  ;;  %s4549_s24 = smov [#allocation6]  }
  0x59   :  { %180 = sst [smem:[#allocation25 + $0x3]] %s6077_s30  ;;  %s236_s2 = sshll.u32 %s4549_s24, 4  ;;  %s237_s2 = int_to_ptr.vmem [resolvable:$true] %s236_s2 }
  0x5a   :  { %182 = sst [smem:[#allocation25 + $0x4]] %s4529_s3  ;;  %s4550_s26 = smov [#allocation7]  }
  0x5b   :  { %184 = sst [smem:[#allocation25 + $0x5]] %s4534_s29  ;;  %s4417_s20 = scalar_lea.hbm %s6049_s12, 4096 }
  0x5c   :  { %186 = sst [smem:[#allocation25 + $0x6]] %s4535_s19  ;;  %p4418_p10 = scmp.ne.s32.totalorder %s6049_s12, %s4417_s20 }
  0x5d   :  { %188 = sst [smem:[#allocation25 + $0x7]] %s6077_s30  ;;  %p4421_p11 = scmp.lt.u32.totalorder %s4417_s20, %s6049_s12 }
  0x5e   :  { %190 = sst [smem:[#allocation25 + $0x8]] %s4527_s23 }
  0x5f   :  { %192 = dma.general %s6046_s9, 4096, %s171_s5, %s4542_s7, %s4543_s1, [#allocation25], %s4699_s28, 0  }
  0x60   :  { %209 = sst [smem:[#allocation27]] %s4532_s25  ;;  %s4545_s9 = smov [#allocation12 + $0x3]  }
  0x61   :  { %211 = sst [smem:[#allocation27 + $0x1]] %s4532_s25  ;;  %s248_s5 = sshll.u32 %s4550_s26, 4  ;;  %s249_s5 = int_to_ptr.vmem [resolvable:$true] %s248_s5 }
  0x62   :  { %213 = sst [smem:[#allocation27 + $0x2]] %s4527_s23  ;;  %p4423_p12 = pnand %p4421_p11, %p4418_p10 }
  0x63   :  { %215 = sst [smem:[#allocation27 + $0x3]] %s6077_s30 }
  0x64   :  { %217 = sst [smem:[#allocation27 + $0x4]] %s4529_s3 }
  0x65   :  { %219 = sst [smem:[#allocation27 + $0x5]] %s4534_s29 }
  0x66   :  { %221 = sst [smem:[#allocation27 + $0x6]] %s4535_s19 }
  0x67   :  { %223 = sst [smem:[#allocation27 + $0x7]] %s6077_s30 }
  0x68   :  { %225 = sst [smem:[#allocation27 + $0x8]] %s4527_s23 }
  0x69   :  { %227 = dma.general %s6047_s10, 4096, %s206_s22, %s4545_s9, %s4546_s27, [#allocation27], %s4699_s28, 0  }
  0x6a   :  { %v584_v0 = vld [vmem:[#allocation18] sm:$0xff]  ;;  %v585_v1 = vld [vmem:[#allocation18 + $0x8] sm:$0xff]  ;;  %v586_v2 = vld [vmem:[#allocation18 + $0x10] sm:$0xff]  ;;  %s6078_s3 = sld [smem:[#allocation72_spill]]  ;;  %s6080_s29 = sld [smem:[#allocation73_spill]] }
  0x6b   :  { %v587_v3 = vld [vmem:[#allocation18 + $0x18] sm:$0xff]  ;;  %4037 = vtanh.f32 %v584_v0  ;;  %v588_v4 = vld [vmem:[#allocation18 + $0x20] sm:$0xff]  ;;  %v589_v5 = vld [vmem:[#allocation18 + $0x28] sm:$0xff] }
  0x6c   :  { %4039 = vtanh.f32 %v585_v1  ;;  %v264_v6 = vld [vmem:[#allocation13] sm:$0xff]  ;;  %v266_v9 = vld [vmem:[#allocation13 + $0x10] sm:$0xff]  ;;  %v265_v10 = vld [vmem:[#allocation13 + $0x8] sm:$0xff] }
  0x6d   :  { %4041 = vtanh.f32 %v586_v2  ;;  %v280_v7 = vcombine.high %v264_v6, %v264_v6  ;;  %v297_v8 = vsel %vm296_vm0, %v264_v6, 0.0  ;;  %v267_v11 = vld [vmem:[#allocation13 + $0x18] sm:$0xff]  ;;  %v590_v12 = vld [vmem:[#allocation18 + $0x30] sm:$0xff]  ;;  %v282_v14 = vcombine.high %v266_v9, %v266_v9  ;;  %v268_v17 = vld [vmem:[#allocation13 + $0x20] sm:$0xff] }
  0x6e   :  { %v591_v13 = vld [vmem:[#allocation18 + $0x38] sm:$0xff]  ;;  %4043 = vtanh.f32 %v587_v3  ;;  %v307_v15 = vsel %vm296_vm0, %v266_v9, 0.0  ;;  %v281_v16 = vcombine.high %v265_v10, %v265_v10  ;;  %v302_v19 = vsel %vm296_vm0, %v265_v10, 0.0  ;;  %v269_v21 = vld [vmem:[#allocation13 + $0x28] sm:$0xff]  ;;  %v270_v22 = vld [vmem:[#allocation13 + $0x30] sm:$0xff] }
  0x6f   :  { %4045 = vtanh.f32 %v588_v4  ;;  %v298_v18 = vsel %vm296_vm0, %v280_v7, 0.0  ;;  %v283_v20 = vcombine.high %v267_v11, %v267_v11  ;;  %v308_v24 = vsel %vm296_vm0, %v282_v14, 0.0  ;;  %v271_v28 = vld [vmem:[#allocation13 + $0x38] sm:$0xff]  ;;  %v4029_v59 = vld [vmem:[#allocation16] sm:$0xff]   ;;  %v4030_v60 = vld [vmem:[#allocation16 + $0x8] sm:$0xff]  }
  0x70   :  { %4047 = vtanh.f32 %v589_v5  ;;  %v299_v23 = vadd.f32 %v298_v18, %v297_v8  ;;  %v303_v25 = vsel %vm296_vm0, %v281_v16, 0.0  ;;  %v309_v26 = vadd.f32 %v308_v24, %v307_v15  ;;  %v345_v56 = vld [vmem:[%s6078_s3] sm:$0x3]  ;;  %3853 = vmatpush3.bf16.msra.mxu1 %v4029_v59  ;;  %v4031_v61 = vld [vmem:[#allocation16 + $0x10] sm:$0xff]   ;;  %v4032_v62 = vld [vmem:[#allocation16 + $0x18] sm:$0xff]  }
  0x71   :  { %4049 = vtanh.f32 %v590_v12  ;;  %v312_v27 = vsel %vm296_vm0, %v267_v11, 0.0  ;;  %v304_v29 = vadd.f32 %v303_v25, %v302_v19  ;;  %v313_v30 = vsel %vm296_vm0, %v283_v20, 0.0  ;;  %3854 = vmatprep.subr.bf16.mxu1 %v6060_v57  ;;  %v4033_v63 = vld [vmem:[#allocation16 + $0x20] sm:$0xff]   ;;  %v4034_v0 = vld [vmem:[#allocation16 + $0x28] sm:$0xff]   ;;  %v4035_v1 = vld [vmem:[#allocation16 + $0x30] sm:$0xff]  }
  0x72   :  { %4051 = vtanh.f32 %v591_v13  ;;  %300 = vadd.xlane.f32.xlu0 %v299_v23  ;;  %v284_v31 = vcombine.high %v268_v17, %v268_v17  ;;  %310 = vadd.xlane.f32.xlu1 %v309_v26  ;;  %v314_v32 = vadd.f32 %v313_v30, %v312_v27  ;;  %v317_v33 = vsel %vm296_vm0, %v268_v17, 0.0 }
  0x73   :  { %v285_v34 = vcombine.high %v269_v21, %v269_v21  ;;  %v286_v35 = vcombine.high %v270_v22, %v270_v22  ;;  %v322_v37 = vsel %vm296_vm0, %v269_v21, 0.0  ;;  %v287_v38 = vcombine.high %v271_v28, %v271_v28 }
  0x74   :  { %v318_v36 = vsel %vm296_vm0, %v284_v31, 0.0  ;;  %v327_v45 = vsel %vm296_vm0, %v270_v22, 0.0  ;;  %v332_v48 = vsel %vm296_vm0, %v271_v28, 0.0  ;;  %v424_v58 = vsel %vm422_vm1, %v345_v56, 0  ;;  %3855 = vmatpush3.bf16.msra.mxu1 %v4030_v60 }
  0x75   :  { %v4757_v39 = vpop.eup %4037  ;;  %v323_v40 = vsel %vm296_vm0, %v285_v34, 0.0  ;;  %v319_v42 = vadd.f32 %v318_v36, %v317_v33  ;;  %v328_v46 = vsel %vm296_vm0, %v286_v35, 0.0  ;;  %v333_v49 = vsel %vm296_vm0, %v287_v38, 0.0  ;;  %3847 = vmatpush3.bf16.msra.mxu0 %v424_v58  ;;  %3856 = vmatprep.subr.bf16.mxu1 %v6060_v57 }
  0x76   :  { %v4760_v41 = vpop.eup %4039  ;;  %305 = vadd.xlane.f32.xlu0 %v304_v29  ;;  %315 = vadd.xlane.f32.xlu1 %v314_v32  ;;  %v324_v44 = vadd.f32 %v323_v40, %v322_v37  ;;  %v329_v52 = vadd.f32 %v328_v46, %v327_v45  ;;  %v334_v54 = vadd.f32 %v333_v49, %v332_v48  ;;  %v369_v2 = vlaneseq }
  0x77   :  { %v4762_v43 = vpop.eup %4041 }
  0x78   :  { %v4766_v47 = vpop.eup %4043  ;;  %3857 = vmatpush3.bf16.msra.mxu1 %v4031_v61  ;;  %v370_v4 = vand.u32 127, %v369_v2  ;;  %v4794_v5 = vshrl.u32 %v369_v2, 7 }
  0x79   :  { %v4770_v50 = vpop.eup %4045  ;;  %3858 = vmatprep.subr.bf16.mxu1 %v6060_v57 }
  0x7a   :  { %v4772_v51 = vpop.eup %4047  ;;  %320 = vadd.xlane.f32.xlu0 %v319_v42  ;;  %325 = vadd.xlane.f32.xlu1 %v324_v44  ;;  %6079 = vst [vmem:[#allocation46_spill] sm:$0xff] %v4794_v5  ;;  %v373_v10 = vsub.s32 %v370_v4, %v4794_v5 }
  0x7b   :  { %v4774_v53 = vpop.eup %4049 }
  0x7c   :  { %v4776_v55 = vpop.eup %4051  ;;  %3859 = vmatpush3.bf16.msra.mxu1 %v4032_v62 }
  0x7d   :  { %3860 = vmatprep.subr.bf16.mxu1 %v6060_v57 }
  0x7e   :  { %330 = vadd.xlane.f32.xlu0 %v329_v52  ;;  %335 = vadd.xlane.f32.xlu1 %v334_v54  ;;  %v4036_v52 = vld [vmem:[#allocation16 + $0x38] sm:$0xff]   ;;  %v3696_v54 = vld [vmem:[%s6080_s29] ss:$0 sm:$0xff] }
  0x80   :  { %3861 = vmatpush3.bf16.msra.mxu1 %v4033_v63  ;;  %v3698_v63 = vld [vmem:[%s6041_s4] ss:$0 sm:$0xff] }
  0x81   :  { %3862 = vmatprep.subr.bf16.mxu1 %v6060_v57 }
  0x84   :  { %3863 = vmatpush3.bf16.msra.mxu1 %v4034_v0 }
  0x85   :  { %3864 = vmatprep.subr.bf16.mxu1 %v6060_v57 }
  0x88   :  { %3865 = vmatpush3.bf16.msra.mxu1 %v4035_v1 }
  0x89   :  { %3866 = vmatprep.subr.bf16.mxu1 %v6060_v57 }
  0x8c   :  { %3867 = vmatpush3.bf16.msra.mxu1 %v4036_v52 }
  0xff   :  { %v301_v3 = vpop.xlane.xlu0 %300  ;;  %v311_v7 = vpop.xlane.xlu1 %310 }
 0x100   :  { %v337_v6 = vpack.c.bf16 %v301_v3, %v301_v3  ;;  %v339_v8 = vpack.c.bf16 %v311_v7, %v311_v7 }
 0x102   :  { %v361_v11 = vunpack.c.l.b16 %v337_v6  ;;  %v363_v14 = vunpack.c.l.b16 %v339_v8 }
 0x103   :  { %v306_v9 = vpop.xlane.xlu0 %305  ;;  %v316_v13 = vpop.xlane.xlu1 %315 }
 0x104   :  { %v338_v12 = vpack.c.bf16 %v306_v9, %v306_v9  ;;  %v340_v15 = vpack.c.bf16 %v316_v13, %v316_v13  ;;  %v374_v19 = vrot.slane %v361_v11, %v373_v10  ;;  %v382_v23 = vrot.slane %v363_v14, %v373_v10 }
 0x106   :  { %v362_v16 = vunpack.c.l.b16 %v338_v12  ;;  %v364_v17 = vunpack.c.l.b16 %v340_v15 }
 0x107   :  { %v321_v18 = vpop.xlane.xlu0 %320  ;;  %v326_v22 = vpop.xlane.xlu1 %325 }
 0x108   :  { %v378_v20 = vrot.slane %v362_v16, %v373_v10  ;;  %v341_v21 = vpack.c.bf16 %v321_v18, %v321_v18  ;;  %v386_v24 = vrot.slane %v364_v17, %v373_v10  ;;  %v342_v25 = vpack.c.bf16 %v326_v22, %v326_v22 }
 0x10a   :  { %v404_v26 = vsel %vm403_vm3, %v378_v20, %v374_v19  ;;  %v365_v27 = vunpack.c.l.b16 %v341_v21  ;;  %v366_v29 = vunpack.c.l.b16 %v342_v25 }
 0x10b   :  { %v406_v28 = vsel %vm405_vm4, %v382_v23, %v404_v26  ;;  %v331_v30 = vpop.xlane.xlu0 %330  ;;  %v336_v34 = vpop.xlane.xlu1 %335 }
 0x10c   :  { %v408_v31 = vsel %vm407_vm5, %v386_v24, %v406_v28  ;;  %v390_v32 = vrot.slane %v365_v27, %v373_v10  ;;  %v343_v33 = vpack.c.bf16 %v331_v30, %v331_v30  ;;  %v394_v35 = vrot.slane %v366_v29, %v373_v10 }
 0x10d   :  { %v344_v36 = vpack.c.bf16 %v336_v34, %v336_v34 }
 0x10e   :  { %v410_v37 = vsel %vm409_vm6, %v390_v32, %v408_v31  ;;  %v367_v38 = vunpack.c.l.b16 %v343_v33 }
 0x10f   :  { %v368_v40 = vunpack.c.l.b16 %v344_v36  ;;  %v412_v44 = vsel %vm411_vm7, %v394_v35, %v410_v37 }
 0x110   :  { %v398_v42 = vrot.slane %v367_v38, %v373_v10 }
 0x111   :  { %v402_v45 = vrot.slane %v368_v40, %v373_v10 }
 0x112   :  { %v414_v46 = vsel %vm413_vm8, %v398_v42, %v412_v44 }
 0x113   :  { %v416_v48 = vsel %vm415_vm9, %v402_v45, %v414_v46 }
 0x114   :  { %v417_v49 = vpack.c.b16 %v416_v48, %v416_v48 }
 0x116   :  { %3849 = vmatmul.mubr.msk.bf16.vlgmr.msra.gmra.mrb[0].mxu0 %vm418_vm10, %v417_v49 }
 0x1e9   :  { %v460_v56 = vpop.f32.mrb[0].mxu0 }
 0x1ea   :  { %v461_v58 = vadd.f32 %v3696_v54, %v460_v56  ;;  %v3850_v59 = vpop.f32.mrb[1].mxu0 }
 0x1eb   :  { %v463_v60 = vpop.f32.mrb[2].mxu0 }
 0x1ec   :  { %v466_v61 = vpack.c.bf16 %v461_v58, %v461_v58  ;;  %v3851_v62 = vpop.f32.mrb[3].mxu0 }
 0x1ee   :  { %3869 = vmatmul.mubr.bf16.vlgmr.msra.gmra.mrb[0].mxu1 %v466_v61 }
 0x2c1   :  { %v572_v0 = vpop.f32.mrb[0].mxu1 }
 0x2c2   :  { %v573_v1 = vadd.f32 %v3698_v63, %v572_v0  ;;  %v3870_v2 = vpop.f32.mrb[1].mxu1 }
 0x2c3   :  { %v575_v3 = vpop.f32.mrb[2].mxu1 }
 0x2c4   :  { %v3871_v4 = vpop.f32.mrb[3].mxu1  ;;  %v578_v6 = vmul.f32 %v573_v1, %v573_v1 }
 0x2c6   :  { %579 = vadd.xlane.f32.xlu0 %v578_v6 }
 0x2c7   :  { %4426 = shalt.err (!%p4423_p12)  }
 0x2c8   :  { %s4427_s9 = scalar_lea.vmem %s237_s2, 4096  ;;  %p4432_p0 = scmp.lt.s32.totalorder %s237_s2, %s237_s2 }
 0x2c9   :  { %p4428_p13 = scmp.ne.s32.totalorder %s237_s2, %s4427_s9  ;;  %p4433_p1 = scmp.lt.s32.totalorder %s4427_s9, %s4427_s9 }
 0x2cb   :  { %p4434_p2 = por %p4433_p1, %p4432_p0 }
 0x2cd   :  { %p4435_p3 = pnand %p4434_p2, %p4428_p13 }
 0x2cf   :  { %4438 = shalt.err (!%p4435_p3)  }
 0x2d0   :  { %239 = dma.hbm_to_vmem [thread:$0]  %s6049_s12, 4096, %s237_s2, [#allocation12 + $0x4] }
 0x2d1   :  { %s4439_s23 = scalar_lea.hbm %s6051_s14, 1024 }
 0x2d2   :  { %p4440_p4 = scmp.ne.s32.totalorder %s6051_s14, %s4439_s23  ;;  %p4443_p5 = scmp.lt.u32.totalorder %s4439_s23, %s6051_s14 }
 0x2d4   :  { %p4445_p6 = pnand %p4443_p5, %p4440_p4 }
 0x2d6   :  { %4448 = shalt.err (!%p4445_p6)  }
 0x2d7   :  { %s4449_s19 = scalar_lea.vmem %s249_s5, 1024  ;;  %p4454_p8 = scmp.lt.s32.totalorder %s249_s5, %s249_s5 }
 0x2d8   :  { %p4450_p7 = scmp.ne.s32.totalorder %s249_s5, %s4449_s19  ;;  %p4455_p9 = scmp.lt.s32.totalorder %s4449_s19, %s4449_s19 }
 0x2da   :  { %p4456_p10 = por %p4455_p9, %p4454_p8 }
 0x2dc   :  { %p4457_p11 = pnand %p4456_p10, %p4450_p7 }
 0x2de   :  { %4460 = shalt.err (!%p4457_p11)  }
 0x2df   :  { %251 = dma.hbm_to_vmem [thread:$0]  %s6051_s14, 1024, %s249_s5, [#allocation12 + $0x5] }
 0x2e0   :  { %s4551_s24 = smov [#allocation8]   ;;  %s4461_s1 = scalar_lea.hbm %s6053_s16, 1024 }
 0x2e1   :  { %s260_s2 = sshll.u32 %s4551_s24, 4  ;;  %p4462_p12 = scmp.ne.s32.totalorder %s6053_s16, %s4461_s1  ;;  %s261_s2 = int_to_ptr.vmem [resolvable:$true] %s260_s2 }
 0x2e2   :  { %p4465_p13 = scmp.lt.u32.totalorder %s4461_s1, %s6053_s16 }
 0x2e4   :  { %p4467_p0 = pnand %p4465_p13, %p4462_p12 }
 0x2e6   :  { %4470 = shalt.err (!%p4467_p0)  }
 0x2e7   :  { %s4471_s22 = scalar_lea.vmem %s261_s2, 1024  ;;  %p4476_p2 = scmp.lt.s32.totalorder %s261_s2, %s261_s2 }
 0x2e8   :  { %p4472_p1 = scmp.ne.s32.totalorder %s261_s2, %s4471_s22  ;;  %p4477_p3 = scmp.lt.s32.totalorder %s4471_s22, %s4471_s22 }
 0x2ea   :  { %p4478_p4 = por %p4477_p3, %p4476_p2 }
 0x2ec   :  { %p4479_p5 = pnand %p4478_p4, %p4472_p1 }
 0x2ee   :  { %4482 = shalt.err (!%p4479_p5)  }
 0x2ef   :  { %263 = dma.hbm_to_vmem [thread:$0]  %s6053_s16, 1024, %s261_s2, [#allocation12 + $0x6] }
 0x353   :  { %v580_v7 = vpop.xlane.xlu0 %579 }
 0x354   :  { %v581_v8 = vadd.f32 1e-12, %v580_v7 }
 0x356   :  { %4053 = vrsqrt.f32 %v581_v8 }
 0x360   :  { %v4054_v9 = vpop.eup %4053 }
 0x361   :  { %v4839_v10 = vmul.f32 %v4054_v9, %v573_v1 }
 0x363   :  { %6081 = vst [vmem:[#allocation47_spill] sm:$0xff] %v4839_v10 }
 0x364   :  { %4509 = dma.done.wait [#allocation12], 4096 }
 0x365   :  { %4510 = vsyncadd [#allocation12], 4294963200 }
 0x366   :  { %4511 = dma.done.wait [#allocation12 + $0x1], 4096 }
 0x367   :  { %4512 = vsyncadd [#allocation12 + $0x1], 4294963200  ;;  %v6066_v11 = vmov 0   ;;  %v615_v12 = vld [vmem:[#allocation2 + $0x8] sm:$0xff]  ;;  %v617_v13 = vld [vmem:[#allocation2 + $0x18] sm:$0xff]  ;;  %v3773_v52 = vpack.c.bf16 %v4760_v41, %v4757_v39  ;;  %v3774_v62 = vpack.c.bf16 %v4766_v47, %v4762_v43  ;;  %v3775_v6 = vpack.c.bf16 %v4772_v51, %v4770_v50 }
 0x368   :  { %724 = vmatprep.mubr.bf16.mxu0 %v6066_v11  ;;  %797 = vmatprep.mubr.bf16.mxu1 %v6066_v11  ;;  %v614_v14 = vld [vmem:[#allocation2] sm:$0xff]  ;;  %v616_v15 = vld [vmem:[#allocation2 + $0x10] sm:$0xff]  ;;  %v619_v16 = vld [vmem:[#allocation2 + $0x28] sm:$0xff] }
 0x369   :  { %692 = vmatprep.subr.bf16.mxu0 %v615_v12  ;;  %765 = vmatprep.subr.bf16.mxu1 %v617_v13  ;;  %v621_v17 = vld [vmem:[#allocation2 + $0x38] sm:$0xff]  ;;  %v618_v18 = vld [vmem:[#allocation2 + $0x20] sm:$0xff]  ;;  %v620_v19 = vld [vmem:[#allocation2 + $0x30] sm:$0xff] }
 0x36a   :  { %693 = vmatpush1.bf16.msra.mxu0 %v614_v14  ;;  %766 = vmatpush1.bf16.msra.mxu1 %v616_v15  ;;  %v623_v20 = vld [vmem:[#allocation2 + $0x48] sm:$0xff]  ;;  %v625_v21 = vld [vmem:[#allocation2 + $0x58] sm:$0xff]  ;;  %v622_v22 = vld [vmem:[#allocation2 + $0x40] sm:$0xff]  ;;  %v3776_v15 = vpack.c.bf16 %v4776_v55, %v4774_v53 }
 0x36b   :  { %694 = vmatprep.subr.bf16.mxu0 %v619_v16  ;;  %767 = vmatprep.subr.bf16.mxu1 %v621_v17  ;;  %v624_v23 = vld [vmem:[#allocation2 + $0x50] sm:$0xff]  ;;  %v627_v24 = vld [vmem:[#allocation2 + $0x68] sm:$0xff]  ;;  %v629_v25 = vld [vmem:[#allocation2 + $0x78] sm:$0xff] }
 0x36c   :  { %v626_v26 = vld [vmem:[#allocation2 + $0x60] sm:$0xff]  ;;  %v628_v27 = vld [vmem:[#allocation2 + $0x70] sm:$0xff]  ;;  %v631_v28 = vld [vmem:[#allocation2 + $0x88] sm:$0xff] }
 0x36d   :  { %v633_v29 = vld [vmem:[#allocation2 + $0x98] sm:$0xff]  ;;  %v630_v30 = vld [vmem:[#allocation2 + $0x80] sm:$0xff]  ;;  %v632_v31 = vld [vmem:[#allocation2 + $0x90] sm:$0xff] }
 0x36e   :  { %695 = vmatpush1.bf16.msra.mxu0 %v618_v18  ;;  %768 = vmatpush1.bf16.msra.mxu1 %v620_v19  ;;  %v635_v32 = vld [vmem:[#allocation2 + $0xa8] sm:$0xff]  ;;  %v637_v33 = vld [vmem:[#allocation2 + $0xb8] sm:$0xff]  ;;  %v634_v34 = vld [vmem:[#allocation2 + $0xa0] sm:$0xff] }
 0x36f   :  { %696 = vmatprep.subr.bf16.mxu0 %v623_v20  ;;  %769 = vmatprep.subr.bf16.mxu1 %v625_v21  ;;  %v636_v35 = vld [vmem:[#allocation2 + $0xb0] sm:$0xff]  ;;  %v639_v36 = vld [vmem:[#allocation2 + $0xc8] sm:$0xff]  ;;  %v641_v37 = vld [vmem:[#allocation2 + $0xd8] sm:$0xff]  ;;  %v6065_v20 = vsub.s32 2, %v4794_v5  ;;  %v6064_v21 = vsub.s32 3, %v4794_v5 }
 0x370   :  { %v638_v38 = vld [vmem:[#allocation2 + $0xc0] sm:$0xff]  ;;  %v640_v40 = vld [vmem:[#allocation2 + $0xd0] sm:$0xff]  ;;  %v643_v42 = vld [vmem:[#allocation2 + $0xe8] sm:$0xff] }
 0x371   :  { %v645_v44 = vld [vmem:[#allocation2 + $0xf8] sm:$0xff]  ;;  %v642_v45 = vld [vmem:[#allocation2 + $0xe0] sm:$0xff]  ;;  %v644_v46 = vld [vmem:[#allocation2 + $0xf0] sm:$0xff] }
 0x372   :  { %697 = vmatpush1.bf16.msra.mxu0 %v622_v22  ;;  %770 = vmatpush1.bf16.msra.mxu1 %v624_v23  ;;  %v4843_v48 = vld [vmem:[#allocation3 + $0x8] sm:$0xff]  ;;  %v4845_v49 = vld [vmem:[#allocation3 + $0x18] sm:$0xff]  ;;  %v4851_v54 = vld [vmem:[#allocation3] sm:$0xff]  ;;  %v6063_v22 = vsub.s32 0, %v4794_v5 }
 0x373   :  { %698 = vmatprep.subr.bf16.mxu0 %v627_v24  ;;  %771 = vmatprep.subr.bf16.mxu1 %v629_v25  ;;  %v4853_v56 = vld [vmem:[#allocation3 + $0x10] sm:$0xff]  ;;  %v4855_v58 = vld [vmem:[#allocation3 + $0x28] sm:$0xff]  ;;  %v4857_v59 = vld [vmem:[#allocation3 + $0x38] sm:$0xff]  ;;  %v6062_v24 = vsub.s32 1, %v4794_v5 }
 0x374   :  { %v4863_v39 = vld [vmem:[#allocation3 + $0x20] sm:$0xff]  ;;  %v4865_v41 = vld [vmem:[#allocation3 + $0x30] sm:$0xff]  ;;  %v4869_v60 = vld [vmem:[#allocation3 + $0x48] sm:$0xff] }
 0x375   :  { %v4871_v61 = vld [vmem:[#allocation3 + $0x58] sm:$0xff]  ;;  %v4879_v63 = vld [vmem:[#allocation3 + $0x40] sm:$0xff]  ;;  %v4881_v0 = vld [vmem:[#allocation3 + $0x50] sm:$0xff] }
 0x376   :  { %699 = vmatpush1.bf16.msra.mxu0 %v626_v26  ;;  %772 = vmatpush1.bf16.msra.mxu1 %v628_v27  ;;  %v4883_v1 = vld [vmem:[#allocation3 + $0x68] sm:$0xff]  ;;  %v4885_v2 = vld [vmem:[#allocation3 + $0x78] sm:$0xff]  ;;  %v4891_v43 = vld [vmem:[#allocation3 + $0x60] sm:$0xff] }
 0x377   :  { %700 = vmatprep.subr.bf16.mxu0 %v631_v28  ;;  %773 = vmatprep.subr.bf16.mxu1 %v633_v29  ;;  %v4893_v47 = vld [vmem:[#allocation3 + $0x70] sm:$0xff]  ;;  %v4897_v3 = vld [vmem:[#allocation3 + $0x88] sm:$0xff]  ;;  %v4899_v4 = vld [vmem:[#allocation3 + $0x98] sm:$0xff] }
 0x378   :  { %v4907_v7 = vld [vmem:[#allocation3 + $0x80] sm:$0xff]  ;;  %v4909_v8 = vld [vmem:[#allocation3 + $0x90] sm:$0xff]  ;;  %v4911_v9 = vld [vmem:[#allocation3 + $0xa8] sm:$0xff] }
 0x379   :  { %v4913_v12 = vld [vmem:[#allocation3 + $0xb8] sm:$0xff]  ;;  %v4919_v50 = vld [vmem:[#allocation3 + $0xa0] sm:$0xff]  ;;  %v4921_v51 = vld [vmem:[#allocation3 + $0xb0] sm:$0xff] }
 0x37a   :  { %701 = vmatpush1.bf16.msra.mxu0 %v630_v30  ;;  %774 = vmatpush1.bf16.msra.mxu1 %v632_v31  ;;  %v4925_v13 = vld [vmem:[#allocation3 + $0xc8] sm:$0xff]  ;;  %v4927_v14 = vld [vmem:[#allocation3 + $0xd8] sm:$0xff]  ;;  %v4935_v16 = vld [vmem:[#allocation3 + $0xc0] sm:$0xff] }
 0x37b   :  { %702 = vmatprep.subr.bf16.mxu0 %v635_v32  ;;  %775 = vmatprep.subr.bf16.mxu1 %v637_v33  ;;  %v4937_v17 = vld [vmem:[#allocation3 + $0xd0] sm:$0xff]  ;;  %v4939_v18 = vld [vmem:[#allocation3 + $0xe8] sm:$0xff]  ;;  %v4941_v19 = vld [vmem:[#allocation3 + $0xf8] sm:$0xff] }
 0x37c   :  { %v4947_v53 = vld [vmem:[#allocation3 + $0xe0] sm:$0xff]  ;;  %v4949_v55 = vld [vmem:[#allocation3 + $0xf0] sm:$0xff] }
 0x37d   :  { %v646_v23 = vld [vmem:[%s6045_s8] sm:$0xf] }
 0x37e   :  { %703 = vmatpush1.bf16.msra.mxu0 %v634_v34  ;;  %776 = vmatpush1.bf16.msra.mxu1 %v636_v35  ;;  %v5002_v25 = vrot.slane %v646_v23, %v6065_v20  ;;  %v5010_v28 = vrot.slane %v646_v23, %v6064_v21  ;;  %v651_v29 = vrot.slane %v646_v23, %v6063_v22 }
 0x37f   :  { %704 = vmatprep.subr.bf16.mxu0 %v639_v36  ;;  %777 = vmatprep.subr.bf16.mxu1 %v641_v37  ;;  %v655_v32 = vrot.slane %v646_v23, %v6062_v24 }
 0x382   :  { %705 = vmatpush1.bf16.msra.mxu0 %v638_v38  ;;  %778 = vmatpush1.bf16.msra.mxu1 %v640_v40 }
 0x383   :  { %706 = vmatprep.subr.bf16.mxu0 %v643_v42  ;;  %779 = vmatprep.subr.bf16.mxu1 %v645_v44 }
 0x386   :  { %707 = vmatpush1.bf16.msra.mxu0 %v642_v45  ;;  %780 = vmatpush1.bf16.msra.mxu1 %v644_v46 }
 0x387   :  { %906 = vmatprep.subr.bf16.mxu0 %v4843_v48  ;;  %947 = vmatprep.subr.bf16.mxu1 %v4845_v49 }
 0x389   :  { %725 = vmatmul.mubr.bf16.vlgmr.msra.gmra.mrb[4].mxu0 %v3773_v52  ;;  %798 = vmatmul.mubr.bf16.vlgmr.msra.gmra.mrb[4].mxu1 %v3773_v52 }
 0x38a   :  { %907 = vmatpush1.bf16.msra.mxu0 %v4851_v54  ;;  %948 = vmatpush1.bf16.msra.mxu1 %v4853_v56 }
 0x38b   :  { %908 = vmatprep.subr.bf16.mxu0 %v4855_v58  ;;  %949 = vmatprep.subr.bf16.mxu1 %v4857_v59 }
 0x38c   :  { %734 = vmatprep.mubr.bf16.mxu0 %v6066_v11  ;;  %807 = vmatprep.mubr.bf16.mxu1 %v6066_v11 }
 0x38e   :  { %909 = vmatpush1.bf16.msra.mxu0 %v4863_v39  ;;  %950 = vmatpush1.bf16.msra.mxu1 %v4865_v41 }
 0x38f   :  { %910 = vmatprep.subr.bf16.mxu0 %v4869_v60  ;;  %951 = vmatprep.subr.bf16.mxu1 %v4871_v61 }
 0x391   :  { %735 = vmatmul.mubr.bf16.gmra.mrb[8].mxu0 %v3774_v62  ;;  %808 = vmatmul.mubr.bf16.gmra.mrb[8].mxu1 %v3774_v62 }
 0x392   :  { %911 = vmatpush1.bf16.msra.mxu0 %v4879_v63  ;;  %952 = vmatpush1.bf16.msra.mxu1 %v4881_v0 }
 0x393   :  { %912 = vmatprep.subr.bf16.mxu0 %v4883_v1  ;;  %953 = vmatprep.subr.bf16.mxu1 %v4885_v2 }
 0x394   :  { %744 = vmatprep.mubr.bf16.mxu0 %v6066_v11  ;;  %817 = vmatprep.mubr.bf16.mxu1 %v6066_v11 }
 0x396   :  { %913 = vmatpush1.bf16.msra.mxu0 %v4891_v43  ;;  %954 = vmatpush1.bf16.msra.mxu1 %v4893_v47 }
 0x397   :  { %914 = vmatprep.subr.bf16.mxu0 %v4897_v3  ;;  %955 = vmatprep.subr.bf16.mxu1 %v4899_v4 }
 0x399   :  { %745 = vmatmul.mubr.bf16.gmra.mrb[12].mxu0 %v3775_v6  ;;  %818 = vmatmul.mubr.bf16.gmra.mrb[12].mxu1 %v3775_v6 }
 0x39a   :  { %915 = vmatpush1.bf16.msra.mxu0 %v4907_v7  ;;  %956 = vmatpush1.bf16.msra.mxu1 %v4909_v8 }
 0x39b   :  { %916 = vmatprep.subr.bf16.mxu0 %v4911_v9  ;;  %957 = vmatprep.subr.bf16.mxu1 %v4913_v12 }
 0x39c   :  { %754 = vmatprep.mubr.bf16.mxu0 %v6066_v11  ;;  %827 = vmatprep.mubr.bf16.mxu1 %v6066_v11 }
 0x39e   :  { %917 = vmatpush1.bf16.msra.mxu0 %v4919_v50  ;;  %958 = vmatpush1.bf16.msra.mxu1 %v4921_v51 }
 0x39f   :  { %918 = vmatprep.subr.bf16.mxu0 %v4925_v13  ;;  %959 = vmatprep.subr.bf16.mxu1 %v4927_v14 }
 0x3a1   :  { %755 = vmatmul.mubr.bf16.gmra.mrb[16].mxu0 %v3776_v15  ;;  %828 = vmatmul.mubr.bf16.gmra.mrb[16].mxu1 %v3776_v15 }
 0x3a2   :  { %919 = vmatpush1.bf16.msra.mxu0 %v4935_v16  ;;  %960 = vmatpush1.bf16.msra.mxu1 %v4937_v17 }
 0x3a3   :  { %920 = vmatprep.subr.bf16.mxu0 %v4939_v18  ;;  %961 = vmatprep.subr.bf16.mxu1 %v4941_v19 }
 0x3a4   :  { %938 = vmatprep.mubr.bf16.mxu0 %v6066_v11  ;;  %979 = vmatprep.mubr.bf16.mxu1 %v6066_v11 }
 0x3a6   :  { %921 = vmatpush1.bf16.msra.mxu0 %v4947_v53  ;;  %962 = vmatpush1.bf16.msra.mxu1 %v4949_v55 }
 0x3a7   :  { %1054 = vmatprep.subr.bf16.mxu0 %v4843_v48  ;;  %1095 = vmatprep.subr.bf16.mxu1 %v4845_v49 }
 0x3a9   :  { %939 = vmatmul.mubr.bf16.vlgmr.msra.gmra.mrb[20].mxu0 %v6066_v11  ;;  %980 = vmatmul.mubr.bf16.vlgmr.msra.gmra.mrb[20].mxu1 %v6066_v11 }
 0x3aa   :  { %1055 = vmatpush1.bf16.msra.mxu0 %v4851_v54  ;;  %1096 = vmatpush1.bf16.msra.mxu1 %v4853_v56 }
 0x3ab   :  { %1056 = vmatprep.subr.bf16.mxu0 %v4855_v58  ;;  %1097 = vmatprep.subr.bf16.mxu1 %v4857_v59 }
 0x3ac   :  { %1086 = vmatprep.mubr.bf16.mxu0 %v6066_v11  ;;  %1127 = vmatprep.mubr.bf16.mxu1 %v6066_v11 }
 0x3ae   :  { %1057 = vmatpush1.bf16.msra.mxu0 %v4863_v39  ;;  %1098 = vmatpush1.bf16.msra.mxu1 %v4865_v41 }
 0x3af   :  { %1058 = vmatprep.subr.bf16.mxu0 %v4869_v60  ;;  %1099 = vmatprep.subr.bf16.mxu1 %v4871_v61 }
 0x3b2   :  { %1059 = vmatpush1.bf16.msra.mxu0 %v4879_v63  ;;  %1100 = vmatpush1.bf16.msra.mxu1 %v4881_v0 }
 0x3b3   :  { %1060 = vmatprep.subr.bf16.mxu0 %v4883_v1  ;;  %1101 = vmatprep.subr.bf16.mxu1 %v4885_v2 }
 0x3b6   :  { %1061 = vmatpush1.bf16.msra.mxu0 %v4891_v43  ;;  %1102 = vmatpush1.bf16.msra.mxu1 %v4893_v47 }
 0x3b7   :  { %1062 = vmatprep.subr.bf16.mxu0 %v4897_v3  ;;  %1103 = vmatprep.subr.bf16.mxu1 %v4899_v4 }
 0x3ba   :  { %1063 = vmatpush1.bf16.msra.mxu0 %v4907_v7  ;;  %1104 = vmatpush1.bf16.msra.mxu1 %v4909_v8 }
 0x3bb   :  { %1064 = vmatprep.subr.bf16.mxu0 %v4911_v9  ;;  %1105 = vmatprep.subr.bf16.mxu1 %v4913_v12 }
 0x3be   :  { %1065 = vmatpush1.bf16.msra.mxu0 %v4919_v50  ;;  %1106 = vmatpush1.bf16.msra.mxu1 %v4921_v51 }
 0x3bf   :  { %1066 = vmatprep.subr.bf16.mxu0 %v4925_v13  ;;  %1107 = vmatprep.subr.bf16.mxu1 %v4927_v14 }
 0x3c2   :  { %1067 = vmatpush1.bf16.msra.mxu0 %v4935_v16  ;;  %1108 = vmatpush1.bf16.msra.mxu1 %v4937_v17 }
 0x3c3   :  { %1068 = vmatprep.subr.bf16.mxu0 %v4939_v18  ;;  %1109 = vmatprep.subr.bf16.mxu1 %v4941_v19 }
 0x3c6   :  { %1069 = vmatpush1.bf16.msra.mxu0 %v4947_v53  ;;  %1110 = vmatpush1.bf16.msra.mxu1 %v4949_v55 }
 0x3c7   :  { %1203 = vmatprep.subr.bf16.mxu0 %v4843_v48  ;;  %1244 = vmatprep.subr.bf16.mxu1 %v4845_v49 }
 0x45c   :  { %v5004_v26 = vpop.f32.mrb[4].mxu0  ;;  %v5006_v27 = vpop.f32.mrb[4].mxu1 }
 0x45d   :  { %v728_v30 = vpop.f32.mrb[5].mxu0  ;;  %v801_v31 = vpop.f32.mrb[5].mxu1 }
 0x45e   :  { %v730_v33 = vpop.f32.mrb[6].mxu0  ;;  %v803_v34 = vpop.f32.mrb[6].mxu1 }
 0x45f   :  { %v5016_v35 = vadd.f32 %v730_v33, %v651_v29  ;;  %v732_v36 = vpop.f32.mrb[7].mxu0  ;;  %v5019_v37 = vadd.f32 %v803_v34, %v5002_v25  ;;  %v805_v38 = vpop.f32.mrb[7].mxu1 }
 0x460   :  { %v5021_v40 = vadd.f32 %v732_v36, %v655_v32  ;;  %v5024_v42 = vadd.f32 %v805_v38, %v5010_v28 }
 0x464   :  { %v736_v44 = vpop.f32.mrb[8].mxu0  ;;  %v809_v45 = vpop.f32.mrb[8].mxu1 }
 0x465   :  { %v5026_v46 = vadd.f32 %v736_v44, %v651_v29  ;;  %v738_v52 = vpop.f32.mrb[9].mxu0  ;;  %v5029_v62 = vadd.f32 %v809_v45, %v5002_v25  ;;  %v811_v6 = vpop.f32.mrb[9].mxu1 }
 0x466   :  { %v5031_v15 = vadd.f32 %v738_v52, %v655_v32  ;;  %v740_v23 = vpop.f32.mrb[10].mxu0  ;;  %v5034_v33 = vadd.f32 %v811_v6, %v5010_v28  ;;  %v813_v34 = vpop.f32.mrb[10].mxu1 }
 0x467   :  { %v5036_v36 = vadd.f32 %v740_v23, %v651_v29  ;;  %v742_v38 = vpop.f32.mrb[11].mxu0  ;;  %v5039_v57 = vadd.f32 %v813_v34, %v5002_v25  ;;  %v815_v44 = vpop.f32.mrb[11].mxu1 }
 0x468   :  { %6082 = vst [vmem:[#allocation48_spill] sm:$0xff] %v5034_v33  ;;  %v5041_v24 = vadd.f32 %v742_v38, %v655_v32  ;;  %v5044_v45 = vadd.f32 %v815_v44, %v5010_v28 }
 0x469   :  { %6083 = vst [vmem:[#allocation49_spill] sm:$0xff] %v5036_v36  ;;  %6084 = vst [vmem:[#allocation50_spill] sm:$0xff] %v5039_v57 }
 0x46a   :  { %6085 = vst [vmem:[#allocation51_spill] sm:$0xff] %v5041_v24  ;;  %6086 = vst [vmem:[#allocation52_spill] sm:$0xff] %v5044_v45 }
 0x46c   :  { %v746_v22 = vpop.f32.mrb[12].mxu0  ;;  %v819_v52 = vpop.f32.mrb[12].mxu1 }
 0x46d   :  { %v5046_v21 = vadd.f32 %v746_v22, %v651_v29  ;;  %v748_v20 = vpop.f32.mrb[13].mxu0  ;;  %v5049_v6 = vadd.f32 %v819_v52, %v5002_v25  ;;  %v821_v23 = vpop.f32.mrb[13].mxu1 }
 0x46e   :  { %v5051_v11 = vadd.f32 %v748_v20, %v655_v32  ;;  %v750_v10 = vpop.f32.mrb[14].mxu0  ;;  %v5054_v34 = vadd.f32 %v821_v23, %v5010_v28  ;;  %v823_v38 = vpop.f32.mrb[14].mxu1 }
 0x46f   :  { %6087 = vst [vmem:[#allocation53_spill] sm:$0xff] %v5046_v21  ;;  %6088 = vst [vmem:[#allocation54_spill] sm:$0xff] %v5049_v6  ;;  %v5056_v5 = vadd.f32 %v750_v10, %v651_v29  ;;  %v752_v44 = vpop.f32.mrb[15].mxu0  ;;  %v5059_v45 = vadd.f32 %v823_v38, %v5002_v25  ;;  %v825_v22 = vpop.f32.mrb[15].mxu1 }
 0x470   :  { %6089 = vst [vmem:[#allocation55_spill] sm:$0xff] %v5051_v11  ;;  %6090 = vst [vmem:[#allocation56_spill] sm:$0xff] %v5054_v34  ;;  %v5061_v21 = vadd.f32 %v752_v44, %v655_v32  ;;  %v5064_v52 = vadd.f32 %v825_v22, %v5010_v28 }
 0x471   :  { %6091 = vst [vmem:[#allocation57_spill] sm:$0xff] %v5056_v5  ;;  %6092 = vst [vmem:[#allocation58_spill] sm:$0xff] %v5059_v45 }
 0x472   :  { %6093 = vst [vmem:[#allocation59_spill] sm:$0xff] %v5061_v21  ;;  %6094 = vst [vmem:[#allocation60_spill] sm:$0xff] %v5064_v52 }
 0x474   :  { %v756_v6 = vpop.f32.mrb[16].mxu0  ;;  %v829_v20 = vpop.f32.mrb[16].mxu1 }
 0x475   :  { %v5066_v11 = vadd.f32 %v756_v6, %v651_v29  ;;  %v758_v24 = vpop.f32.mrb[17].mxu0  ;;  %v5069_v23 = vadd.f32 %v829_v20, %v5002_v25  ;;  %v831_v10 = vpop.f32.mrb[17].mxu1 }
 0x476   :  { %v5071_v5 = vadd.f32 %v758_v24, %v655_v32  ;;  %v760_v34 = vpop.f32.mrb[18].mxu0  ;;  %v5074_v38 = vadd.f32 %v831_v10, %v5010_v28  ;;  %v833_v44 = vpop.f32.mrb[18].mxu1  ;;  %v727_v24 = vadd.f32 %v5004_v26, %v651_v29  ;;  %v729_v10 = vadd.f32 %v728_v30, %v655_v32 }
 0x477   :  { %6095 = vst [vmem:[#allocation61_spill] sm:$0xff] %v5066_v11  ;;  %6096 = vst [vmem:[#allocation62_spill] sm:$0xff] %v5069_v23  ;;  %v5076_v21 = vadd.f32 %v760_v34, %v651_v29  ;;  %v762_v22 = vpop.f32.mrb[19].mxu0  ;;  %v5079_v52 = vadd.f32 %v833_v44, %v5002_v25  ;;  %v835_v6 = vpop.f32.mrb[19].mxu1 }
 0x478   :  { %6097 = vst [vmem:[#allocation63_spill] sm:$0xff] %v5071_v5  ;;  %6098 = vst [vmem:[#allocation64_spill] sm:$0xff] %v5074_v38  ;;  %v5081_v11 = vadd.f32 %v762_v22, %v655_v32  ;;  %v5084_v20 = vadd.f32 %v835_v6, %v5010_v28  ;;  %v800_v5 = vadd.f32 %v5006_v27, %v5002_v25 }
 0x479   :  { %6099 = vst [vmem:[#allocation65_spill] sm:$0xff] %v5076_v21  ;;  %6100 = vst [vmem:[#allocation66_spill] sm:$0xff] %v5079_v52  ;;  %v802_v38 = vadd.f32 %v801_v31, %v5010_v28 }
 0x47a   :  { %6101 = vst [vmem:[#allocation67_spill] sm:$0xff] %v5081_v11  ;;  %6102 = vst [vmem:[#allocation68_spill] sm:$0xff] %v5084_v20 }
 0x47c   :  { %v940_v34 = vpop.f32.mrb[20].mxu0  ;;  %v981_v21 = vpop.f32.mrb[20].mxu1 }
 0x47d   :  { %v988_v23 = vadd.f32 %v940_v34, %v727_v24  ;;  %v990_v45 = vadd.f32 %v981_v21, %v800_v5  ;;  %v942_v44 = vpop.f32.mrb[21].mxu0  ;;  %v983_v52 = vpop.f32.mrb[21].mxu1 }
 0x47e   :  { %v989_v57 = vadd.f32 %v942_v44, %v729_v10  ;;  %v991_v22 = vadd.f32 %v983_v52, %v802_v38  ;;  %v944_v11 = vpop.f32.mrb[22].mxu0  ;;  %v985_v36 = vpop.f32.mrb[22].mxu1 }
 0x47f   :  { %v3711_v6 = vmul.f32 -1.442695, %v988_v23  ;;  %v945_v20 = vpop.f32.mrb[23].mxu0  ;;  %v986_v33 = vpop.f32.mrb[23].mxu1  ;;  %v3713_v25 = vmul.f32 -1.442695, %v990_v45 }
 0x480   :  { %v3712_v26 = vmul.f32 -1.442695, %v989_v57  ;;  %v6103_v20 = vmov 0  }
 0x481   :  { %4055 = vpow2.f32 %v3711_v6 }
 0x482   :  { %4057 = vpow2.f32 %v3712_v26 }
 0x483   :  { %4059 = vtanh.f32 %v991_v22 }
 0x484   :  { %4061 = vpow2.f32 %v3713_v25 }
 0x48b   :  { %v4056_v27 = vpop.eup %4055 }
 0x48c   :  { %v1001_v29 = vadd.f32 1.0, %v4056_v27  ;;  %v4058_v28 = vpop.eup %4057 }
 0x48d   :  { %v1002_v5 = vadd.f32 1.0, %v4058_v28  ;;  %v4060_v21 = vpop.eup %4059 }
 0x48e   :  { %4063 = vrcp.f32 %v1001_v29  ;;  %v4062_v30 = vpop.eup %4061 }
 0x48f   :  { %4065 = vrcp.f32 %v1002_v5  ;;  %v1003_v36 = vadd.f32 1.0, %v4062_v30 }
 0x491   :  { %4067 = vrcp.f32 %v1003_v36 }
 0x498   :  { %v4064_v31 = vpop.eup %4063 }
 0x499   :  { %v1012_v11 = vmul.f32 %v4064_v31, %v4060_v21  ;;  %v4066_v32 = vpop.eup %4065 }
 0x49a   :  { %v1011_v52 = vmul.f32 0.0, %v4066_v32 }
 0x49b   :  { %v4068_v57 = vpop.eup %4067 }
 0x49c   :  { %v5090_v33 = vadd.f32 %v1012_v11, %v1011_v52 }
 0x49e   :  { %4069 = vtanh.f32 %v5090_v33 }
 0x4a8   :  { %v4070_v45 = vpop.eup %4069 }
 0x4a9   :  { %v5093_v23 = vmul.f32 %v4070_v45, %v4068_v57 }
 0x4ab   :  { %v1021_v38 = vpack.c.bf16 %v5093_v23, %v5093_v23 }
 0x4ad   :  { %1087 = vmatmul.mubr.bf16.vlgmr.msra.gmra.mrb[24].mxu0 %v1021_v38  ;;  %1128 = vmatmul.mubr.bf16.vlgmr.msra.gmra.mrb[24].mxu1 %v1021_v38 }
 0x4ae   :  { %1204 = vmatpush1.bf16.msra.mxu0 %v4851_v54  ;;  %1245 = vmatpush1.bf16.msra.mxu1 %v4853_v56 }
 0x4af   :  { %1205 = vmatprep.subr.bf16.mxu0 %v4855_v58  ;;  %1246 = vmatprep.subr.bf16.mxu1 %v4857_v59 }
 0x4b0   :  { %1235 = vmatprep.mubr.bf16.mxu0 %v6103_v20  ;;  %1276 = vmatprep.mubr.bf16.mxu1 %v6103_v20 }
 0x4b2   :  { %1206 = vmatpush1.bf16.msra.mxu0 %v4863_v39  ;;  %1247 = vmatpush1.bf16.msra.mxu1 %v4865_v41 }
 0x4b3   :  { %1207 = vmatprep.subr.bf16.mxu0 %v4869_v60  ;;  %1248 = vmatprep.subr.bf16.mxu1 %v4871_v61 }
 0x4b6   :  { %1208 = vmatpush1.bf16.msra.mxu0 %v4879_v63  ;;  %1249 = vmatpush1.bf16.msra.mxu1 %v4881_v0 }
 0x4b7   :  { %1209 = vmatprep.subr.bf16.mxu0 %v4883_v1  ;;  %1250 = vmatprep.subr.bf16.mxu1 %v4885_v2 }
 0x4ba   :  { %1210 = vmatpush1.bf16.msra.mxu0 %v4891_v43  ;;  %1251 = vmatpush1.bf16.msra.mxu1 %v4893_v47 }
 0x4bb   :  { %1211 = vmatprep.subr.bf16.mxu0 %v4897_v3  ;;  %1252 = vmatprep.subr.bf16.mxu1 %v4899_v4 }
 0x4be   :  { %1212 = vmatpush1.bf16.msra.mxu0 %v4907_v7  ;;  %1253 = vmatpush1.bf16.msra.mxu1 %v4909_v8 }
 0x4bf   :  { %1213 = vmatprep.subr.bf16.mxu0 %v4911_v9  ;;  %1254 = vmatprep.subr.bf16.mxu1 %v4913_v12 }
 0x4c2   :  { %1214 = vmatpush1.bf16.msra.mxu0 %v4919_v50  ;;  %1255 = vmatpush1.bf16.msra.mxu1 %v4921_v51 }
 0x4c3   :  { %1215 = vmatprep.subr.bf16.mxu0 %v4925_v13  ;;  %1256 = vmatprep.subr.bf16.mxu1 %v4927_v14 }
 0x4c6   :  { %1216 = vmatpush1.bf16.msra.mxu0 %v4935_v16  ;;  %1257 = vmatpush1.bf16.msra.mxu1 %v4937_v17 }
 0x4c7   :  { %1217 = vmatprep.subr.bf16.mxu0 %v4939_v18  ;;  %1258 = vmatprep.subr.bf16.mxu1 %v4941_v19 }
 0x4ca   :  { %1218 = vmatpush1.bf16.msra.mxu0 %v4947_v53  ;;  %1259 = vmatpush1.bf16.msra.mxu1 %v4949_v55 }
 0x4cb   :  { %1352 = vmatprep.subr.bf16.mxu0 %v4843_v48  ;;  %1393 = vmatprep.subr.bf16.mxu1 %v4845_v49 }
 0x580   :  { %v1088_v24 = vpop.f32.mrb[24].mxu0  ;;  %v1129_v10 = vpop.f32.mrb[24].mxu1 }
 0x581   :  { %v1136_v34 = vadd.f32 %v1088_v24, %v5016_v35  ;;  %v1138_v44 = vadd.f32 %v1129_v10, %v5019_v37  ;;  %v1090_v22 = vpop.f32.mrb[25].mxu0  ;;  %v1131_v6 = vpop.f32.mrb[25].mxu1 }
 0x582   :  { %v1137_v26 = vadd.f32 %v1090_v22, %v5021_v40  ;;  %v1139_v25 = vadd.f32 %v1131_v6, %v5024_v42  ;;  %v1092_v27 = vpop.f32.mrb[26].mxu0  ;;  %v1133_v29 = vpop.f32.mrb[26].mxu1 }
 0x583   :  { %v3714_v28 = vmul.f32 -1.442695, %v1136_v34  ;;  %v1093_v5 = vpop.f32.mrb[27].mxu0  ;;  %v1134_v21 = vpop.f32.mrb[27].mxu1  ;;  %v3716_v31 = vmul.f32 -1.442695, %v1138_v44 }
 0x584   :  { %v3715_v30 = vmul.f32 -1.442695, %v1137_v26  ;;  %v6104_v5 = vld [vmem:[#allocation48_spill] sm:$0xff] }
 0x585   :  { %4071 = vpow2.f32 %v3714_v28 }
 0x586   :  { %4073 = vpow2.f32 %v3715_v30 }
 0x587   :  { %4075 = vtanh.f32 %v1139_v25 }
 0x588   :  { %4077 = vpow2.f32 %v3716_v31 }
 0x58f   :  { %v4072_v11 = vpop.eup %4071 }
 0x590   :  { %v1149_v32 = vadd.f32 1.0, %v4072_v11  ;;  %v4074_v35 = vpop.eup %4073 }
 0x591   :  { %v1150_v37 = vadd.f32 1.0, %v4074_v35  ;;  %v4076_v40 = vpop.eup %4075 }
 0x592   :  { %4079 = vrcp.f32 %v1149_v32  ;;  %v4078_v36 = vpop.eup %4077 }
 0x593   :  { %4081 = vrcp.f32 %v1150_v37  ;;  %v1151_v45 = vadd.f32 1.0, %v4078_v36 }
 0x595   :  { %4083 = vrcp.f32 %v1151_v45 }
 0x59c   :  { %v4080_v42 = vpop.eup %4079 }
 0x59d   :  { %v1160_v52 = vmul.f32 %v4080_v42, %v4076_v40  ;;  %v4082_v57 = vpop.eup %4081 }
 0x59e   :  { %v1159_v38 = vmul.f32 %v4082_v57, %v5090_v33 }
 0x59f   :  { %v4084_v10 = vpop.eup %4083 }
 0x5a0   :  { %v5136_v24 = vadd.f32 %v1160_v52, %v1159_v38 }
 0x5a2   :  { %4085 = vtanh.f32 %v5136_v24 }
 0x5ac   :  { %v4086_v34 = vpop.eup %4085 }
 0x5ad   :  { %v5139_v44 = vmul.f32 %v4086_v34, %v4084_v10 }
 0x5af   :  { %v1170_v22 = vpack.c.bf16 %v5139_v44, %v5139_v44 }
 0x5b1   :  { %1236 = vmatmul.mubr.bf16.vlgmr.msra.gmra.mrb[28].mxu0 %v1170_v22  ;;  %1277 = vmatmul.mubr.bf16.vlgmr.msra.gmra.mrb[28].mxu1 %v1170_v22 }
 0x5b2   :  { %1353 = vmatpush1.bf16.msra.mxu0 %v4851_v54  ;;  %1394 = vmatpush1.bf16.msra.mxu1 %v4853_v56 }
 0x5b3   :  { %1354 = vmatprep.subr.bf16.mxu0 %v4855_v58  ;;  %1395 = vmatprep.subr.bf16.mxu1 %v4857_v59 }
 0x5b4   :  { %1384 = vmatprep.mubr.bf16.mxu0 %v6103_v20  ;;  %1425 = vmatprep.mubr.bf16.mxu1 %v6103_v20 }
 0x5b6   :  { %1355 = vmatpush1.bf16.msra.mxu0 %v4863_v39  ;;  %1396 = vmatpush1.bf16.msra.mxu1 %v4865_v41 }
 0x5b7   :  { %1356 = vmatprep.subr.bf16.mxu0 %v4869_v60  ;;  %1397 = vmatprep.subr.bf16.mxu1 %v4871_v61 }
 0x5ba   :  { %1357 = vmatpush1.bf16.msra.mxu0 %v4879_v63  ;;  %1398 = vmatpush1.bf16.msra.mxu1 %v4881_v0 }
 0x5bb   :  { %1358 = vmatprep.subr.bf16.mxu0 %v4883_v1  ;;  %1399 = vmatprep.subr.bf16.mxu1 %v4885_v2 }
 0x5be   :  { %1359 = vmatpush1.bf16.msra.mxu0 %v4891_v43  ;;  %1400 = vmatpush1.bf16.msra.mxu1 %v4893_v47 }
 0x5bf   :  { %1360 = vmatprep.subr.bf16.mxu0 %v4897_v3  ;;  %1401 = vmatprep.subr.bf16.mxu1 %v4899_v4 }
 0x5c2   :  { %1361 = vmatpush1.bf16.msra.mxu0 %v4907_v7  ;;  %1402 = vmatpush1.bf16.msra.mxu1 %v4909_v8 }
 0x5c3   :  { %1362 = vmatprep.subr.bf16.mxu0 %v4911_v9  ;;  %1403 = vmatprep.subr.bf16.mxu1 %v4913_v12 }
 0x5c6   :  { %1363 = vmatpush1.bf16.msra.mxu0 %v4919_v50  ;;  %1404 = vmatpush1.bf16.msra.mxu1 %v4921_v51 }
 0x5c7   :  { %1364 = vmatprep.subr.bf16.mxu0 %v4925_v13  ;;  %1405 = vmatprep.subr.bf16.mxu1 %v4927_v14 }
 0x5ca   :  { %1365 = vmatpush1.bf16.msra.mxu0 %v4935_v16  ;;  %1406 = vmatpush1.bf16.msra.mxu1 %v4937_v17 }
 0x5cb   :  { %1366 = vmatprep.subr.bf16.mxu0 %v4939_v18  ;;  %1407 = vmatprep.subr.bf16.mxu1 %v4941_v19 }
 0x5ce   :  { %1367 = vmatpush1.bf16.msra.mxu0 %v4947_v53  ;;  %1408 = vmatpush1.bf16.msra.mxu1 %v4949_v55 }
 0x5cf   :  { %1501 = vmatprep.subr.bf16.mxu0 %v4843_v48  ;;  %1542 = vmatprep.subr.bf16.mxu1 %v4845_v49 }
 0x684   :  { %v1237_v33 = vpop.f32.mrb[28].mxu0  ;;  %v1278_v6 = vpop.f32.mrb[28].mxu1 }
 0x685   :  { %v1285_v26 = vadd.f32 %v1237_v33, %v5026_v46  ;;  %v1287_v25 = vadd.f32 %v1278_v6, %v5029_v62  ;;  %v1239_v27 = vpop.f32.mrb[29].mxu0  ;;  %v1280_v29 = vpop.f32.mrb[29].mxu1 }
 0x686   :  { %v1286_v28 = vadd.f32 %v1239_v27, %v5031_v15  ;;  %v1288_v21 = vadd.f32 %v1280_v29, %v6104_v5  ;;  %v1241_v30 = vpop.f32.mrb[30].mxu0  ;;  %v1282_v31 = vpop.f32.mrb[30].mxu1  ;;  %v5237_v5 = vld [vmem:[#allocation3 + $0x18] sm:$0xff] }
 0x687   :  { %v3717_v11 = vmul.f32 -1.442695, %v1285_v26  ;;  %v1242_v32 = vpop.f32.mrb[31].mxu0  ;;  %v1283_v35 = vpop.f32.mrb[31].mxu1  ;;  %v3719_v49 = vmul.f32 -1.442695, %v1287_v25 }
 0x688   :  { %v3718_v48 = vmul.f32 -1.442695, %v1286_v28  ;;  %v5235_v28 = vld [vmem:[#allocation3 + $0x8] sm:$0xff]  ;;  %v5243_v30 = vld [vmem:[#allocation3 + $0x10] sm:$0xff]  ;;  %v5253_v32 = vld [vmem:[#allocation3 + $0x20] sm:$0xff] }
 0x689   :  { %4087 = vpow2.f32 %v3717_v11  ;;  %v5247_v31 = vld [vmem:[#allocation3 + $0x28] sm:$0xff]  ;;  %v5249_v11 = vld [vmem:[#allocation3 + $0x38] sm:$0xff]  ;;  %v5255_v35 = vld [vmem:[#allocation3 + $0x30] sm:$0xff] }
 0x68a   :  { %4089 = vpow2.f32 %v3718_v48  ;;  %v5259_v48 = vld [vmem:[#allocation3 + $0x48] sm:$0xff] }
 0x68b   :  { %4091 = vtanh.f32 %v1288_v21  ;;  %v5241_v21 = vld [vmem:[#allocation3] sm:$0xff] }
 0x68c   :  { %4093 = vpow2.f32 %v3719_v49  ;;  %v5261_v49 = vld [vmem:[#allocation3 + $0x58] sm:$0xff] }
 0x693   :  { %v4088_v37 = vpop.eup %4087 }
 0x694   :  { %v1298_v40 = vadd.f32 1.0, %v4088_v37  ;;  %v4090_v46 = vpop.eup %4089  ;;  %v5265_v37 = vld [vmem:[#allocation3 + $0x40] sm:$0xff] }
 0x695   :  { %v1299_v62 = vadd.f32 1.0, %v4090_v46  ;;  %v4092_v15 = vpop.eup %4091  ;;  %v5271_v46 = vld [vmem:[#allocation3 + $0x68] sm:$0xff] }
 0x696   :  { %4095 = vrcp.f32 %v1298_v40  ;;  %v4094_v36 = vpop.eup %4093  ;;  %v5267_v40 = vld [vmem:[#allocation3 + $0x50] sm:$0xff] }
 0x697   :  { %4097 = vrcp.f32 %v1299_v62  ;;  %v1300_v45 = vadd.f32 1.0, %v4094_v36  ;;  %v5273_v62 = vld [vmem:[#allocation3 + $0x78] sm:$0xff]  ;;  %v5279_v36 = vld [vmem:[#allocation3 + $0x70] sm:$0xff] }
 0x699   :  { %4099 = vrcp.f32 %v1300_v45  ;;  %v5291_v45 = vld [vmem:[#allocation3 + $0x90] sm:$0xff] }
 0x6a0   :  { %v4096_v42 = vpop.eup %4095 }
 0x6a1   :  { %v1309_v52 = vmul.f32 %v4096_v42, %v4092_v15  ;;  %v4098_v57 = vpop.eup %4097  ;;  %v5277_v15 = vld [vmem:[#allocation3 + $0x60] sm:$0xff]  ;;  %v5283_v42 = vld [vmem:[#allocation3 + $0x88] sm:$0xff] }
 0x6a2   :  { %v1308_v38 = vmul.f32 %v4098_v57, %v5136_v24  ;;  %v5289_v57 = vld [vmem:[#allocation3 + $0x80] sm:$0xff] }
 0x6a3   :  { %v4100_v34 = vpop.eup %4099 }
 0x6a4   :  { %v5182_v10 = vadd.f32 %v1309_v52, %v1308_v38  ;;  %v5285_v52 = vld [vmem:[#allocation3 + $0x98] sm:$0xff]  ;;  %v5295_v38 = vld [vmem:[#allocation3 + $0xa8] sm:$0xff] }
 0x6a6   :  { %4101 = vtanh.f32 %v5182_v10 }
 0x6b0   :  { %v4102_v22 = vpop.eup %4101 }
 0x6b1   :  { %v5185_v33 = vmul.f32 %v4102_v22, %v4100_v34  ;;  %v5301_v34 = vld [vmem:[#allocation3 + $0xa0] sm:$0xff]  ;;  %v5303_v22 = vld [vmem:[#allocation3 + $0xb0] sm:$0xff] }
 0x6b3   :  { %v1319_v6 = vpack.c.bf16 %v5185_v33, %v5185_v33 }
 0x6b5   :  { %1385 = vmatmul.mubr.bf16.vlgmr.msra.gmra.mrb[32].mxu0 %v1319_v6  ;;  %1426 = vmatmul.mubr.bf16.vlgmr.msra.gmra.mrb[32].mxu1 %v1319_v6  ;;  %v5305_v6 = vld [vmem:[#allocation3 + $0xc8] sm:$0xff] }
 0x6b6   :  { %1502 = vmatpush1.bf16.msra.mxu0 %v4851_v54  ;;  %1543 = vmatpush1.bf16.msra.mxu1 %v4853_v56 }
 0x6b7   :  { %1503 = vmatprep.subr.bf16.mxu0 %v4855_v58  ;;  %1544 = vmatprep.subr.bf16.mxu1 %v4857_v59  ;;  %v6105_v58 = vld [vmem:[#allocation49_spill] sm:$0xff] }
 0x6b8   :  { %1533 = vmatprep.mubr.bf16.mxu0 %v6103_v20  ;;  %1574 = vmatprep.mubr.bf16.mxu1 %v6103_v20 }
 0x6ba   :  { %1504 = vmatpush1.bf16.msra.mxu0 %v4863_v39  ;;  %1545 = vmatpush1.bf16.msra.mxu1 %v4865_v41  ;;  %v6106_v39 = vld [vmem:[#allocation50_spill] sm:$0xff] }
 0x6bb   :  { %1505 = vmatprep.subr.bf16.mxu0 %v4869_v60  ;;  %1546 = vmatprep.subr.bf16.mxu1 %v4871_v61 }
 0x6be   :  { %1506 = vmatpush1.bf16.msra.mxu0 %v4879_v63  ;;  %1547 = vmatpush1.bf16.msra.mxu1 %v4881_v0  ;;  %v6107_v63 = vld [vmem:[#allocation51_spill] sm:$0xff] }
 0x6bf   :  { %1507 = vmatprep.subr.bf16.mxu0 %v4883_v1  ;;  %1548 = vmatprep.subr.bf16.mxu1 %v4885_v2  ;;  %v6108_v1 = vld [vmem:[#allocation52_spill] sm:$0xff] }
 0x6c2   :  { %1508 = vmatpush1.bf16.msra.mxu0 %v4891_v43  ;;  %1549 = vmatpush1.bf16.msra.mxu1 %v4893_v47 }
 0x6c3   :  { %1509 = vmatprep.subr.bf16.mxu0 %v4897_v3  ;;  %1550 = vmatprep.subr.bf16.mxu1 %v4899_v4 }
 0x6c6   :  { %1510 = vmatpush1.bf16.msra.mxu0 %v4907_v7  ;;  %1551 = vmatpush1.bf16.msra.mxu1 %v4909_v8 }
 0x6c7   :  { %1511 = vmatprep.subr.bf16.mxu0 %v4911_v9  ;;  %1552 = vmatprep.subr.bf16.mxu1 %v4913_v12 }
 0x6ca   :  { %1512 = vmatpush1.bf16.msra.mxu0 %v4919_v50  ;;  %1553 = vmatpush1.bf16.msra.mxu1 %v4921_v51 }
 0x6cb   :  { %1513 = vmatprep.subr.bf16.mxu0 %v4925_v13  ;;  %1554 = vmatprep.subr.bf16.mxu1 %v4927_v14 }
 0x6ce   :  { %1514 = vmatpush1.bf16.msra.mxu0 %v4935_v16  ;;  %1555 = vmatpush1.bf16.msra.mxu1 %v4937_v17 }
 0x6cf   :  { %1515 = vmatprep.subr.bf16.mxu0 %v4939_v18  ;;  %1556 = vmatprep.subr.bf16.mxu1 %v4941_v19 }
 0x6d2   :  { %1516 = vmatpush1.bf16.msra.mxu0 %v4947_v53  ;;  %1557 = vmatpush1.bf16.msra.mxu1 %v4949_v55 }
 0x6d3   :  { %1650 = vmatprep.subr.bf16.mxu0 %v5235_v28  ;;  %1691 = vmatprep.subr.bf16.mxu1 %v5237_v5 }
 0x788   :  { %v1386_v54 = vpop.f32.mrb[32].mxu0  ;;  %v1427_v56 = vpop.f32.mrb[32].mxu1 }
 0x789   :  { %v1434_v59 = vadd.f32 %v1386_v54, %v6105_v58  ;;  %v1436_v41 = vadd.f32 %v1427_v56, %v6106_v39  ;;  %v1388_v60 = vpop.f32.mrb[33].mxu0  ;;  %v1429_v61 = vpop.f32.mrb[33].mxu1  ;;  %v5307_v54 = vld [vmem:[#allocation3 + $0xd8] sm:$0xff]  ;;  %v5313_v56 = vld [vmem:[#allocation3 + $0xc0] sm:$0xff]  ;;  %v5315_v58 = vld [vmem:[#allocation3 + $0xd0] sm:$0xff] }
 0x78a   :  { %v1435_v0 = vadd.f32 %v1388_v60, %v6107_v63  ;;  %v1437_v2 = vadd.f32 %v1429_v61, %v6108_v1  ;;  %v1390_v43 = vpop.f32.mrb[34].mxu0  ;;  %v1431_v47 = vpop.f32.mrb[34].mxu1  ;;  %v5319_v39 = vld [vmem:[#allocation3 + $0xf8] sm:$0xff]  ;;  %v5327_v60 = vld [vmem:[#allocation3 + $0xf0] sm:$0xff] }
 0x78b   :  { %v3720_v3 = vmul.f32 -1.442695, %v1434_v59  ;;  %v1391_v4 = vpop.f32.mrb[35].mxu0  ;;  %v1432_v7 = vpop.f32.mrb[35].mxu1  ;;  %v3722_v9 = vmul.f32 -1.442695, %v1436_v41 }
 0x78c   :  { %v3721_v8 = vmul.f32 -1.442695, %v1435_v0  ;;  %v5317_v59 = vld [vmem:[#allocation3 + $0xe8] sm:$0xff]  ;;  %v5325_v41 = vld [vmem:[#allocation3 + $0xe0] sm:$0xff]  ;;  %v6111_v4 = vld [vmem:[#allocation55_spill] sm:$0xff] }
 0x78d   :  { %4103 = vpow2.f32 %v3720_v3  ;;  %v6109_v0 = vld [vmem:[#allocation53_spill] sm:$0xff] }
 0x78e   :  { %4105 = vpow2.f32 %v3721_v8  ;;  %v6112_v8 = vld [vmem:[#allocation56_spill] sm:$0xff] }
 0x78f   :  { %4107 = vtanh.f32 %v1437_v2  ;;  %v6110_v2 = vld [vmem:[#allocation54_spill] sm:$0xff] }
 0x790   :  { %4109 = vpow2.f32 %v3722_v9 }
 0x797   :  { %v4104_v12 = vpop.eup %4103 }
 0x798   :  { %v1447_v50 = vadd.f32 1.0, %v4104_v12  ;;  %v4106_v51 = vpop.eup %4105 }
 0x799   :  { %v1448_v13 = vadd.f32 1.0, %v4106_v51  ;;  %v4108_v14 = vpop.eup %4107 }
 0x79a   :  { %4111 = vrcp.f32 %v1447_v50  ;;  %v4110_v16 = vpop.eup %4109 }
 0x79b   :  { %4113 = vrcp.f32 %v1448_v13  ;;  %v1449_v53 = vadd.f32 1.0, %v4110_v16 }
 0x79d   :  { %4115 = vrcp.f32 %v1449_v53 }
 0x7a4   :  { %v4112_v17 = vpop.eup %4111 }
 0x7a5   :  { %v1458_v18 = vmul.f32 %v4112_v17, %v4108_v14  ;;  %v4114_v19 = vpop.eup %4113 }
 0x7a6   :  { %v1457_v55 = vmul.f32 %v4114_v19, %v5182_v10  ;;  %v5297_v10 = vld [vmem:[#allocation3 + $0xb8] sm:$0xff] }
 0x7a7   :  { %v4116_v26 = vpop.eup %4115 }
 0x7a8   :  { %v5226_v24 = vadd.f32 %v1458_v18, %v1457_v55 }
 0x7aa   :  { %4117 = vtanh.f32 %v5226_v24 }
 0x7b4   :  { %v4118_v25 = vpop.eup %4117 }
 0x7b5   :  { %v5229_v27 = vmul.f32 %v4118_v25, %v4116_v26 }
 0x7b7   :  { %v1468_v29 = vpack.c.bf16 %v5229_v27, %v5229_v27 }
 0x7b9   :  { %1534 = vmatmul.mubr.bf16.vlgmr.msra.gmra.mrb[36].mxu0 %v1468_v29  ;;  %1575 = vmatmul.mubr.bf16.vlgmr.msra.gmra.mrb[36].mxu1 %v1468_v29 }
 0x7ba   :  { %1682 = vmatprep.mubr.bf16.mxu0 %v6103_v20  ;;  %1723 = vmatprep.mubr.bf16.mxu1 %v6103_v20 }
 0x7bb   :  { %1651 = vmatpush1.bf16.msra.mxu0 %v5241_v21  ;;  %1692 = vmatpush1.bf16.msra.mxu1 %v5243_v30 }
 0x7bc   :  { %1652 = vmatprep.subr.bf16.mxu0 %v5247_v31  ;;  %1693 = vmatprep.subr.bf16.mxu1 %v5249_v11 }
 0x7bf   :  { %1653 = vmatpush1.bf16.msra.mxu0 %v5253_v32  ;;  %1694 = vmatpush1.bf16.msra.mxu1 %v5255_v35 }
 0x7c0   :  { %1654 = vmatprep.subr.bf16.mxu0 %v5259_v48  ;;  %1695 = vmatprep.subr.bf16.mxu1 %v5261_v49 }
 0x7c3   :  { %1655 = vmatpush1.bf16.msra.mxu0 %v5265_v37  ;;  %1696 = vmatpush1.bf16.msra.mxu1 %v5267_v40 }
 0x7c4   :  { %1656 = vmatprep.subr.bf16.mxu0 %v5271_v46  ;;  %1697 = vmatprep.subr.bf16.mxu1 %v5273_v62 }
 0x7c7   :  { %1657 = vmatpush1.bf16.msra.mxu0 %v5277_v15  ;;  %1698 = vmatpush1.bf16.msra.mxu1 %v5279_v36 }
 0x7c8   :  { %1658 = vmatprep.subr.bf16.mxu0 %v5283_v42  ;;  %1699 = vmatprep.subr.bf16.mxu1 %v5285_v52 }
 0x7cb   :  { %1659 = vmatpush1.bf16.msra.mxu0 %v5289_v57  ;;  %1700 = vmatpush1.bf16.msra.mxu1 %v5291_v45 }
 0x7cc   :  { %1660 = vmatprep.subr.bf16.mxu0 %v5295_v38  ;;  %1701 = vmatprep.subr.bf16.mxu1 %v5297_v10 }
 0x7cf   :  { %1661 = vmatpush1.bf16.msra.mxu0 %v5301_v34  ;;  %1702 = vmatpush1.bf16.msra.mxu1 %v5303_v22 }
 0x7d0   :  { %1662 = vmatprep.subr.bf16.mxu0 %v5305_v6  ;;  %1703 = vmatprep.subr.bf16.mxu1 %v5307_v54 }
 0x7d3   :  { %1663 = vmatpush1.bf16.msra.mxu0 %v5313_v56  ;;  %1704 = vmatpush1.bf16.msra.mxu1 %v5315_v58 }
 0x7d4   :  { %1664 = vmatprep.subr.bf16.mxu0 %v5317_v59  ;;  %1705 = vmatprep.subr.bf16.mxu1 %v5319_v39 }
 0x7d7   :  { %1665 = vmatpush1.bf16.msra.mxu0 %v5325_v41  ;;  %1706 = vmatpush1.bf16.msra.mxu1 %v5327_v60 }
 0x7d8   :  { %1799 = vmatprep.subr.bf16.mxu0 %v5235_v28  ;;  %1840 = vmatprep.subr.bf16.mxu1 %v5237_v5 }
 0x88c   :  { %v1535_v61 = vpop.f32.mrb[36].mxu0  ;;  %v1576_v63 = vpop.f32.mrb[36].mxu1 }
 0x88d   :  { %v1583_v1 = vadd.f32 %v1535_v61, %v6109_v0  ;;  %v1585_v43 = vadd.f32 %v1576_v63, %v6110_v2  ;;  %v1537_v47 = vpop.f32.mrb[37].mxu0  ;;  %v1578_v3 = vpop.f32.mrb[37].mxu1 }
 0x88e   :  { %v1584_v7 = vadd.f32 %v1537_v47, %v6111_v4  ;;  %v1586_v9 = vadd.f32 %v1578_v3, %v6112_v8  ;;  %v1539_v12 = vpop.f32.mrb[38].mxu0  ;;  %v1580_v50 = vpop.f32.mrb[38].mxu1  ;;  %v6113_v8 = vld [vmem:[#allocation57_spill] sm:$0xff] }
 0x88f   :  { %v3723_v51 = vmul.f32 -1.442695, %v1583_v1  ;;  %v1540_v13 = vpop.f32.mrb[39].mxu0  ;;  %v1581_v14 = vpop.f32.mrb[39].mxu1  ;;  %v3725_v17 = vmul.f32 -1.442695, %v1585_v43 }
 0x890   :  { %v3724_v16 = vmul.f32 -1.442695, %v1584_v7  ;;  %v6114_v12 = vld [vmem:[#allocation58_spill] sm:$0xff]  ;;  %v6115_v14 = vld [vmem:[#allocation59_spill] sm:$0xff] }
 0x891   :  { %4119 = vpow2.f32 %v3723_v51 }
 0x892   :  { %4121 = vpow2.f32 %v3724_v16 }
 0x893   :  { %4123 = vtanh.f32 %v1586_v9 }
 0x894   :  { %4125 = vpow2.f32 %v3725_v17  ;;  %v6116_v17 = vld [vmem:[#allocation60_spill] sm:$0xff] }
 0x89b   :  { %v4120_v18 = vpop.eup %4119 }
 0x89c   :  { %v1596_v19 = vadd.f32 1.0, %v4120_v18  ;;  %v4122_v53 = vpop.eup %4121 }
 0x89d   :  { %v1597_v55 = vadd.f32 1.0, %v4122_v53  ;;  %v4124_v26 = vpop.eup %4123 }
 0x89e   :  { %4127 = vrcp.f32 %v1596_v19  ;;  %v4126_v25 = vpop.eup %4125 }
 0x89f   :  { %4129 = vrcp.f32 %v1597_v55  ;;  %v1598_v0 = vadd.f32 1.0, %v4126_v25 }
 0x8a1   :  { %4131 = vrcp.f32 %v1598_v0 }
 0x8a8   :  { %v4128_v29 = vpop.eup %4127 }
 0x8a9   :  { %v1607_v61 = vmul.f32 %v4128_v29, %v4124_v26  ;;  %v4130_v63 = vpop.eup %4129 }
 0x8aa   :  { %v1606_v1 = vmul.f32 %v4130_v63, %v5226_v24 }
 0x8ab   :  { %v4132_v43 = vpop.eup %4131 }
 0x8ac   :  { %v5338_v2 = vadd.f32 %v1607_v61, %v1606_v1 }
 0x8ae   :  { %4133 = vtanh.f32 %v5338_v2 }
 0x8b8   :  { %v4134_v47 = vpop.eup %4133 }
 0x8b9   :  { %v5341_v3 = vmul.f32 %v4134_v47, %v4132_v43 }
 0x8bb   :  { %v1617_v4 = vpack.c.bf16 %v5341_v3, %v5341_v3 }
 0x8bd   :  { %1683 = vmatmul.mubr.bf16.vlgmr.msra.gmra.mrb[40].mxu0 %v1617_v4  ;;  %1724 = vmatmul.mubr.bf16.vlgmr.msra.gmra.mrb[40].mxu1 %v1617_v4 }
 0x8be   :  { %1800 = vmatpush1.bf16.msra.mxu0 %v5241_v21  ;;  %1841 = vmatpush1.bf16.msra.mxu1 %v5243_v30 }
 0x8bf   :  { %1801 = vmatprep.subr.bf16.mxu0 %v5247_v31  ;;  %1842 = vmatprep.subr.bf16.mxu1 %v5249_v11 }
 0x8c0   :  { %1831 = vmatprep.mubr.bf16.mxu0 %v6103_v20  ;;  %1872 = vmatprep.mubr.bf16.mxu1 %v6103_v20 }
 0x8c2   :  { %1802 = vmatpush1.bf16.msra.mxu0 %v5253_v32  ;;  %1843 = vmatpush1.bf16.msra.mxu1 %v5255_v35 }
 0x8c3   :  { %1803 = vmatprep.subr.bf16.mxu0 %v5259_v48  ;;  %1844 = vmatprep.subr.bf16.mxu1 %v5261_v49 }
 0x8c6   :  { %1804 = vmatpush1.bf16.msra.mxu0 %v5265_v37  ;;  %1845 = vmatpush1.bf16.msra.mxu1 %v5267_v40 }
 0x8c7   :  { %1805 = vmatprep.subr.bf16.mxu0 %v5271_v46  ;;  %1846 = vmatprep.subr.bf16.mxu1 %v5273_v62 }
 0x8ca   :  { %1806 = vmatpush1.bf16.msra.mxu0 %v5277_v15  ;;  %1847 = vmatpush1.bf16.msra.mxu1 %v5279_v36 }
 0x8cb   :  { %1807 = vmatprep.subr.bf16.mxu0 %v5283_v42  ;;  %1848 = vmatprep.subr.bf16.mxu1 %v5285_v52 }
 0x8ce   :  { %1808 = vmatpush1.bf16.msra.mxu0 %v5289_v57  ;;  %1849 = vmatpush1.bf16.msra.mxu1 %v5291_v45 }
 0x8cf   :  { %1809 = vmatprep.subr.bf16.mxu0 %v5295_v38  ;;  %1850 = vmatprep.subr.bf16.mxu1 %v5297_v10 }
 0x8d2   :  { %1810 = vmatpush1.bf16.msra.mxu0 %v5301_v34  ;;  %1851 = vmatpush1.bf16.msra.mxu1 %v5303_v22 }
 0x8d3   :  { %1811 = vmatprep.subr.bf16.mxu0 %v5305_v6  ;;  %1852 = vmatprep.subr.bf16.mxu1 %v5307_v54 }
 0x8d6   :  { %1812 = vmatpush1.bf16.msra.mxu0 %v5313_v56  ;;  %1853 = vmatpush1.bf16.msra.mxu1 %v5315_v58 }
 0x8d7   :  { %1813 = vmatprep.subr.bf16.mxu0 %v5317_v59  ;;  %1854 = vmatprep.subr.bf16.mxu1 %v5319_v39 }
 0x8da   :  { %1814 = vmatpush1.bf16.msra.mxu0 %v5325_v41  ;;  %1855 = vmatpush1.bf16.msra.mxu1 %v5327_v60 }
 0x8db   :  { %1948 = vmatprep.subr.bf16.mxu0 %v5235_v28  ;;  %1989 = vmatprep.subr.bf16.mxu1 %v5237_v5 }
 0x990   :  { %v1684_v24 = vpop.f32.mrb[40].mxu0  ;;  %v1725_v7 = vpop.f32.mrb[40].mxu1 }
 0x991   :  { %v1732_v9 = vadd.f32 %v1684_v24, %v6113_v8  ;;  %v1734_v50 = vadd.f32 %v1725_v7, %v6114_v12  ;;  %v1686_v51 = vpop.f32.mrb[41].mxu0  ;;  %v1727_v13 = vpop.f32.mrb[41].mxu1 }
 0x992   :  { %v1733_v16 = vadd.f32 %v1686_v51, %v6115_v14  ;;  %v1735_v18 = vadd.f32 %v1727_v13, %v6116_v17  ;;  %v1688_v19 = vpop.f32.mrb[42].mxu0  ;;  %v1729_v53 = vpop.f32.mrb[42].mxu1 }
 0x993   :  { %v3726_v55 = vmul.f32 -1.442695, %v1732_v9  ;;  %v1689_v26 = vpop.f32.mrb[43].mxu0  ;;  %v1730_v25 = vpop.f32.mrb[43].mxu1  ;;  %v3728_v5 = vmul.f32 -1.442695, %v1734_v50 }
 0x994   :  { %v3727_v28 = vmul.f32 -1.442695, %v1733_v16  ;;  %v6122_v25 = vld [vmem:[#allocation66_spill] sm:$0xff] }
 0x995   :  { %4135 = vpow2.f32 %v3726_v55  ;;  %v6121_v55 = vld [vmem:[#allocation65_spill] sm:$0xff] }
 0x996   :  { %4137 = vpow2.f32 %v3727_v28 }
 0x997   :  { %4139 = vtanh.f32 %v1735_v18 }
 0x998   :  { %4141 = vpow2.f32 %v3728_v5 }
 0x99f   :  { %v4136_v29 = vpop.eup %4135 }
 0x9a0   :  { %v1745_v61 = vadd.f32 1.0, %v4136_v29  ;;  %v4138_v63 = vpop.eup %4137 }
 0x9a1   :  { %v1746_v0 = vadd.f32 1.0, %v4138_v63  ;;  %v4140_v1 = vpop.eup %4139 }
 0x9a2   :  { %4143 = vrcp.f32 %v1745_v61  ;;  %v4142_v43 = vpop.eup %4141  ;;  %v6123_v61 = vld [vmem:[#allocation67_spill] sm:$0xff] }
 0x9a3   :  { %4145 = vrcp.f32 %v1746_v0  ;;  %v1747_v7 = vadd.f32 1.0, %v4142_v43  ;;  %v6124_v0 = vld [vmem:[#allocation68_spill] sm:$0xff] }
 0x9a5   :  { %4147 = vrcp.f32 %v1747_v7 }
 0x9ac   :  { %v4144_v47 = vpop.eup %4143 }
 0x9ad   :  { %v1756_v4 = vmul.f32 %v4144_v47, %v4140_v1  ;;  %v4146_v24 = vpop.eup %4145 }
 0x9ae   :  { %v1755_v8 = vmul.f32 %v4146_v24, %v5338_v2 }
 0x9af   :  { %v4148_v12 = vpop.eup %4147 }
 0x9b0   :  { %v5384_v9 = vadd.f32 %v1756_v4, %v1755_v8 }
 0x9b2   :  { %4149 = vtanh.f32 %v5384_v9 }
 0x9bc   :  { %v4150_v50 = vpop.eup %4149 }
 0x9bd   :  { %v5387_v51 = vmul.f32 %v4150_v50, %v4148_v12 }
 0x9bf   :  { %v1766_v13 = vpack.c.bf16 %v5387_v51, %v5387_v51 }
 0x9c1   :  { %1832 = vmatmul.mubr.bf16.vlgmr.msra.gmra.mrb[44].mxu0 %v1766_v13  ;;  %1873 = vmatmul.mubr.bf16.vlgmr.msra.gmra.mrb[44].mxu1 %v1766_v13 }
 0x9c2   :  { %1949 = vmatpush1.bf16.msra.mxu0 %v5241_v21  ;;  %1990 = vmatpush1.bf16.msra.mxu1 %v5243_v30 }
 0x9c3   :  { %1950 = vmatprep.subr.bf16.mxu0 %v5247_v31  ;;  %1991 = vmatprep.subr.bf16.mxu1 %v5249_v11  ;;  %v6117_v31 = vld [vmem:[#allocation61_spill] sm:$0xff] }
 0x9c4   :  { %1980 = vmatprep.mubr.bf16.mxu0 %v6103_v20  ;;  %2021 = vmatprep.mubr.bf16.mxu1 %v6103_v20 }
 0x9c6   :  { %1951 = vmatpush1.bf16.msra.mxu0 %v5253_v32  ;;  %1992 = vmatpush1.bf16.msra.mxu1 %v5255_v35  ;;  %v6118_v32 = vld [vmem:[#allocation62_spill] sm:$0xff] }
 0x9c7   :  { %1952 = vmatprep.subr.bf16.mxu0 %v5259_v48  ;;  %1993 = vmatprep.subr.bf16.mxu1 %v5261_v49 }
 0x9ca   :  { %1953 = vmatpush1.bf16.msra.mxu0 %v5265_v37  ;;  %1994 = vmatpush1.bf16.msra.mxu1 %v5267_v40  ;;  %v6119_v37 = vld [vmem:[#allocation63_spill] sm:$0xff] }
 0x9cb   :  { %1954 = vmatprep.subr.bf16.mxu0 %v5271_v46  ;;  %1995 = vmatprep.subr.bf16.mxu1 %v5273_v62  ;;  %v6120_v46 = vld [vmem:[#allocation64_spill] sm:$0xff] }
 0x9ce   :  { %1955 = vmatpush1.bf16.msra.mxu0 %v5277_v15  ;;  %1996 = vmatpush1.bf16.msra.mxu1 %v5279_v36 }
 0x9cf   :  { %1956 = vmatprep.subr.bf16.mxu0 %v5283_v42  ;;  %1997 = vmatprep.subr.bf16.mxu1 %v5285_v52 }
 0x9d2   :  { %1957 = vmatpush1.bf16.msra.mxu0 %v5289_v57  ;;  %1998 = vmatpush1.bf16.msra.mxu1 %v5291_v45 }
 0x9d3   :  { %1958 = vmatprep.subr.bf16.mxu0 %v5295_v38  ;;  %1999 = vmatprep.subr.bf16.mxu1 %v5297_v10 }
 0x9d6   :  { %1959 = vmatpush1.bf16.msra.mxu0 %v5301_v34  ;;  %2000 = vmatpush1.bf16.msra.mxu1 %v5303_v22 }
 0x9d7   :  { %1960 = vmatprep.subr.bf16.mxu0 %v5305_v6  ;;  %2001 = vmatprep.subr.bf16.mxu1 %v5307_v54 }
 0x9da   :  { %1961 = vmatpush1.bf16.msra.mxu0 %v5313_v56  ;;  %2002 = vmatpush1.bf16.msra.mxu1 %v5315_v58 }
 0x9db   :  { %1962 = vmatprep.subr.bf16.mxu0 %v5317_v59  ;;  %2003 = vmatprep.subr.bf16.mxu1 %v5319_v39 }
 0x9de   :  { %1963 = vmatpush1.bf16.msra.mxu0 %v5325_v41  ;;  %2004 = vmatpush1.bf16.msra.mxu1 %v5327_v60 }
 0xa94   :  { %v1833_v21 = vpop.f32.mrb[44].mxu0  ;;  %v1874_v30 = vpop.f32.mrb[44].mxu1 }
 0xa95   :  { %v1881_v11 = vadd.f32 %v1833_v21, %v6117_v31  ;;  %v1883_v35 = vadd.f32 %v1874_v30, %v6118_v32  ;;  %v1835_v48 = vpop.f32.mrb[45].mxu0  ;;  %v1876_v49 = vpop.f32.mrb[45].mxu1 }
 0xa96   :  { %v1882_v40 = vadd.f32 %v1835_v48, %v6119_v37  ;;  %v1884_v62 = vadd.f32 %v1876_v49, %v6120_v46  ;;  %v1837_v15 = vpop.f32.mrb[46].mxu0  ;;  %v1878_v36 = vpop.f32.mrb[46].mxu1 }
 0xa97   :  { %v3729_v42 = vmul.f32 -1.442695, %v1881_v11  ;;  %v1838_v52 = vpop.f32.mrb[47].mxu0  ;;  %v1879_v57 = vpop.f32.mrb[47].mxu1  ;;  %v3731_v38 = vmul.f32 -1.442695, %v1883_v35 }
 0xa98   :  { %v3730_v45 = vmul.f32 -1.442695, %v1882_v40 }
 0xa99   :  { %4151 = vpow2.f32 %v3729_v42 }
 0xa9a   :  { %4153 = vpow2.f32 %v3730_v45 }
 0xa9b   :  { %4155 = vtanh.f32 %v1884_v62 }
 0xa9c   :  { %4157 = vpow2.f32 %v3731_v38 }
 0xaa3   :  { %v4152_v10 = vpop.eup %4151 }
 0xaa4   :  { %v1894_v34 = vadd.f32 1.0, %v4152_v10  ;;  %v4154_v22 = vpop.eup %4153 }
 0xaa5   :  { %v1895_v6 = vadd.f32 1.0, %v4154_v22  ;;  %v4156_v54 = vpop.eup %4155 }
 0xaa6   :  { %4159 = vrcp.f32 %v1894_v34  ;;  %v4158_v56 = vpop.eup %4157 }
 0xaa7   :  { %4161 = vrcp.f32 %v1895_v6  ;;  %v1896_v41 = vadd.f32 1.0, %v4158_v56 }
 0xaa9   :  { %4163 = vrcp.f32 %v1896_v41 }
 0xab0   :  { %v4160_v58 = vpop.eup %4159 }
 0xab1   :  { %v1905_v59 = vmul.f32 %v4160_v58, %v4156_v54  ;;  %v4162_v39 = vpop.eup %4161 }
 0xab2   :  { %v1904_v60 = vmul.f32 %v4162_v39, %v5384_v9 }
 0xab3   :  { %v4164_v14 = vpop.eup %4163 }
 0xab4   :  { %v1906_v2 = vadd.f32 %v1905_v59, %v1904_v60 }
 0xab6   :  { %4165 = vtanh.f32 %v1906_v2 }
 0xac0   :  { %v4166_v16 = vpop.eup %4165 }
 0xac1   :  { %v5428_v17 = vmul.f32 %v4166_v16, %v4164_v14 }
 0xac3   :  { %v1915_v18 = vpack.c.bf16 %v5428_v17, %v5428_v17 }
 0xac5   :  { %1981 = vmatmul.mubr.bf16.vlgmr.msra.gmra.mrb[48].mxu0 %v1915_v18  ;;  %2022 = vmatmul.mubr.bf16.vlgmr.msra.gmra.mrb[48].mxu1 %v1915_v18 }
 0xb98   :  { %v1982_v19 = vpop.f32.mrb[48].mxu0  ;;  %v2023_v53 = vpop.f32.mrb[48].mxu1 }
 0xb99   :  { %v2030_v26 = vadd.f32 %v1982_v19, %v6121_v55  ;;  %v2032_v28 = vadd.f32 %v2023_v53, %v6122_v25  ;;  %v1984_v5 = vpop.f32.mrb[49].mxu0  ;;  %v2025_v29 = vpop.f32.mrb[49].mxu1 }
 0xb9a   :  { %v2031_v63 = vadd.f32 %v1984_v5, %v6123_v61  ;;  %v2033_v1 = vadd.f32 %v2025_v29, %v6124_v0  ;;  %v1986_v43 = vpop.f32.mrb[50].mxu0  ;;  %v2027_v47 = vpop.f32.mrb[50].mxu1 }
 0xb9b   :  { %v3732_v4 = vmul.f32 -1.442695, %v2030_v26  ;;  %v1987_v24 = vpop.f32.mrb[51].mxu0  ;;  %v2028_v7 = vpop.f32.mrb[51].mxu1  ;;  %v3734_v9 = vmul.f32 -1.442695, %v2032_v28 }
 0xb9c   :  { %v3733_v8 = vmul.f32 -1.442695, %v2031_v63 }
 0xb9d   :  { %4167 = vpow2.f32 %v3732_v4 }
 0xb9e   :  { %4169 = vpow2.f32 %v3733_v8 }
 0xb9f   :  { %4171 = vtanh.f32 %v2033_v1 }
 0xba0   :  { %4173 = vpow2.f32 %v3734_v9 }
 0xba7   :  { %v4168_v12 = vpop.eup %4167 }
 0xba8   :  { %v2043_v50 = vadd.f32 1.0, %v4168_v12  ;;  %v4170_v13 = vpop.eup %4169 }
 0xba9   :  { %v2044_v21 = vadd.f32 1.0, %v4170_v13  ;;  %v4172_v30 = vpop.eup %4171 }
 0xbaa   :  { %4175 = vrcp.f32 %v2043_v50  ;;  %v4174_v31 = vpop.eup %4173 }
 0xbab   :  { %4177 = vrcp.f32 %v2044_v21  ;;  %v2045_v48 = vadd.f32 1.0, %v4174_v31 }
 0xbad   :  { %4179 = vrcp.f32 %v2045_v48 }
 0xbb4   :  { %v4176_v11 = vpop.eup %4175 }
 0xbb5   :  { %v2054_v32 = vmul.f32 %v4176_v11, %v4172_v30  ;;  %v4178_v35 = vpop.eup %4177 }
 0xbb6   :  { %v2053_v49 = vmul.f32 %v4178_v35, %v1906_v2 }
 0xbb7   :  { %v4180_v40 = vpop.eup %4179 }
 0xbb8   :  { %v2055_v37 = vadd.f32 %v2054_v32, %v2053_v49 }
 0xbba   :  { %4181 = vtanh.f32 %v2055_v37 }
 0xbc4   :  { %v5436_v46 = vpop.eup %4181 }
 0xbc5   :  { %6125 = vst [vmem:[#allocation48_spill] sm:$0xff] %v5436_v46  ;;  %v5439_v62 = vmul.f32 %v5436_v46, %v4180_v40 }
 0xbc7   :  { %6126 = vst [vmem:[#allocation49_spill] sm:$0xff] %v5439_v62 }
 0xbc8   :  { %4513 = dma.done.wait [#allocation12 + $0x2], 4096 }
 0xbc9   :  { %4514 = vsyncadd [#allocation12 + $0x2], 4294963200 }
 0xbca   :  { %4515 = dma.done.wait [#allocation12 + $0x3], 4096 }
 0xbcb   :  { %4516 = vsyncadd [#allocation12 + $0x3], 4294963200  ;;  %2190 = vmatprep.mubr.bf16.mxu0 %v6103_v20  ;;  %2263 = vmatprep.mubr.bf16.mxu1 %v6103_v20  ;;  %v2081_v15 = vld [vmem:[#allocation4 + $0x8] sm:$0xff]  ;;  %v2083_v36 = vld [vmem:[#allocation4 + $0x18] sm:$0xff]  ;;  %v3777_v43 = vpack.c.bf16 %v5139_v44, %v5093_v23  ;;  %v3778_v12 = vpack.c.bf16 %v5229_v27, %v5185_v33  ;;  %v3779_v32 = vpack.c.bf16 %v5387_v51, %v5341_v3 }
 0xbcc   :  { %v2080_v42 = vld [vmem:[#allocation4] sm:$0xff]  ;;  %2158 = vmatprep.subr.bf16.mxu0 %v2081_v15  ;;  %2231 = vmatprep.subr.bf16.mxu1 %v2083_v36  ;;  %v2082_v52 = vld [vmem:[#allocation4 + $0x10] sm:$0xff]  ;;  %v2085_v57 = vld [vmem:[#allocation4 + $0x28] sm:$0xff]  ;;  %v3780_v36 = vpack.c.bf16 %v5439_v62, %v5428_v17 }
 0xbcd   :  { %v2087_v45 = vld [vmem:[#allocation4 + $0x38] sm:$0xff]  ;;  %2159 = vmatpush1.bf16.msra.mxu0 %v2080_v42  ;;  %2232 = vmatpush1.bf16.msra.mxu1 %v2082_v52  ;;  %v2084_v38 = vld [vmem:[#allocation4 + $0x20] sm:$0xff]  ;;  %v2086_v10 = vld [vmem:[#allocation4 + $0x30] sm:$0xff] }
 0xbce   :  { %2160 = vmatprep.subr.bf16.mxu0 %v2085_v57  ;;  %2233 = vmatprep.subr.bf16.mxu1 %v2087_v45  ;;  %v2089_v34 = vld [vmem:[#allocation4 + $0x48] sm:$0xff]  ;;  %v2091_v22 = vld [vmem:[#allocation4 + $0x58] sm:$0xff]  ;;  %v2088_v6 = vld [vmem:[#allocation4 + $0x40] sm:$0xff] }
 0xbcf   :  { %v2090_v54 = vld [vmem:[#allocation4 + $0x50] sm:$0xff]  ;;  %v2093_v56 = vld [vmem:[#allocation4 + $0x68] sm:$0xff]  ;;  %v2095_v58 = vld [vmem:[#allocation4 + $0x78] sm:$0xff] }
 0xbd0   :  { %v2092_v59 = vld [vmem:[#allocation4 + $0x60] sm:$0xff]  ;;  %v2094_v39 = vld [vmem:[#allocation4 + $0x70] sm:$0xff]  ;;  %v2097_v41 = vld [vmem:[#allocation4 + $0x88] sm:$0xff] }
 0xbd1   :  { %2161 = vmatpush1.bf16.msra.mxu0 %v2084_v38  ;;  %2234 = vmatpush1.bf16.msra.mxu1 %v2086_v10  ;;  %v2099_v60 = vld [vmem:[#allocation4 + $0x98] sm:$0xff]  ;;  %v2096_v2 = vld [vmem:[#allocation4 + $0x80] sm:$0xff]  ;;  %v2098_v14 = vld [vmem:[#allocation4 + $0x90] sm:$0xff] }
 0xbd2   :  { %2162 = vmatprep.subr.bf16.mxu0 %v2089_v34  ;;  %2235 = vmatprep.subr.bf16.mxu1 %v2091_v22  ;;  %v2101_v16 = vld [vmem:[#allocation4 + $0xa8] sm:$0xff]  ;;  %v2103_v18 = vld [vmem:[#allocation4 + $0xb8] sm:$0xff]  ;;  %v2100_v19 = vld [vmem:[#allocation4 + $0xa0] sm:$0xff] }
 0xbd3   :  { %v2102_v53 = vld [vmem:[#allocation4 + $0xb0] sm:$0xff]  ;;  %v2105_v55 = vld [vmem:[#allocation4 + $0xc8] sm:$0xff]  ;;  %v2107_v26 = vld [vmem:[#allocation4 + $0xd8] sm:$0xff] }
 0xbd4   :  { %v2104_v25 = vld [vmem:[#allocation4 + $0xc0] sm:$0xff]  ;;  %v2106_v28 = vld [vmem:[#allocation4 + $0xd0] sm:$0xff]  ;;  %v2109_v5 = vld [vmem:[#allocation4 + $0xe8] sm:$0xff] }
 0xbd5   :  { %2163 = vmatpush1.bf16.msra.mxu0 %v2088_v6  ;;  %2236 = vmatpush1.bf16.msra.mxu1 %v2090_v54  ;;  %v2111_v29 = vld [vmem:[#allocation4 + $0xf8] sm:$0xff]  ;;  %v2108_v61 = vld [vmem:[#allocation4 + $0xe0] sm:$0xff]  ;;  %v2110_v63 = vld [vmem:[#allocation4 + $0xf0] sm:$0xff] }
 0xbd6   :  { %2164 = vmatprep.subr.bf16.mxu0 %v2093_v56  ;;  %2237 = vmatprep.subr.bf16.mxu1 %v2095_v58  ;;  %v5443_v0 = vld [vmem:[#allocation5 + $0x8] sm:$0xff]  ;;  %v5445_v1 = vld [vmem:[#allocation5 + $0x18] sm:$0xff]  ;;  %v5451_v47 = vld [vmem:[#allocation5] sm:$0xff] }
 0xbd7   :  { %v5453_v4 = vld [vmem:[#allocation5 + $0x10] sm:$0xff]  ;;  %v5455_v24 = vld [vmem:[#allocation5 + $0x28] sm:$0xff]  ;;  %v5457_v7 = vld [vmem:[#allocation5 + $0x38] sm:$0xff] }
 0xbd8   :  { %v5463_v23 = vld [vmem:[#allocation5 + $0x20] sm:$0xff]  ;;  %v5465_v44 = vld [vmem:[#allocation5 + $0x30] sm:$0xff]  ;;  %v5469_v8 = vld [vmem:[#allocation5 + $0x48] sm:$0xff] }
 0xbd9   :  { %2165 = vmatpush1.bf16.msra.mxu0 %v2092_v59  ;;  %2238 = vmatpush1.bf16.msra.mxu1 %v2094_v39  ;;  %v5471_v9 = vld [vmem:[#allocation5 + $0x58] sm:$0xff]  ;;  %v5479_v50 = vld [vmem:[#allocation5 + $0x40] sm:$0xff]  ;;  %v5481_v13 = vld [vmem:[#allocation5 + $0x50] sm:$0xff] }
 0xbda   :  { %2166 = vmatprep.subr.bf16.mxu0 %v2097_v41  ;;  %2239 = vmatprep.subr.bf16.mxu1 %v2099_v60  ;;  %v5483_v21 = vld [vmem:[#allocation5 + $0x68] sm:$0xff]  ;;  %v5485_v30 = vld [vmem:[#allocation5 + $0x78] sm:$0xff]  ;;  %v5491_v33 = vld [vmem:[#allocation5 + $0x60] sm:$0xff] }
 0xbdb   :  { %v5493_v27 = vld [vmem:[#allocation5 + $0x70] sm:$0xff]  ;;  %v5497_v31 = vld [vmem:[#allocation5 + $0x88] sm:$0xff]  ;;  %v5499_v11 = vld [vmem:[#allocation5 + $0x98] sm:$0xff] }
 0xbdc   :  { %v5507_v35 = vld [vmem:[#allocation5 + $0x80] sm:$0xff]  ;;  %v5509_v48 = vld [vmem:[#allocation5 + $0x90] sm:$0xff]  ;;  %v5511_v49 = vld [vmem:[#allocation5 + $0xa8] sm:$0xff] }
 0xbdd   :  { %2167 = vmatpush1.bf16.msra.mxu0 %v2096_v2  ;;  %2240 = vmatpush1.bf16.msra.mxu1 %v2098_v14  ;;  %v5513_v37 = vld [vmem:[#allocation5 + $0xb8] sm:$0xff]  ;;  %v5519_v3 = vld [vmem:[#allocation5 + $0xa0] sm:$0xff]  ;;  %v5521_v51 = vld [vmem:[#allocation5 + $0xb0] sm:$0xff] }
 0xbde   :  { %2168 = vmatprep.subr.bf16.mxu0 %v2101_v16  ;;  %2241 = vmatprep.subr.bf16.mxu1 %v2103_v18  ;;  %v5525_v40 = vld [vmem:[#allocation5 + $0xc8] sm:$0xff]  ;;  %v5527_v15 = vld [vmem:[#allocation5 + $0xd8] sm:$0xff]  ;;  %v5535_v42 = vld [vmem:[#allocation5 + $0xc0] sm:$0xff] }
 0xbdf   :  { %v5537_v52 = vld [vmem:[#allocation5 + $0xd0] sm:$0xff]  ;;  %v5539_v57 = vld [vmem:[#allocation5 + $0xe8] sm:$0xff]  ;;  %v5541_v45 = vld [vmem:[#allocation5 + $0xf8] sm:$0xff] }
 0xbe0   :  { %v5547_v17 = vld [vmem:[#allocation5 + $0xe0] sm:$0xff]  ;;  %v5549_v38 = vld [vmem:[#allocation5 + $0xf0] sm:$0xff]  ;;  %v6127_v34 = vld [vmem:[#allocation46_spill] sm:$0xff] }
 0xbe1   :  { %2169 = vmatpush1.bf16.msra.mxu0 %v2100_v19  ;;  %2242 = vmatpush1.bf16.msra.mxu1 %v2102_v53  ;;  %v2112_v10 = vld [vmem:[%s6048_s11] sm:$0xf]  ;;  %v6128_v22 = vsub.s32 2, %v6127_v34  ;;  %v6129_v58 = vsub.s32 3, %v6127_v34  ;;  %v6130_v39 = vsub.s32 0, %v6127_v34  ;;  %v6131_v14 = vsub.s32 1, %v6127_v34 }
 0xbe2   :  { %2170 = vmatprep.subr.bf16.mxu0 %v2105_v55  ;;  %2243 = vmatprep.subr.bf16.mxu1 %v2107_v26 }
 0xbe3   :  { %v5598_v6 = vrot.slane %v2112_v10, %v6128_v22  ;;  %v5606_v59 = vrot.slane %v2112_v10, %v6129_v58  ;;  %v2117_v41 = vrot.slane %v2112_v10, %v6130_v39  ;;  %v2121_v16 = vrot.slane %v2112_v10, %v6131_v14 }
 0xbe5   :  { %2171 = vmatpush1.bf16.msra.mxu0 %v2104_v25  ;;  %2244 = vmatpush1.bf16.msra.mxu1 %v2106_v28 }
 0xbe6   :  { %2172 = vmatprep.subr.bf16.mxu0 %v2109_v5  ;;  %2245 = vmatprep.subr.bf16.mxu1 %v2111_v29 }
 0xbe9   :  { %2173 = vmatpush1.bf16.msra.mxu0 %v2108_v61  ;;  %2246 = vmatpush1.bf16.msra.mxu1 %v2110_v63 }
 0xbea   :  { %2372 = vmatprep.subr.bf16.mxu0 %v5443_v0  ;;  %2413 = vmatprep.subr.bf16.mxu1 %v5445_v1 }
 0xbec   :  { %2191 = vmatmul.mubr.bf16.vlgmr.msra.gmra.mrb[52].mxu0 %v3777_v43  ;;  %2264 = vmatmul.mubr.bf16.vlgmr.msra.gmra.mrb[52].mxu1 %v3777_v43 }
 0xbed   :  { %2373 = vmatpush1.bf16.msra.mxu0 %v5451_v47  ;;  %2414 = vmatpush1.bf16.msra.mxu1 %v5453_v4 }
 0xbee   :  { %2374 = vmatprep.subr.bf16.mxu0 %v5455_v24  ;;  %2415 = vmatprep.subr.bf16.mxu1 %v5457_v7 }
 0xbef   :  { %2200 = vmatprep.mubr.bf16.mxu0 %v6103_v20  ;;  %2273 = vmatprep.mubr.bf16.mxu1 %v6103_v20 }
 0xbf1   :  { %2375 = vmatpush1.bf16.msra.mxu0 %v5463_v23  ;;  %2416 = vmatpush1.bf16.msra.mxu1 %v5465_v44 }
 0xbf2   :  { %2376 = vmatprep.subr.bf16.mxu0 %v5469_v8  ;;  %2417 = vmatprep.subr.bf16.mxu1 %v5471_v9 }
 0xbf4   :  { %2201 = vmatmul.mubr.bf16.gmra.mrb[56].mxu0 %v3778_v12  ;;  %2274 = vmatmul.mubr.bf16.gmra.mrb[56].mxu1 %v3778_v12 }
 0xbf5   :  { %2377 = vmatpush1.bf16.msra.mxu0 %v5479_v50  ;;  %2418 = vmatpush1.bf16.msra.mxu1 %v5481_v13 }
 0xbf6   :  { %2378 = vmatprep.subr.bf16.mxu0 %v5483_v21  ;;  %2419 = vmatprep.subr.bf16.mxu1 %v5485_v30 }
 0xbf7   :  { %2210 = vmatprep.mubr.bf16.mxu0 %v6103_v20  ;;  %2283 = vmatprep.mubr.bf16.mxu1 %v6103_v20 }
 0xbf9   :  { %2379 = vmatpush1.bf16.msra.mxu0 %v5491_v33  ;;  %2420 = vmatpush1.bf16.msra.mxu1 %v5493_v27 }
 0xbfa   :  { %2380 = vmatprep.subr.bf16.mxu0 %v5497_v31  ;;  %2421 = vmatprep.subr.bf16.mxu1 %v5499_v11 }
 0xbfc   :  { %2211 = vmatmul.mubr.bf16.gmra.mrb[60].mxu0 %v3779_v32  ;;  %2284 = vmatmul.mubr.bf16.gmra.mrb[60].mxu1 %v3779_v32 }
 0xbfd   :  { %2381 = vmatpush1.bf16.msra.mxu0 %v5507_v35  ;;  %2422 = vmatpush1.bf16.msra.mxu1 %v5509_v48 }
 0xbfe   :  { %2382 = vmatprep.subr.bf16.mxu0 %v5511_v49  ;;  %2423 = vmatprep.subr.bf16.mxu1 %v5513_v37 }
 0xbff   :  { %2220 = vmatprep.mubr.bf16.mxu0 %v6103_v20  ;;  %2293 = vmatprep.mubr.bf16.mxu1 %v6103_v20 }
 0xc01   :  { %2383 = vmatpush1.bf16.msra.mxu0 %v5519_v3  ;;  %2424 = vmatpush1.bf16.msra.mxu1 %v5521_v51 }
 0xc02   :  { %2384 = vmatprep.subr.bf16.mxu0 %v5525_v40  ;;  %2425 = vmatprep.subr.bf16.mxu1 %v5527_v15 }
 0xc04   :  { %2221 = vmatmul.mubr.bf16.gmra.mrb[64].mxu0 %v3780_v36  ;;  %2294 = vmatmul.mubr.bf16.gmra.mrb[64].mxu1 %v3780_v36 }
 0xc05   :  { %2385 = vmatpush1.bf16.msra.mxu0 %v5535_v42  ;;  %2426 = vmatpush1.bf16.msra.mxu1 %v5537_v52 }
 0xc06   :  { %2386 = vmatprep.subr.bf16.mxu0 %v5539_v57  ;;  %2427 = vmatprep.subr.bf16.mxu1 %v5541_v45 }
 0xc07   :  { %2404 = vmatprep.mubr.bf16.mxu0 %v6103_v20  ;;  %2445 = vmatprep.mubr.bf16.mxu1 %v6103_v20 }
 0xc09   :  { %2387 = vmatpush1.bf16.msra.mxu0 %v5547_v17  ;;  %2428 = vmatpush1.bf16.msra.mxu1 %v5549_v38 }
 0xc0a   :  { %2487 = vmatprep.subr.bf16.mxu0 %v5443_v0  ;;  %2528 = vmatprep.subr.bf16.mxu1 %v5445_v1 }
 0xc0c   :  { %2405 = vmatmul.mubr.bf16.vlgmr.msra.gmra.mrb[68].mxu0 %v6103_v20  ;;  %2446 = vmatmul.mubr.bf16.vlgmr.msra.gmra.mrb[68].mxu1 %v6103_v20 }
 0xc0d   :  { %2488 = vmatpush1.bf16.msra.mxu0 %v5451_v47  ;;  %2529 = vmatpush1.bf16.msra.mxu1 %v5453_v4 }
 0xc0e   :  { %2489 = vmatprep.subr.bf16.mxu0 %v5455_v24  ;;  %2530 = vmatprep.subr.bf16.mxu1 %v5457_v7 }
 0xc0f   :  { %2519 = vmatprep.mubr.bf16.mxu0 %v6103_v20  ;;  %2560 = vmatprep.mubr.bf16.mxu1 %v6103_v20 }
 0xc11   :  { %2490 = vmatpush1.bf16.msra.mxu0 %v5463_v23  ;;  %2531 = vmatpush1.bf16.msra.mxu1 %v5465_v44 }
 0xc12   :  { %2491 = vmatprep.subr.bf16.mxu0 %v5469_v8  ;;  %2532 = vmatprep.subr.bf16.mxu1 %v5471_v9 }
 0xc15   :  { %2492 = vmatpush1.bf16.msra.mxu0 %v5479_v50  ;;  %2533 = vmatpush1.bf16.msra.mxu1 %v5481_v13 }
 0xc16   :  { %2493 = vmatprep.subr.bf16.mxu0 %v5483_v21  ;;  %2534 = vmatprep.subr.bf16.mxu1 %v5485_v30 }
 0xc19   :  { %2494 = vmatpush1.bf16.msra.mxu0 %v5491_v33  ;;  %2535 = vmatpush1.bf16.msra.mxu1 %v5493_v27 }
 0xc1a   :  { %2495 = vmatprep.subr.bf16.mxu0 %v5497_v31  ;;  %2536 = vmatprep.subr.bf16.mxu1 %v5499_v11 }
 0xc1d   :  { %2496 = vmatpush1.bf16.msra.mxu0 %v5507_v35  ;;  %2537 = vmatpush1.bf16.msra.mxu1 %v5509_v48 }
 0xc1e   :  { %2497 = vmatprep.subr.bf16.mxu0 %v5511_v49  ;;  %2538 = vmatprep.subr.bf16.mxu1 %v5513_v37 }
 0xc21   :  { %2498 = vmatpush1.bf16.msra.mxu0 %v5519_v3  ;;  %2539 = vmatpush1.bf16.msra.mxu1 %v5521_v51 }
 0xc22   :  { %2499 = vmatprep.subr.bf16.mxu0 %v5525_v40  ;;  %2540 = vmatprep.subr.bf16.mxu1 %v5527_v15 }
 0xc25   :  { %2500 = vmatpush1.bf16.msra.mxu0 %v5535_v42  ;;  %2541 = vmatpush1.bf16.msra.mxu1 %v5537_v52 }
 0xc26   :  { %2501 = vmatprep.subr.bf16.mxu0 %v5539_v57  ;;  %2542 = vmatprep.subr.bf16.mxu1 %v5541_v45 }
 0xc29   :  { %2502 = vmatpush1.bf16.msra.mxu0 %v5547_v17  ;;  %2543 = vmatpush1.bf16.msra.mxu1 %v5549_v38 }
 0xc2a   :  { %2602 = vmatprep.subr.bf16.mxu0 %v5443_v0  ;;  %2643 = vmatprep.subr.bf16.mxu1 %v5445_v1 }
 0xcbf   :  { %v5600_v54 = vpop.f32.mrb[52].mxu0  ;;  %v5602_v56 = vpop.f32.mrb[52].mxu1 }
 0xcc0   :  { %v2194_v60 = vpop.f32.mrb[53].mxu0  ;;  %v2267_v2 = vpop.f32.mrb[53].mxu1 }
 0xcc1   :  { %v2196_v18 = vpop.f32.mrb[54].mxu0  ;;  %v2269_v19 = vpop.f32.mrb[54].mxu1 }
 0xcc2   :  { %v5612_v53 = vadd.f32 %v2196_v18, %v2117_v41  ;;  %v2198_v55 = vpop.f32.mrb[55].mxu0  ;;  %v5615_v26 = vadd.f32 %v2269_v19, %v5598_v6  ;;  %v2271_v25 = vpop.f32.mrb[55].mxu1 }
 0xcc3   :  { %v5617_v28 = vadd.f32 %v2198_v55, %v2121_v16  ;;  %v5620_v5 = vadd.f32 %v2271_v25, %v5606_v59 }
 0xcc7   :  { %v2202_v29 = vpop.f32.mrb[56].mxu0  ;;  %v2275_v61 = vpop.f32.mrb[56].mxu1 }
 0xcc8   :  { %v5622_v63 = vadd.f32 %v2202_v29, %v2117_v41  ;;  %v2204_v43 = vpop.f32.mrb[57].mxu0  ;;  %v5625_v12 = vadd.f32 %v2275_v61, %v5598_v6  ;;  %v2277_v32 = vpop.f32.mrb[57].mxu1 }
 0xcc9   :  { %v5627_v36 = vadd.f32 %v2204_v43, %v2121_v16  ;;  %v2206_v10 = vpop.f32.mrb[58].mxu0  ;;  %v5630_v34 = vadd.f32 %v2277_v32, %v5606_v59  ;;  %v2279_v22 = vpop.f32.mrb[58].mxu1 }
 0xcca   :  { %v5632_v58 = vadd.f32 %v2206_v10, %v2117_v41  ;;  %v2208_v39 = vpop.f32.mrb[59].mxu0  ;;  %v5635_v14 = vadd.f32 %v2279_v22, %v5598_v6  ;;  %v2281_v18 = vpop.f32.mrb[59].mxu1 }
 0xccb   :  { %6132 = vst [vmem:[#allocation50_spill] sm:$0xff] %v5627_v36  ;;  %6133 = vst [vmem:[#allocation51_spill] sm:$0xff] %v5630_v34  ;;  %v5637_v19 = vadd.f32 %v2208_v39, %v2121_v16  ;;  %v5640_v55 = vadd.f32 %v2281_v18, %v5606_v59 }
 0xccc   :  { %6134 = vst [vmem:[#allocation52_spill] sm:$0xff] %v5632_v58  ;;  %6135 = vst [vmem:[#allocation53_spill] sm:$0xff] %v5635_v14 }
 0xccd   :  { %6136 = vst [vmem:[#allocation54_spill] sm:$0xff] %v5637_v19  ;;  %6137 = vst [vmem:[#allocation55_spill] sm:$0xff] %v5640_v55 }
 0xccf   :  { %v2212_v25 = vpop.f32.mrb[60].mxu0  ;;  %v2285_v29 = vpop.f32.mrb[60].mxu1 }
 0xcd0   :  { %v5642_v61 = vadd.f32 %v2212_v25, %v2117_v41  ;;  %v2214_v43 = vpop.f32.mrb[61].mxu0  ;;  %v5645_v32 = vadd.f32 %v2285_v29, %v5598_v6  ;;  %v2287_v10 = vpop.f32.mrb[61].mxu1 }
 0xcd1   :  { %v5647_v46 = vadd.f32 %v2214_v43, %v2121_v16  ;;  %v2216_v62 = vpop.f32.mrb[62].mxu0  ;;  %v5650_v22 = vadd.f32 %v2287_v10, %v5606_v59  ;;  %v2289_v39 = vpop.f32.mrb[62].mxu1 }
 0xcd2   :  { %6138 = vst [vmem:[#allocation56_spill] sm:$0xff] %v5642_v61  ;;  %6139 = vst [vmem:[#allocation57_spill] sm:$0xff] %v5645_v32  ;;  %v5652_v19 = vadd.f32 %v2216_v62, %v2117_v41  ;;  %v2218_v18 = vpop.f32.mrb[63].mxu0  ;;  %v5655_v55 = vadd.f32 %v2289_v39, %v5598_v6  ;;  %v2291_v25 = vpop.f32.mrb[63].mxu1 }
 0xcd3   :  { %6140 = vst [vmem:[#allocation58_spill] sm:$0xff] %v5647_v46  ;;  %6141 = vst [vmem:[#allocation59_spill] sm:$0xff] %v5650_v22  ;;  %v5657_v61 = vadd.f32 %v2218_v18, %v2121_v16  ;;  %v5660_v29 = vadd.f32 %v2291_v25, %v5606_v59 }
 0xcd4   :  { %6142 = vst [vmem:[#allocation60_spill] sm:$0xff] %v5652_v19  ;;  %6143 = vst [vmem:[#allocation61_spill] sm:$0xff] %v5655_v55 }
 0xcd5   :  { %6144 = vst [vmem:[#allocation62_spill] sm:$0xff] %v5657_v61  ;;  %6145 = vst [vmem:[#allocation63_spill] sm:$0xff] %v5660_v29 }
 0xcd7   :  { %v2222_v32 = vpop.f32.mrb[64].mxu0  ;;  %v2295_v43 = vpop.f32.mrb[64].mxu1 }
 0xcd8   :  { %v5662_v46 = vadd.f32 %v2222_v32, %v2117_v41  ;;  %v2224_v14 = vpop.f32.mrb[65].mxu0  ;;  %v5665_v10 = vadd.f32 %v2295_v43, %v5598_v6  ;;  %v2297_v62 = vpop.f32.mrb[65].mxu1 }
 0xcd9   :  { %v5667_v19 = vadd.f32 %v2224_v14, %v2121_v16  ;;  %v2226_v22 = vpop.f32.mrb[66].mxu0  ;;  %v5670_v39 = vadd.f32 %v2297_v62, %v5606_v59  ;;  %v2299_v18 = vpop.f32.mrb[66].mxu1  ;;  %v2193_v14 = vadd.f32 %v5600_v54, %v2117_v41  ;;  %v2195_v62 = vadd.f32 %v2194_v60, %v2121_v16 }
 0xcda   :  { %6146 = vst [vmem:[#allocation64_spill] sm:$0xff] %v5662_v46  ;;  %6147 = vst [vmem:[#allocation65_spill] sm:$0xff] %v5665_v10  ;;  %v5672_v61 = vadd.f32 %v2226_v22, %v2117_v41  ;;  %v2228_v25 = vpop.f32.mrb[67].mxu0  ;;  %v5675_v29 = vadd.f32 %v2299_v18, %v5598_v6  ;;  %v2301_v32 = vpop.f32.mrb[67].mxu1 }
 0xcdb   :  { %6148 = vst [vmem:[#allocation66_spill] sm:$0xff] %v5667_v19  ;;  %6149 = vst [vmem:[#allocation67_spill] sm:$0xff] %v5670_v39  ;;  %v5677_v46 = vadd.f32 %v2228_v25, %v2121_v16  ;;  %v5680_v43 = vadd.f32 %v2301_v32, %v5606_v59  ;;  %v2266_v19 = vadd.f32 %v5602_v56, %v5598_v6 }
 0xcdc   :  { %6150 = vst [vmem:[#allocation68_spill] sm:$0xff] %v5672_v61  ;;  %6151 = vst [vmem:[#allocation46_spill] sm:$0xff] %v5675_v29  ;;  %v2268_v39 = vadd.f32 %v2267_v2, %v5606_v59 }
 0xcdd   :  { %6152 = vst [vmem:[#allocation69_spill] sm:$0xff] %v5677_v46  ;;  %6153 = vst [vmem:[#allocation70_spill] sm:$0xff] %v5680_v43 }
 0xcdf   :  { %v2406_v22 = vpop.f32.mrb[68].mxu0  ;;  %v2447_v61 = vpop.f32.mrb[68].mxu1 }
 0xce0   :  { %v2454_v10 = vadd.f32 %v2406_v22, %v2193_v14  ;;  %v2456_v55 = vadd.f32 %v2447_v61, %v2266_v19  ;;  %v2408_v18 = vpop.f32.mrb[69].mxu0  ;;  %v2449_v29 = vpop.f32.mrb[69].mxu1 }
 0xce1   :  { %v2455_v58 = vadd.f32 %v2408_v18, %v2195_v62  ;;  %v2457_v25 = vadd.f32 %v2449_v29, %v2268_v39  ;;  %v2410_v46 = vpop.f32.mrb[70].mxu0  ;;  %v2451_v34 = vpop.f32.mrb[70].mxu1 }
 0xce2   :  { %v3739_v32 = vmul.f32 -1.442695, %v2454_v10  ;;  %v2411_v43 = vpop.f32.mrb[71].mxu0  ;;  %v2452_v36 = vpop.f32.mrb[71].mxu1  ;;  %v3741_v6 = vmul.f32 -1.442695, %v2456_v55 }
 0xce3   :  { %v3740_v54 = vmul.f32 -1.442695, %v2455_v58 }
 0xce4   :  { %4183 = vpow2.f32 %v3739_v32 }
 0xce5   :  { %4185 = vpow2.f32 %v3740_v54 }
 0xce6   :  { %4187 = vtanh.f32 %v2457_v25 }
 0xce7   :  { %4189 = vpow2.f32 %v3741_v6 }
 0xcee   :  { %v4184_v56 = vpop.eup %4183 }
 0xcef   :  { %v2467_v41 = vadd.f32 1.0, %v4184_v56  ;;  %v4186_v59 = vpop.eup %4185 }
 0xcf0   :  { %v2468_v60 = vadd.f32 1.0, %v4186_v59  ;;  %v4188_v2 = vpop.eup %4187 }
 0xcf1   :  { %4191 = vrcp.f32 %v2467_v41  ;;  %v4190_v16 = vpop.eup %4189 }
 0xcf2   :  { %4193 = vrcp.f32 %v2468_v60  ;;  %v2469_v61 = vadd.f32 1.0, %v4190_v16 }
 0xcf4   :  { %4195 = vrcp.f32 %v2469_v61 }
 0xcfb   :  { %v4192_v19 = vpop.eup %4191 }
 0xcfc   :  { %v2478_v46 = vmul.f32 %v4192_v19, %v4188_v2  ;;  %v4194_v34 = vpop.eup %4193 }
 0xcfd   :  { %v2477_v29 = vmul.f32 0.0, %v4194_v34 }
 0xcfe   :  { %v4196_v58 = vpop.eup %4195 }
 0xcff   :  { %v5686_v36 = vadd.f32 %v2478_v46, %v2477_v29 }
 0xd01   :  { %4197 = vtanh.f32 %v5686_v36 }
 0xd0b   :  { %v4198_v55 = vpop.eup %4197 }
 0xd0c   :  { %v2481_v10 = vmul.f32 %v4198_v55, %v4196_v58 }
 0xd0e   :  { %v2486_v39 = vpack.c.bf16 %v2481_v10, %v2481_v10 }
 0xd10   :  { %2520 = vmatmul.mubr.bf16.vlgmr.msra.gmra.mrb[72].mxu0 %v2486_v39  ;;  %2561 = vmatmul.mubr.bf16.vlgmr.msra.gmra.mrb[72].mxu1 %v2486_v39 }
 0xd11   :  { %2603 = vmatpush1.bf16.msra.mxu0 %v5451_v47  ;;  %2644 = vmatpush1.bf16.msra.mxu1 %v5453_v4 }
 0xd12   :  { %2604 = vmatprep.subr.bf16.mxu0 %v5455_v24  ;;  %2645 = vmatprep.subr.bf16.mxu1 %v5457_v7 }
 0xd13   :  { %2634 = vmatprep.mubr.bf16.mxu0 %v6103_v20  ;;  %2675 = vmatprep.mubr.bf16.mxu1 %v6103_v20 }
 0xd15   :  { %2605 = vmatpush1.bf16.msra.mxu0 %v5463_v23  ;;  %2646 = vmatpush1.bf16.msra.mxu1 %v5465_v44 }
 0xd16   :  { %2606 = vmatprep.subr.bf16.mxu0 %v5469_v8  ;;  %2647 = vmatprep.subr.bf16.mxu1 %v5471_v9 }
 0xd19   :  { %2607 = vmatpush1.bf16.msra.mxu0 %v5479_v50  ;;  %2648 = vmatpush1.bf16.msra.mxu1 %v5481_v13 }
 0xd1a   :  { %2608 = vmatprep.subr.bf16.mxu0 %v5483_v21  ;;  %2649 = vmatprep.subr.bf16.mxu1 %v5485_v30 }
 0xd1d   :  { %2609 = vmatpush1.bf16.msra.mxu0 %v5491_v33  ;;  %2650 = vmatpush1.bf16.msra.mxu1 %v5493_v27 }
 0xd1e   :  { %2610 = vmatprep.subr.bf16.mxu0 %v5497_v31  ;;  %2651 = vmatprep.subr.bf16.mxu1 %v5499_v11 }
 0xd21   :  { %2611 = vmatpush1.bf16.msra.mxu0 %v5507_v35  ;;  %2652 = vmatpush1.bf16.msra.mxu1 %v5509_v48 }
 0xd22   :  { %2612 = vmatprep.subr.bf16.mxu0 %v5511_v49  ;;  %2653 = vmatprep.subr.bf16.mxu1 %v5513_v37 }
 0xd25   :  { %2613 = vmatpush1.bf16.msra.mxu0 %v5519_v3  ;;  %2654 = vmatpush1.bf16.msra.mxu1 %v5521_v51 }
 0xd26   :  { %2614 = vmatprep.subr.bf16.mxu0 %v5525_v40  ;;  %2655 = vmatprep.subr.bf16.mxu1 %v5527_v15 }
 0xd29   :  { %2615 = vmatpush1.bf16.msra.mxu0 %v5535_v42  ;;  %2656 = vmatpush1.bf16.msra.mxu1 %v5537_v52 }
 0xd2a   :  { %2616 = vmatprep.subr.bf16.mxu0 %v5539_v57  ;;  %2657 = vmatprep.subr.bf16.mxu1 %v5541_v45 }
 0xd2d   :  { %2617 = vmatpush1.bf16.msra.mxu0 %v5547_v17  ;;  %2658 = vmatpush1.bf16.msra.mxu1 %v5549_v38 }
 0xd2e   :  { %2717 = vmatprep.subr.bf16.mxu0 %v5443_v0  ;;  %2758 = vmatprep.subr.bf16.mxu1 %v5445_v1 }
 0xde3   :  { %v2521_v43 = vpop.f32.mrb[72].mxu0  ;;  %v2562_v14 = vpop.f32.mrb[72].mxu1 }
 0xde4   :  { %v2569_v62 = vadd.f32 %v2521_v43, %v5612_v53  ;;  %v2571_v22 = vadd.f32 %v2562_v14, %v5615_v26  ;;  %v2523_v18 = vpop.f32.mrb[73].mxu0  ;;  %v2564_v25 = vpop.f32.mrb[73].mxu1 }
 0xde5   :  { %v2570_v32 = vadd.f32 %v2523_v18, %v5617_v28  ;;  %v2572_v54 = vadd.f32 %v2564_v25, %v5620_v5  ;;  %v2525_v6 = vpop.f32.mrb[74].mxu0  ;;  %v2566_v56 = vpop.f32.mrb[74].mxu1 }
 0xde6   :  { %v3742_v41 = vmul.f32 -1.442695, %v2569_v62  ;;  %v2526_v59 = vpop.f32.mrb[75].mxu0  ;;  %v2567_v60 = vpop.f32.mrb[75].mxu1  ;;  %v3744_v16 = vmul.f32 -1.442695, %v2571_v22 }
 0xde7   :  { %v3743_v2 = vmul.f32 -1.442695, %v2570_v32  ;;  %v6154_v6 = vld [vmem:[#allocation50_spill] sm:$0xff] }
 0xde8   :  { %4199 = vpow2.f32 %v3742_v41  ;;  %v6155_v41 = vld [vmem:[#allocation51_spill] sm:$0xff] }
 0xde9   :  { %4201 = vpow2.f32 %v3743_v2 }
 0xdea   :  { %4203 = vtanh.f32 %v2572_v54 }
 0xdeb   :  { %4205 = vpow2.f32 %v3744_v16 }
 0xdf2   :  { %v4200_v19 = vpop.eup %4199 }
 0xdf3   :  { %v2582_v46 = vadd.f32 1.0, %v4200_v19  ;;  %v4202_v53 = vpop.eup %4201 }
 0xdf4   :  { %v2583_v26 = vadd.f32 1.0, %v4202_v53  ;;  %v4204_v28 = vpop.eup %4203 }
 0xdf5   :  { %4207 = vrcp.f32 %v2582_v46  ;;  %v4206_v34 = vpop.eup %4205 }
 0xdf6   :  { %4209 = vrcp.f32 %v2583_v26  ;;  %v2584_v58 = vadd.f32 1.0, %v4206_v34 }
 0xdf8   :  { %4211 = vrcp.f32 %v2584_v58 }
 0xdff   :  { %v4208_v5 = vpop.eup %4207 }
 0xe00   :  { %v2593_v61 = vmul.f32 %v4208_v5, %v4204_v28  ;;  %v4210_v29 = vpop.eup %4209 }
 0xe01   :  { %v2592_v55 = vmul.f32 %v4210_v29, %v5686_v36 }
 0xe02   :  { %v4212_v39 = vpop.eup %4211 }
 0xe03   :  { %v5728_v10 = vadd.f32 %v2593_v61, %v2592_v55 }
 0xe05   :  { %4213 = vtanh.f32 %v5728_v10 }
 0xe0f   :  { %v4214_v43 = vpop.eup %4213 }
 0xe10   :  { %v2596_v14 = vmul.f32 %v4214_v43, %v4212_v39 }
 0xe12   :  { %v2601_v62 = vpack.c.bf16 %v2596_v14, %v2596_v14 }
 0xe14   :  { %2635 = vmatmul.mubr.bf16.vlgmr.msra.gmra.mrb[76].mxu0 %v2601_v62  ;;  %2676 = vmatmul.mubr.bf16.vlgmr.msra.gmra.mrb[76].mxu1 %v2601_v62 }
 0xe15   :  { %2718 = vmatpush1.bf16.msra.mxu0 %v5451_v47  ;;  %2759 = vmatpush1.bf16.msra.mxu1 %v5453_v4 }
 0xe16   :  { %2719 = vmatprep.subr.bf16.mxu0 %v5455_v24  ;;  %2760 = vmatprep.subr.bf16.mxu1 %v5457_v7 }
 0xe17   :  { %2749 = vmatprep.mubr.bf16.mxu0 %v6103_v20  ;;  %2790 = vmatprep.mubr.bf16.mxu1 %v6103_v20 }
 0xe19   :  { %2720 = vmatpush1.bf16.msra.mxu0 %v5463_v23  ;;  %2761 = vmatpush1.bf16.msra.mxu1 %v5465_v44 }
 0xe1a   :  { %2721 = vmatprep.subr.bf16.mxu0 %v5469_v8  ;;  %2762 = vmatprep.subr.bf16.mxu1 %v5471_v9 }
 0xe1d   :  { %2722 = vmatpush1.bf16.msra.mxu0 %v5479_v50  ;;  %2763 = vmatpush1.bf16.msra.mxu1 %v5481_v13 }
 0xe1e   :  { %2723 = vmatprep.subr.bf16.mxu0 %v5483_v21  ;;  %2764 = vmatprep.subr.bf16.mxu1 %v5485_v30 }
 0xe21   :  { %2724 = vmatpush1.bf16.msra.mxu0 %v5491_v33  ;;  %2765 = vmatpush1.bf16.msra.mxu1 %v5493_v27 }
 0xe22   :  { %2725 = vmatprep.subr.bf16.mxu0 %v5497_v31  ;;  %2766 = vmatprep.subr.bf16.mxu1 %v5499_v11 }
 0xe25   :  { %2726 = vmatpush1.bf16.msra.mxu0 %v5507_v35  ;;  %2767 = vmatpush1.bf16.msra.mxu1 %v5509_v48 }
 0xe26   :  { %2727 = vmatprep.subr.bf16.mxu0 %v5511_v49  ;;  %2768 = vmatprep.subr.bf16.mxu1 %v5513_v37 }
 0xe29   :  { %2728 = vmatpush1.bf16.msra.mxu0 %v5519_v3  ;;  %2769 = vmatpush1.bf16.msra.mxu1 %v5521_v51 }
 0xe2a   :  { %2729 = vmatprep.subr.bf16.mxu0 %v5525_v40  ;;  %2770 = vmatprep.subr.bf16.mxu1 %v5527_v15 }
 0xe2d   :  { %2730 = vmatpush1.bf16.msra.mxu0 %v5535_v42  ;;  %2771 = vmatpush1.bf16.msra.mxu1 %v5537_v52 }
 0xe2e   :  { %2731 = vmatprep.subr.bf16.mxu0 %v5539_v57  ;;  %2772 = vmatprep.subr.bf16.mxu1 %v5541_v45 }
 0xe31   :  { %2732 = vmatpush1.bf16.msra.mxu0 %v5547_v17  ;;  %2773 = vmatpush1.bf16.msra.mxu1 %v5549_v38 }
 0xe32   :  { %2832 = vmatprep.subr.bf16.mxu0 %v5443_v0  ;;  %2873 = vmatprep.subr.bf16.mxu1 %v5445_v1 }
 0xee7   :  { %v2636_v36 = vpop.f32.mrb[76].mxu0  ;;  %v2677_v22 = vpop.f32.mrb[76].mxu1 }
 0xee8   :  { %v2684_v18 = vadd.f32 %v2636_v36, %v5622_v63  ;;  %v2686_v25 = vadd.f32 %v2677_v22, %v5625_v12  ;;  %v2638_v32 = vpop.f32.mrb[77].mxu0  ;;  %v2679_v54 = vpop.f32.mrb[77].mxu1 }
 0xee9   :  { %v2685_v56 = vadd.f32 %v2638_v32, %v6154_v6  ;;  %v2687_v59 = vadd.f32 %v2679_v54, %v6155_v41  ;;  %v2640_v60 = vpop.f32.mrb[78].mxu0  ;;  %v2681_v2 = vpop.f32.mrb[78].mxu1  ;;  %v6156_v32 = vld [vmem:[#allocation52_spill] sm:$0xff]  ;;  %v6157_v6 = vld [vmem:[#allocation53_spill] sm:$0xff] }
 0xeea   :  { %v3745_v16 = vmul.f32 -1.442695, %v2684_v18  ;;  %v2641_v19 = vpop.f32.mrb[79].mxu0  ;;  %v2682_v46 = vpop.f32.mrb[79].mxu1  ;;  %v3747_v26 = vmul.f32 -1.442695, %v2686_v25 }
 0xeeb   :  { %v3746_v53 = vmul.f32 -1.442695, %v2685_v56  ;;  %v6158_v60 = vld [vmem:[#allocation54_spill] sm:$0xff] }
 0xeec   :  { %4215 = vpow2.f32 %v3745_v16  ;;  %v6159_v16 = vld [vmem:[#allocation55_spill] sm:$0xff] }
 0xeed   :  { %4217 = vpow2.f32 %v3746_v53 }
 0xeee   :  { %4219 = vtanh.f32 %v2687_v59 }
 0xeef   :  { %4221 = vpow2.f32 %v3747_v26 }
 0xef6   :  { %v4216_v28 = vpop.eup %4215 }
 0xef7   :  { %v2697_v34 = vadd.f32 1.0, %v4216_v28  ;;  %v4218_v63 = vpop.eup %4217 }
 0xef8   :  { %v2698_v12 = vadd.f32 1.0, %v4218_v63  ;;  %v4220_v5 = vpop.eup %4219 }
 0xef9   :  { %4223 = vrcp.f32 %v2697_v34  ;;  %v4222_v61 = vpop.eup %4221 }
 0xefa   :  { %4225 = vrcp.f32 %v2698_v12  ;;  %v2699_v39 = vadd.f32 1.0, %v4222_v61 }
 0xefc   :  { %4227 = vrcp.f32 %v2699_v39 }
 0xf03   :  { %v4224_v29 = vpop.eup %4223 }
 0xf04   :  { %v2708_v58 = vmul.f32 %v4224_v29, %v4220_v5  ;;  %v4226_v55 = vpop.eup %4225 }
 0xf05   :  { %v2707_v43 = vmul.f32 %v4226_v55, %v5728_v10 }
 0xf06   :  { %v4228_v62 = vpop.eup %4227 }
 0xf07   :  { %v5770_v14 = vadd.f32 %v2708_v58, %v2707_v43 }
 0xf09   :  { %4229 = vtanh.f32 %v5770_v14 }
 0xf13   :  { %v4230_v36 = vpop.eup %4229 }
 0xf14   :  { %v2711_v22 = vmul.f32 %v4230_v36, %v4228_v62 }
 0xf16   :  { %v2716_v18 = vpack.c.bf16 %v2711_v22, %v2711_v22 }
 0xf18   :  { %2750 = vmatmul.mubr.bf16.vlgmr.msra.gmra.mrb[80].mxu0 %v2716_v18  ;;  %2791 = vmatmul.mubr.bf16.vlgmr.msra.gmra.mrb[80].mxu1 %v2716_v18 }
 0xf19   :  { %2833 = vmatpush1.bf16.msra.mxu0 %v5451_v47  ;;  %2874 = vmatpush1.bf16.msra.mxu1 %v5453_v4 }
 0xf1a   :  { %2834 = vmatprep.subr.bf16.mxu0 %v5455_v24  ;;  %2875 = vmatprep.subr.bf16.mxu1 %v5457_v7 }
 0xf1b   :  { %2864 = vmatprep.mubr.bf16.mxu0 %v6103_v20  ;;  %2905 = vmatprep.mubr.bf16.mxu1 %v6103_v20 }
 0xf1d   :  { %2835 = vmatpush1.bf16.msra.mxu0 %v5463_v23  ;;  %2876 = vmatpush1.bf16.msra.mxu1 %v5465_v44 }
 0xf1e   :  { %2836 = vmatprep.subr.bf16.mxu0 %v5469_v8  ;;  %2877 = vmatprep.subr.bf16.mxu1 %v5471_v9 }
 0xf21   :  { %2837 = vmatpush1.bf16.msra.mxu0 %v5479_v50  ;;  %2878 = vmatpush1.bf16.msra.mxu1 %v5481_v13 }
 0xf22   :  { %2838 = vmatprep.subr.bf16.mxu0 %v5483_v21  ;;  %2879 = vmatprep.subr.bf16.mxu1 %v5485_v30 }
 0xf25   :  { %2839 = vmatpush1.bf16.msra.mxu0 %v5491_v33  ;;  %2880 = vmatpush1.bf16.msra.mxu1 %v5493_v27 }
 0xf26   :  { %2840 = vmatprep.subr.bf16.mxu0 %v5497_v31  ;;  %2881 = vmatprep.subr.bf16.mxu1 %v5499_v11 }
 0xf29   :  { %2841 = vmatpush1.bf16.msra.mxu0 %v5507_v35  ;;  %2882 = vmatpush1.bf16.msra.mxu1 %v5509_v48 }
 0xf2a   :  { %2842 = vmatprep.subr.bf16.mxu0 %v5511_v49  ;;  %2883 = vmatprep.subr.bf16.mxu1 %v5513_v37 }
 0xf2d   :  { %2843 = vmatpush1.bf16.msra.mxu0 %v5519_v3  ;;  %2884 = vmatpush1.bf16.msra.mxu1 %v5521_v51 }
 0xf2e   :  { %2844 = vmatprep.subr.bf16.mxu0 %v5525_v40  ;;  %2885 = vmatprep.subr.bf16.mxu1 %v5527_v15 }
 0xf31   :  { %2845 = vmatpush1.bf16.msra.mxu0 %v5535_v42  ;;  %2886 = vmatpush1.bf16.msra.mxu1 %v5537_v52 }
 0xf32   :  { %2846 = vmatprep.subr.bf16.mxu0 %v5539_v57  ;;  %2887 = vmatprep.subr.bf16.mxu1 %v5541_v45 }
 0xf35   :  { %2847 = vmatpush1.bf16.msra.mxu0 %v5547_v17  ;;  %2888 = vmatpush1.bf16.msra.mxu1 %v5549_v38 }
 0xf36   :  { %2947 = vmatprep.subr.bf16.mxu0 %v5443_v0  ;;  %2988 = vmatprep.subr.bf16.mxu1 %v5445_v1 }
 0xfeb   :  { %v2751_v10 = vpop.f32.mrb[80].mxu0  ;;  %v2792_v25 = vpop.f32.mrb[80].mxu1 }
 0xfec   :  { %v2799_v54 = vadd.f32 %v2751_v10, %v6156_v32  ;;  %v2801_v56 = vadd.f32 %v2792_v25, %v6157_v6  ;;  %v2753_v41 = vpop.f32.mrb[81].mxu0  ;;  %v2794_v59 = vpop.f32.mrb[81].mxu1 }
 0xfed   :  { %v2800_v2 = vadd.f32 %v2753_v41, %v6158_v60  ;;  %v2802_v19 = vadd.f32 %v2794_v59, %v6159_v16  ;;  %v2755_v46 = vpop.f32.mrb[82].mxu0  ;;  %v2796_v53 = vpop.f32.mrb[82].mxu1 }
 0xfee   :  { %v3748_v26 = vmul.f32 -1.442695, %v2799_v54  ;;  %v2756_v28 = vpop.f32.mrb[83].mxu0  ;;  %v2797_v34 = vpop.f32.mrb[83].mxu1  ;;  %v3750_v12 = vmul.f32 -1.442695, %v2801_v56 }
 0xfef   :  { %v3749_v63 = vmul.f32 -1.442695, %v2800_v2 }
 0xff0   :  { %4231 = vpow2.f32 %v3748_v26 }
 0xff1   :  { %4233 = vpow2.f32 %v3749_v63 }
 0xff2   :  { %4235 = vtanh.f32 %v2802_v19 }
 0xff3   :  { %4237 = vpow2.f32 %v3750_v12 }
 0xffa   :  { %v4232_v5 = vpop.eup %4231 }
 0xffb   :  { %v2812_v61 = vadd.f32 1.0, %v4232_v5  ;;  %v4234_v29 = vpop.eup %4233 }
 0xffc   :  { %v2813_v58 = vadd.f32 1.0, %v4234_v29  ;;  %v4236_v55 = vpop.eup %4235 }
 0xffd   :  { %4239 = vrcp.f32 %v2812_v61  ;;  %v4238_v39 = vpop.eup %4237 }
 0xffe   :  { %4241 = vrcp.f32 %v2813_v58  ;;  %v2814_v22 = vadd.f32 1.0, %v4238_v39 }
0x1000   :  { %4243 = vrcp.f32 %v2814_v22  ;;  %v5866_v22 = vld [vmem:[#allocation5 + $0x38] sm:$0xff] }
0x1007   :  { %v4240_v43 = vpop.eup %4239 }
0x1008   :  { %v2823_v62 = vmul.f32 %v4240_v43, %v4236_v55  ;;  %v4242_v36 = vpop.eup %4241  ;;  %v5857_v43 = vld [vmem:[#allocation5] sm:$0xff] }
0x1009   :  { %v2822_v18 = vmul.f32 %v4242_v36, %v5770_v14  ;;  %v5863_v36 = vld [vmem:[#allocation5 + $0x28] sm:$0xff] }
0x100a   :  { %v4244_v25 = vpop.eup %4243 }
0x100b   :  { %v5812_v10 = vadd.f32 %v2823_v62, %v2822_v18  ;;  %v5860_v62 = vld [vmem:[#allocation5 + $0x10] sm:$0xff]  ;;  %v5871_v18 = vld [vmem:[#allocation5 + $0x20] sm:$0xff] }
0x100d   :  { %4245 = vtanh.f32 %v5812_v10 }
0x1017   :  { %v4246_v32 = vpop.eup %4245 }
0x1018   :  { %v2826_v54 = vmul.f32 %v4246_v32, %v4244_v25  ;;  %v5877_v25 = vld [vmem:[#allocation5 + $0x48] sm:$0xff]  ;;  %v5880_v32 = vld [vmem:[#allocation5 + $0x58] sm:$0xff] }
0x101a   :  { %v2831_v6 = vpack.c.bf16 %v2826_v54, %v2826_v54  ;;  %v5883_v54 = vld [vmem:[#allocation5 + $0x40] sm:$0xff] }
0x101c   :  { %2865 = vmatmul.mubr.bf16.vlgmr.msra.gmra.mrb[84].mxu0 %v2831_v6  ;;  %2906 = vmatmul.mubr.bf16.vlgmr.msra.gmra.mrb[84].mxu1 %v2831_v6  ;;  %v5886_v6 = vld [vmem:[#allocation5 + $0x50] sm:$0xff] }
0x101d   :  { %2948 = vmatpush1.bf16.msra.mxu0 %v5451_v47  ;;  %2989 = vmatpush1.bf16.msra.mxu1 %v5453_v4 }
0x101e   :  { %2949 = vmatprep.subr.bf16.mxu0 %v5455_v24  ;;  %2990 = vmatprep.subr.bf16.mxu1 %v5457_v7  ;;  %v6160_v24 = vld [vmem:[#allocation56_spill] sm:$0xff] }
0x101f   :  { %2979 = vmatprep.mubr.bf16.mxu0 %v6103_v20  ;;  %3020 = vmatprep.mubr.bf16.mxu1 %v6103_v20 }
0x1021   :  { %2950 = vmatpush1.bf16.msra.mxu0 %v5463_v23  ;;  %2991 = vmatpush1.bf16.msra.mxu1 %v5465_v44  ;;  %v6161_v23 = vld [vmem:[#allocation57_spill] sm:$0xff] }
0x1022   :  { %2951 = vmatprep.subr.bf16.mxu0 %v5469_v8  ;;  %2992 = vmatprep.subr.bf16.mxu1 %v5471_v9 }
0x1025   :  { %2952 = vmatpush1.bf16.msra.mxu0 %v5479_v50  ;;  %2993 = vmatpush1.bf16.msra.mxu1 %v5481_v13  ;;  %v6162_v50 = vld [vmem:[#allocation58_spill] sm:$0xff] }
0x1026   :  { %2953 = vmatprep.subr.bf16.mxu0 %v5483_v21  ;;  %2994 = vmatprep.subr.bf16.mxu1 %v5485_v30  ;;  %v6163_v21 = vld [vmem:[#allocation59_spill] sm:$0xff] }
0x1029   :  { %2954 = vmatpush1.bf16.msra.mxu0 %v5491_v33  ;;  %2995 = vmatpush1.bf16.msra.mxu1 %v5493_v27 }
0x102a   :  { %2955 = vmatprep.subr.bf16.mxu0 %v5497_v31  ;;  %2996 = vmatprep.subr.bf16.mxu1 %v5499_v11 }
0x102d   :  { %2956 = vmatpush1.bf16.msra.mxu0 %v5507_v35  ;;  %2997 = vmatpush1.bf16.msra.mxu1 %v5509_v48 }
0x102e   :  { %2957 = vmatprep.subr.bf16.mxu0 %v5511_v49  ;;  %2998 = vmatprep.subr.bf16.mxu1 %v5513_v37 }
0x1031   :  { %2958 = vmatpush1.bf16.msra.mxu0 %v5519_v3  ;;  %2999 = vmatpush1.bf16.msra.mxu1 %v5521_v51 }
0x1032   :  { %2959 = vmatprep.subr.bf16.mxu0 %v5525_v40  ;;  %3000 = vmatprep.subr.bf16.mxu1 %v5527_v15 }
0x1035   :  { %2960 = vmatpush1.bf16.msra.mxu0 %v5535_v42  ;;  %3001 = vmatpush1.bf16.msra.mxu1 %v5537_v52 }
0x1036   :  { %2961 = vmatprep.subr.bf16.mxu0 %v5539_v57  ;;  %3002 = vmatprep.subr.bf16.mxu1 %v5541_v45 }
0x1039   :  { %2962 = vmatpush1.bf16.msra.mxu0 %v5547_v17  ;;  %3003 = vmatpush1.bf16.msra.mxu1 %v5549_v38 }
0x103a   :  { %3062 = vmatprep.subr.bf16.mxu0 %v5443_v0  ;;  %3103 = vmatprep.subr.bf16.mxu1 %v5445_v1 }
0x10ef   :  { %v2866_v47 = vpop.f32.mrb[84].mxu0  ;;  %v2907_v4 = vpop.f32.mrb[84].mxu1 }
0x10f0   :  { %v2914_v7 = vadd.f32 %v2866_v47, %v6160_v24  ;;  %v2916_v44 = vadd.f32 %v2907_v4, %v6161_v23  ;;  %v2868_v8 = vpop.f32.mrb[85].mxu0  ;;  %v2909_v9 = vpop.f32.mrb[85].mxu1  ;;  %v5889_v47 = vld [vmem:[#allocation5 + $0x68] sm:$0xff]  ;;  %v5892_v4 = vld [vmem:[#allocation5 + $0x78] sm:$0xff] }
0x10f1   :  { %v2915_v13 = vadd.f32 %v2868_v8, %v6162_v50  ;;  %v2917_v30 = vadd.f32 %v2909_v9, %v6163_v21  ;;  %v2870_v14 = vpop.f32.mrb[86].mxu0  ;;  %v2911_v56 = vpop.f32.mrb[86].mxu1 }
0x10f2   :  { %v3751_v41 = vmul.f32 -1.442695, %v2914_v7  ;;  %v2871_v59 = vpop.f32.mrb[87].mxu0  ;;  %v2912_v60 = vpop.f32.mrb[87].mxu1  ;;  %v3753_v1 = vmul.f32 -1.442695, %v2916_v44 }
0x10f3   :  { %v3752_v0 = vmul.f32 -1.442695, %v2915_v13 }
0x10f4   :  { %4247 = vpow2.f32 %v3751_v41 }
0x10f5   :  { %4249 = vpow2.f32 %v3752_v0 }
0x10f6   :  { %4251 = vtanh.f32 %v2917_v30 }
0x10f7   :  { %4253 = vpow2.f32 %v3753_v1 }
0x10fe   :  { %v4248_v2 = vpop.eup %4247 }
0x10ff   :  { %v2927_v16 = vadd.f32 1.0, %v4248_v2  ;;  %v4250_v19 = vpop.eup %4249 }
0x1100   :  { %v2928_v46 = vadd.f32 1.0, %v4250_v19  ;;  %v4252_v53 = vpop.eup %4251  ;;  %v4325_v19 = vld [vmem:[#allocation5 + $0x60] sm:$0xff] }
0x1101   :  { %4255 = vrcp.f32 %v2927_v16  ;;  %v4254_v26 = vpop.eup %4253 }
0x1102   :  { %4257 = vrcp.f32 %v2928_v46  ;;  %v2929_v12 = vadd.f32 1.0, %v4254_v26  ;;  %v4326_v46 = vld [vmem:[#allocation5 + $0x70] sm:$0xff]  ;;  %v4329_v26 = vld [vmem:[#allocation5 + $0x80] sm:$0xff] }
0x1104   :  { %4259 = vrcp.f32 %v2929_v12  ;;  %v4333_v12 = vld [vmem:[#allocation5 + $0xa0] sm:$0xff] }
0x110b   :  { %v4256_v28 = vpop.eup %4255 }
0x110c   :  { %v2938_v34 = vmul.f32 %v4256_v28, %v4252_v53  ;;  %v4258_v63 = vpop.eup %4257  ;;  %v4328_v53 = vld [vmem:[#allocation5 + $0x98] sm:$0xff]  ;;  %v4330_v28 = vld [vmem:[#allocation5 + $0x90] sm:$0xff] }
0x110d   :  { %v2937_v5 = vmul.f32 %v4258_v63, %v5812_v10  ;;  %v5874_v10 = vld [vmem:[#allocation5 + $0x30] sm:$0xff]  ;;  %v4332_v63 = vld [vmem:[#allocation5 + $0xb8] sm:$0xff] }
0x110e   :  { %v4260_v29 = vpop.eup %4259 }
0x110f   :  { %v5854_v61 = vadd.f32 %v2938_v34, %v2937_v5  ;;  %v4331_v34 = vld [vmem:[#allocation5 + $0xa8] sm:$0xff]  ;;  %v4334_v5 = vld [vmem:[#allocation5 + $0xb0] sm:$0xff] }
0x1111   :  { %4261 = vtanh.f32 %v5854_v61 }
0x111b   :  { %v4262_v58 = vpop.eup %4261 }
0x111c   :  { %v2941_v55 = vmul.f32 %v4262_v58, %v4260_v29  ;;  %v4336_v29 = vld [vmem:[#allocation5 + $0xd8] sm:$0xff]  ;;  %v4337_v58 = vld [vmem:[#allocation5 + $0xc0] sm:$0xff] }
0x111e   :  { %v2946_v39 = vpack.c.bf16 %v2941_v55, %v2941_v55  ;;  %v4338_v55 = vld [vmem:[#allocation5 + $0xd0] sm:$0xff] }
0x1120   :  { %2980 = vmatmul.mubr.bf16.vlgmr.msra.gmra.mrb[88].mxu0 %v2946_v39  ;;  %3021 = vmatmul.mubr.bf16.vlgmr.msra.gmra.mrb[88].mxu1 %v2946_v39  ;;  %v4339_v39 = vld [vmem:[#allocation5 + $0xe8] sm:$0xff] }
0x1121   :  { %3063 = vmatpush1.bf16.msra.mxu0 %v5857_v43  ;;  %3104 = vmatpush1.bf16.msra.mxu1 %v5860_v62 }
0x1122   :  { %3064 = vmatprep.subr.bf16.mxu0 %v5863_v36  ;;  %3105 = vmatprep.subr.bf16.mxu1 %v5866_v22 }
0x1123   :  { %3094 = vmatprep.mubr.bf16.mxu0 %v6103_v20  ;;  %3135 = vmatprep.mubr.bf16.mxu1 %v6103_v20 }
0x1125   :  { %3065 = vmatpush1.bf16.msra.mxu0 %v5871_v18  ;;  %3106 = vmatpush1.bf16.msra.mxu1 %v5874_v10 }
0x1126   :  { %3066 = vmatprep.subr.bf16.mxu0 %v5877_v25  ;;  %3107 = vmatprep.subr.bf16.mxu1 %v5880_v32 }
0x1129   :  { %3067 = vmatpush1.bf16.msra.mxu0 %v5883_v54  ;;  %3108 = vmatpush1.bf16.msra.mxu1 %v5886_v6 }
0x112a   :  { %3068 = vmatprep.subr.bf16.mxu0 %v5889_v47  ;;  %3109 = vmatprep.subr.bf16.mxu1 %v5892_v4 }
0x112d   :  { %3069 = vmatpush1.bf16.msra.mxu0 %v5491_v33  ;;  %3110 = vmatpush1.bf16.msra.mxu1 %v5493_v27  ;;  %v4323_v33 = vld [vmem:[#allocation5 + $0x8] sm:$0xff]  ;;  %v4324_v27 = vld [vmem:[#allocation5 + $0x18] sm:$0xff] }
0x112e   :  { %3070 = vmatprep.subr.bf16.mxu0 %v5497_v31  ;;  %3111 = vmatprep.subr.bf16.mxu1 %v5499_v11 }
0x1131   :  { %3071 = vmatpush1.bf16.msra.mxu0 %v5507_v35  ;;  %3112 = vmatpush1.bf16.msra.mxu1 %v5509_v48  ;;  %v6164_v35 = vld [vmem:[#allocation60_spill] sm:$0xff] }
0x1132   :  { %3072 = vmatprep.subr.bf16.mxu0 %v5511_v49  ;;  %3113 = vmatprep.subr.bf16.mxu1 %v5513_v37  ;;  %v6165_v49 = vld [vmem:[#allocation61_spill] sm:$0xff] }
0x1135   :  { %3073 = vmatpush1.bf16.msra.mxu0 %v5519_v3  ;;  %3114 = vmatpush1.bf16.msra.mxu1 %v5521_v51 }
0x1136   :  { %3074 = vmatprep.subr.bf16.mxu0 %v5525_v40  ;;  %3115 = vmatprep.subr.bf16.mxu1 %v5527_v15  ;;  %v6166_v40 = vld [vmem:[#allocation62_spill] sm:$0xff] }
0x1139   :  { %3075 = vmatpush1.bf16.msra.mxu0 %v5535_v42  ;;  %3116 = vmatpush1.bf16.msra.mxu1 %v5537_v52  ;;  %v6167_v42 = vld [vmem:[#allocation63_spill] sm:$0xff] }
0x113a   :  { %3076 = vmatprep.subr.bf16.mxu0 %v5539_v57  ;;  %3117 = vmatprep.subr.bf16.mxu1 %v5541_v45 }
0x113d   :  { %3077 = vmatpush1.bf16.msra.mxu0 %v5547_v17  ;;  %3118 = vmatpush1.bf16.msra.mxu1 %v5549_v38 }
0x113e   :  { %3177 = vmatprep.subr.bf16.mxu0 %v4323_v33  ;;  %3218 = vmatprep.subr.bf16.mxu1 %v4324_v27  ;;  %v6171_v27 = vld [vmem:[#allocation67_spill] sm:$0xff] }
0x11f3   :  { %v2981_v31 = vpop.f32.mrb[88].mxu0  ;;  %v3022_v11 = vpop.f32.mrb[88].mxu1 }
0x11f4   :  { %v3029_v48 = vadd.f32 %v2981_v31, %v6164_v35  ;;  %v3031_v37 = vadd.f32 %v3022_v11, %v6165_v49  ;;  %v2983_v3 = vpop.f32.mrb[89].mxu0  ;;  %v3024_v51 = vpop.f32.mrb[89].mxu1 }
0x11f5   :  { %v3030_v15 = vadd.f32 %v2983_v3, %v6166_v40  ;;  %v3032_v52 = vadd.f32 %v3024_v51, %v6167_v42  ;;  %v2985_v57 = vpop.f32.mrb[90].mxu0  ;;  %v3026_v45 = vpop.f32.mrb[90].mxu1 }
0x11f6   :  { %v3754_v17 = vmul.f32 -1.442695, %v3029_v48  ;;  %v2986_v38 = vpop.f32.mrb[91].mxu0  ;;  %v3027_v24 = vpop.f32.mrb[91].mxu1  ;;  %v3756_v23 = vmul.f32 -1.442695, %v3031_v37 }
0x11f7   :  { %v3755_v7 = vmul.f32 -1.442695, %v3030_v15 }
0x11f8   :  { %4263 = vpow2.f32 %v3754_v17 }
0x11f9   :  { %4265 = vpow2.f32 %v3755_v7 }
0x11fa   :  { %4267 = vtanh.f32 %v3032_v52 }
0x11fb   :  { %4269 = vpow2.f32 %v3756_v23 }
0x1202   :  { %v4264_v44 = vpop.eup %4263 }
0x1203   :  { %v3042_v8 = vadd.f32 1.0, %v4264_v44  ;;  %v4266_v9 = vpop.eup %4265 }
0x1204   :  { %v3043_v50 = vadd.f32 1.0, %v4266_v9  ;;  %v4268_v13 = vpop.eup %4267 }
0x1205   :  { %4271 = vrcp.f32 %v3042_v8  ;;  %v4270_v21 = vpop.eup %4269 }
0x1206   :  { %4273 = vrcp.f32 %v3043_v50  ;;  %v3044_v41 = vadd.f32 1.0, %v4270_v21 }
0x1208   :  { %4275 = vrcp.f32 %v3044_v41  ;;  %v6173_v41 = vld [vmem:[#allocation46_spill] sm:$0xff] }
0x120f   :  { %v4272_v30 = vpop.eup %4271 }
0x1210   :  { %v3053_v14 = vmul.f32 %v4272_v30, %v4268_v13  ;;  %v4274_v56 = vpop.eup %4273 }
0x1211   :  { %v3052_v59 = vmul.f32 %v4274_v56, %v5854_v61  ;;  %v4335_v61 = vld [vmem:[#allocation5 + $0xc8] sm:$0xff] }
0x1212   :  { %v4276_v0 = vpop.eup %4275 }
0x1213   :  { %v5918_v60 = vadd.f32 %v3053_v14, %v3052_v59  ;;  %v6172_v14 = vld [vmem:[#allocation68_spill] sm:$0xff] }
0x1215   :  { %4277 = vtanh.f32 %v5918_v60 }
0x121f   :  { %v4278_v1 = vpop.eup %4277 }
0x1220   :  { %v3056_v2 = vmul.f32 %v4278_v1, %v4276_v0 }
0x1222   :  { %v3061_v16 = vpack.c.bf16 %v3056_v2, %v3056_v2  ;;  %v6174_v2 = vld [vmem:[#allocation69_spill] sm:$0xff] }
0x1224   :  { %3095 = vmatmul.mubr.bf16.vlgmr.msra.gmra.mrb[92].mxu0 %v3061_v16  ;;  %3136 = vmatmul.mubr.bf16.vlgmr.msra.gmra.mrb[92].mxu1 %v3061_v16 }
0x1225   :  { %3178 = vmatpush1.bf16.msra.mxu0 %v5857_v43  ;;  %3219 = vmatpush1.bf16.msra.mxu1 %v5860_v62  ;;  %v4340_v43 = vld [vmem:[#allocation5 + $0xf8] sm:$0xff]  ;;  %v4341_v62 = vld [vmem:[#allocation5 + $0xe0] sm:$0xff] }
0x1226   :  { %3179 = vmatprep.subr.bf16.mxu0 %v5863_v36  ;;  %3220 = vmatprep.subr.bf16.mxu1 %v5866_v22  ;;  %v4342_v36 = vld [vmem:[#allocation5 + $0xf0] sm:$0xff] }
0x1227   :  { %3209 = vmatprep.mubr.bf16.mxu0 %v6103_v20  ;;  %3250 = vmatprep.mubr.bf16.mxu1 %v6103_v20  ;;  %v4327_v20 = vld [vmem:[#allocation5 + $0x88] sm:$0xff] }
0x1229   :  { %3180 = vmatpush1.bf16.msra.mxu0 %v5871_v18  ;;  %3221 = vmatpush1.bf16.msra.mxu1 %v5874_v10  ;;  %v6168_v10 = vld [vmem:[#allocation64_spill] sm:$0xff] }
0x122a   :  { %3181 = vmatprep.subr.bf16.mxu0 %v5877_v25  ;;  %3222 = vmatprep.subr.bf16.mxu1 %v5880_v32  ;;  %v6169_v32 = vld [vmem:[#allocation65_spill] sm:$0xff] }
0x122d   :  { %3182 = vmatpush1.bf16.msra.mxu0 %v5883_v54  ;;  %3223 = vmatpush1.bf16.msra.mxu1 %v5886_v6 }
0x122e   :  { %3183 = vmatprep.subr.bf16.mxu0 %v5889_v47  ;;  %3224 = vmatprep.subr.bf16.mxu1 %v5892_v4  ;;  %v6170_v4 = vld [vmem:[#allocation66_spill] sm:$0xff] }
0x1231   :  { %3184 = vmatpush1.bf16.msra.mxu0 %v4325_v19  ;;  %3225 = vmatpush1.bf16.msra.mxu1 %v4326_v46 }
0x1232   :  { %3185 = vmatprep.subr.bf16.mxu0 %v4327_v20  ;;  %3226 = vmatprep.subr.bf16.mxu1 %v4328_v53 }
0x1235   :  { %3186 = vmatpush1.bf16.msra.mxu0 %v4329_v26  ;;  %3227 = vmatpush1.bf16.msra.mxu1 %v4330_v28 }
0x1236   :  { %3187 = vmatprep.subr.bf16.mxu0 %v4331_v34  ;;  %3228 = vmatprep.subr.bf16.mxu1 %v4332_v63 }
0x1239   :  { %3188 = vmatpush1.bf16.msra.mxu0 %v4333_v12  ;;  %3229 = vmatpush1.bf16.msra.mxu1 %v4334_v5 }
0x123a   :  { %3189 = vmatprep.subr.bf16.mxu0 %v4335_v61  ;;  %3230 = vmatprep.subr.bf16.mxu1 %v4336_v29 }
0x123d   :  { %3190 = vmatpush1.bf16.msra.mxu0 %v4337_v58  ;;  %3231 = vmatpush1.bf16.msra.mxu1 %v4338_v55 }
0x123e   :  { %3191 = vmatprep.subr.bf16.mxu0 %v4339_v39  ;;  %3232 = vmatprep.subr.bf16.mxu1 %v4340_v43 }
0x1241   :  { %3192 = vmatpush1.bf16.msra.mxu0 %v4341_v62  ;;  %3233 = vmatpush1.bf16.msra.mxu1 %v4342_v36 }
0x12f7   :  { %v3096_v22 = vpop.f32.mrb[92].mxu0  ;;  %v3137_v18 = vpop.f32.mrb[92].mxu1 }
0x12f8   :  { %v3144_v25 = vadd.f32 %v3096_v22, %v6168_v10  ;;  %v3146_v54 = vadd.f32 %v3137_v18, %v6169_v32  ;;  %v3098_v6 = vpop.f32.mrb[93].mxu0  ;;  %v3139_v47 = vpop.f32.mrb[93].mxu1 }
0x12f9   :  { %v3145_v33 = vadd.f32 %v3098_v6, %v6170_v4  ;;  %v3147_v31 = vadd.f32 %v3139_v47, %v6171_v27  ;;  %v3100_v11 = vpop.f32.mrb[94].mxu0  ;;  %v3141_v35 = vpop.f32.mrb[94].mxu1 }
0x12fa   :  { %v3757_v48 = vmul.f32 -1.442695, %v3144_v25  ;;  %v3101_v49 = vpop.f32.mrb[95].mxu0  ;;  %v3142_v37 = vpop.f32.mrb[95].mxu1  ;;  %v3759_v51 = vmul.f32 -1.442695, %v3146_v54 }
0x12fb   :  { %v3758_v3 = vmul.f32 -1.442695, %v3145_v33 }
0x12fc   :  { %4279 = vpow2.f32 %v3757_v48 }
0x12fd   :  { %4281 = vpow2.f32 %v3758_v3 }
0x12fe   :  { %4283 = vtanh.f32 %v3147_v31 }
0x12ff   :  { %4285 = vpow2.f32 %v3759_v51 }
0x1306   :  { %v4280_v40 = vpop.eup %4279 }
0x1307   :  { %v3157_v15 = vadd.f32 1.0, %v4280_v40  ;;  %v4282_v42 = vpop.eup %4281 }
0x1308   :  { %v3158_v52 = vadd.f32 1.0, %v4282_v42  ;;  %v4284_v57 = vpop.eup %4283 }
0x1309   :  { %4287 = vrcp.f32 %v3157_v15  ;;  %v4286_v45 = vpop.eup %4285 }
0x130a   :  { %4289 = vrcp.f32 %v3158_v52  ;;  %v3159_v7 = vadd.f32 1.0, %v4286_v45 }
0x130c   :  { %4291 = vrcp.f32 %v3159_v7 }
0x1313   :  { %v4288_v17 = vpop.eup %4287 }
0x1314   :  { %v3168_v38 = vmul.f32 %v4288_v17, %v4284_v57  ;;  %v4290_v24 = vpop.eup %4289 }
0x1315   :  { %v3167_v23 = vmul.f32 %v4290_v24, %v5918_v60  ;;  %v6175_v60 = vld [vmem:[#allocation70_spill] sm:$0xff] }
0x1316   :  { %v4292_v8 = vpop.eup %4291 }
0x1317   :  { %v3169_v44 = vadd.f32 %v3168_v38, %v3167_v23 }
0x1319   :  { %4293 = vtanh.f32 %v3169_v44 }
0x1323   :  { %v4294_v9 = vpop.eup %4293 }
0x1324   :  { %v3171_v50 = vmul.f32 %v4294_v9, %v4292_v8 }
0x1326   :  { %v3176_v13 = vpack.c.bf16 %v3171_v50, %v3171_v50 }
0x1328   :  { %3210 = vmatmul.mubr.bf16.vlgmr.msra.gmra.mrb[96].mxu0 %v3176_v13  ;;  %3251 = vmatmul.mubr.bf16.vlgmr.msra.gmra.mrb[96].mxu1 %v3176_v13 }
0x13fb   :  { %v3211_v21 = vpop.f32.mrb[96].mxu0  ;;  %v3252_v30 = vpop.f32.mrb[96].mxu1 }
0x13fc   :  { %v3259_v56 = vadd.f32 %v3211_v21, %v6172_v14  ;;  %v3261_v59 = vadd.f32 %v3252_v30, %v6173_v41  ;;  %v3213_v0 = vpop.f32.mrb[97].mxu0  ;;  %v3254_v1 = vpop.f32.mrb[97].mxu1 }
0x13fd   :  { %v3260_v16 = vadd.f32 %v3213_v0, %v6174_v2  ;;  %v3262_v19 = vadd.f32 %v3254_v1, %v6175_v60  ;;  %v3215_v46 = vpop.f32.mrb[98].mxu0  ;;  %v3256_v20 = vpop.f32.mrb[98].mxu1 }
0x13fe   :  { %v3760_v53 = vmul.f32 -1.442695, %v3259_v56  ;;  %v3216_v26 = vpop.f32.mrb[99].mxu0  ;;  %v3257_v28 = vpop.f32.mrb[99].mxu1  ;;  %v3762_v63 = vmul.f32 -1.442695, %v3261_v59 }
0x13ff   :  { %v3761_v34 = vmul.f32 -1.442695, %v3260_v16 }
0x1400   :  { %4295 = vpow2.f32 %v3760_v53 }
0x1401   :  { %4297 = vpow2.f32 %v3761_v34 }
0x1402   :  { %4299 = vtanh.f32 %v3262_v19 }
0x1403   :  { %4301 = vpow2.f32 %v3762_v63 }
0x140a   :  { %v4296_v12 = vpop.eup %4295 }
0x140b   :  { %v3272_v5 = vadd.f32 1.0, %v4296_v12  ;;  %v4298_v61 = vpop.eup %4297 }
0x140c   :  { %v3273_v29 = vadd.f32 1.0, %v4298_v61  ;;  %v4300_v58 = vpop.eup %4299 }
0x140d   :  { %4303 = vrcp.f32 %v3272_v5  ;;  %v4302_v55 = vpop.eup %4301 }
0x140e   :  { %4305 = vrcp.f32 %v3273_v29  ;;  %v3274_v36 = vadd.f32 1.0, %v4302_v55 }
0x1410   :  { %4307 = vrcp.f32 %v3274_v36 }
0x1417   :  { %v4304_v39 = vpop.eup %4303 }
0x1418   :  { %v3283_v43 = vmul.f32 %v4304_v39, %v4300_v58  ;;  %v4306_v62 = vpop.eup %4305 }
0x1419   :  { %v3282_v22 = vmul.f32 %v4306_v62, %v3169_v44 }
0x141a   :  { %v4308_v10 = vpop.eup %4307 }
0x141b   :  { %v3284_v18 = vadd.f32 %v3283_v43, %v3282_v22 }
0x141d   :  { %4309 = vtanh.f32 %v3284_v18 }
0x1427   :  { %v5944_v25 = vpop.eup %4309 }
0x1428   :  { %v5947_v32 = vmul.f32 %v5944_v25, %v4308_v10 }
0x1429   :  { %4517 = dma.done.wait [#allocation12 + $0x4], 4096 }
0x142a   :  { %4518 = vsyncadd [#allocation12 + $0x4], 4294963200  ;;  %v6176_v54 = vmov 0.0   ;;  %v3304_v6 = vld [vmem:[#allocation6 + $0x40] sm:$0xff]  ;;  %v3305_v4 = vld [vmem:[#allocation6 + $0x48] sm:$0xff]  ;;  %v3444_v60 = vpack.c.bf16 %v5944_v25, %v5944_v25 }
0x142b   :  { %3872 = vmatprep.subr.bf16.mxu0 %v6176_v54  ;;  %3892 = vmatprep.subr.bf16.mxu1 %v6176_v54  ;;  %v3294_v47 = vld [vmem:[#allocation6] sm:$0xff]  ;;  %v3295_v33 = vld [vmem:[#allocation6 + $0x8] sm:$0xff]  ;;  %v3306_v27 = vld [vmem:[#allocation6 + $0x50] sm:$0xff] }
0x142c   :  { %3888 = vmatprep.mubr.msk.bf16.mxu0 %vm4548_vm2, %v6176_v54  ;;  %3908 = vmatprep.mubr.msk.bf16.mxu1 %vm4548_vm2, %v6176_v54  ;;  %v3296_v31 = vld [vmem:[#allocation6 + $0x10] sm:$0xff]  ;;  %v3307_v11 = vld [vmem:[#allocation6 + $0x58] sm:$0xff]  ;;  %v3308_v48 = vld [vmem:[#allocation6 + $0x60] sm:$0xff] }
0x142d   :  { %3873 = vmatpush3.bf16.msra.mxu0 %v3304_v6  ;;  %3893 = vmatpush3.bf16.msra.mxu1 %v3294_v47  ;;  %v3297_v35 = vld [vmem:[#allocation6 + $0x18] sm:$0xff]  ;;  %v3298_v49 = vld [vmem:[#allocation6 + $0x20] sm:$0xff]  ;;  %v3309_v3 = vld [vmem:[#allocation6 + $0x68] sm:$0xff] }
0x142e   :  { %3874 = vmatprep.subr.bf16.mxu0 %v6176_v54  ;;  %3894 = vmatprep.subr.bf16.mxu1 %v6176_v54  ;;  %v6177_v37 = vld [vmem:[#allocation49_spill] sm:$0xff]  ;;  %v3299_v51 = vld [vmem:[#allocation6 + $0x28] sm:$0xff]  ;;  %v3310_v40 = vld [vmem:[#allocation6 + $0x70] sm:$0xff] }
0x142f   :  { %4343 = vtanh.f32 %v6177_v37  ;;  %v3300_v15 = vld [vmem:[#allocation6 + $0x30] sm:$0xff]  ;;  %v3311_v52 = vld [vmem:[#allocation6 + $0x78] sm:$0xff]  ;;  %v3395_v24 = vld [vmem:[#allocation6 + $0x80] sm:$0xff] }
0x1430   :  { %v3301_v57 = vld [vmem:[#allocation6 + $0x38] sm:$0xff]  ;;  %v3446_v7 = vld [vmem:[#allocation6 + $0xc0] sm:$0xff]  ;;  %v3396_v23 = vld [vmem:[#allocation6 + $0x88] sm:$0xff]  ;;  %4345 = vtanh.f32 %v5947_v32 }
0x1431   :  { %3875 = vmatpush3.bf16.msra.mxu0 %v3305_v4  ;;  %3895 = vmatpush3.bf16.msra.mxu1 %v3295_v33  ;;  %v6178_v45 = vld [vmem:[#allocation48_spill] sm:$0xff]  ;;  %v3447_v44 = vld [vmem:[#allocation6 + $0xc8] sm:$0xff]  ;;  %v3397_v8 = vld [vmem:[#allocation6 + $0x90] sm:$0xff] }
0x1432   :  { %3876 = vmatprep.subr.bf16.mxu0 %v6176_v54  ;;  %3896 = vmatprep.subr.bf16.mxu1 %v6176_v54  ;;  %v3302_v17 = vpack.c.bf16 %v6178_v45, %v6178_v45  ;;  %v3448_v9 = vld [vmem:[#allocation6 + $0xd0] sm:$0xff]  ;;  %v3398_v50 = vld [vmem:[#allocation6 + $0x98] sm:$0xff]  ;;  %v3399_v21 = vld [vmem:[#allocation6 + $0xa0] sm:$0xff] }
0x1433   :  { %v3449_v13 = vld [vmem:[#allocation6 + $0xd8] sm:$0xff]  ;;  %v3450_v30 = vld [vmem:[#allocation6 + $0xe0] sm:$0xff]  ;;  %v3400_v14 = vld [vmem:[#allocation6 + $0xa8] sm:$0xff] }
0x1434   :  { %v3451_v56 = vld [vmem:[#allocation6 + $0xe8] sm:$0xff]  ;;  %v3401_v41 = vld [vmem:[#allocation6 + $0xb0] sm:$0xff]  ;;  %v3402_v1 = vld [vmem:[#allocation6 + $0xb8] sm:$0xff] }
0x1435   :  { %3877 = vmatpush3.bf16.msra.mxu0 %v3306_v27  ;;  %3897 = vmatpush3.bf16.msra.mxu1 %v3296_v31  ;;  %v3452_v59 = vld [vmem:[#allocation6 + $0xf0] sm:$0xff]  ;;  %v3453_v2 = vld [vmem:[#allocation6 + $0xf8] sm:$0xff]  ;;  %v3763_v39 = vld [vmem:[%s6050_s13] ss:$0 sm:$0xff] }
0x1436   :  { %3878 = vmatprep.subr.bf16.mxu0 %v6176_v54  ;;  %3898 = vmatprep.subr.bf16.mxu1 %v6176_v54  ;;  %v6179_v25 = vld [vmem:[#allocation47_spill] sm:$0xff] }
0x1439   :  { %3879 = vmatpush3.bf16.msra.mxu0 %v3307_v11  ;;  %3899 = vmatpush3.bf16.msra.mxu1 %v3297_v35  ;;  %v4344_v42 = vpop.eup %4343 }
0x143a   :  { %3880 = vmatprep.subr.bf16.mxu0 %v6176_v54  ;;  %3900 = vmatprep.subr.bf16.mxu1 %v6176_v54  ;;  %v3293_v38 = vpack.c.bf16 %v4344_v42, %v4344_v42  ;;  %v4346_v0 = vpop.eup %4345 }
0x143b   :  { %v3393_v16 = vpack.c.bf16 %v4346_v0, %v4346_v0 }
0x143d   :  { %3881 = vmatpush3.bf16.msra.mxu0 %v3308_v48  ;;  %3901 = vmatpush3.bf16.msra.mxu1 %v3298_v49 }
0x143e   :  { %3882 = vmatprep.subr.bf16.mxu0 %v6176_v54  ;;  %3902 = vmatprep.subr.bf16.mxu1 %v6176_v54 }
0x1441   :  { %3883 = vmatpush3.bf16.msra.mxu0 %v3309_v3  ;;  %3903 = vmatpush3.bf16.msra.mxu1 %v3299_v51 }
0x1442   :  { %3884 = vmatprep.subr.bf16.mxu0 %v6176_v54  ;;  %3904 = vmatprep.subr.bf16.mxu1 %v6176_v54 }
0x1445   :  { %3885 = vmatpush3.bf16.msra.mxu0 %v3310_v40  ;;  %3905 = vmatpush3.bf16.msra.mxu1 %v3300_v15 }
0x1446   :  { %3886 = vmatprep.subr.bf16.mxu0 %v6176_v54  ;;  %3906 = vmatprep.subr.bf16.mxu1 %v6176_v54 }
0x1449   :  { %3887 = vmatpush3.bf16.msra.mxu0 %v3311_v52  ;;  %3907 = vmatpush3.bf16.msra.mxu1 %v3301_v57 }
0x144a   :  { %3912 = vmatprep.subr.bf16.mxu0 %v6176_v54  ;;  %3932 = vmatprep.subr.bf16.mxu1 %v6176_v54 }
0x144c   :  { %3889 = vmatmul.mubr.bf16.vlgmr.msra.gmra.mrb[100].mxu0 %v3302_v17  ;;  %3909 = vmatmul.mubr.bf16.vlgmr.msra.gmra.mrb[100].mxu1 %v3293_v38 }
0x144d   :  { %3913 = vmatpush3.bf16.msra.mxu0 %v3395_v24  ;;  %3933 = vmatpush3.bf16.msra.mxu1 %v3446_v7 }
0x144e   :  { %3914 = vmatprep.subr.bf16.mxu0 %v6176_v54  ;;  %3934 = vmatprep.subr.bf16.mxu1 %v6176_v54 }
0x144f   :  { %3928 = vmatprep.mubr.msk.bf16.mxu0 %vm4548_vm2, %v6176_v54  ;;  %3948 = vmatprep.mubr.msk.bf16.mxu1 %vm4548_vm2, %v6176_v54 }
0x1451   :  { %3915 = vmatpush3.bf16.msra.mxu0 %v3396_v23  ;;  %3935 = vmatpush3.bf16.msra.mxu1 %v3447_v44 }
0x1452   :  { %3916 = vmatprep.subr.bf16.mxu0 %v6176_v54  ;;  %3936 = vmatprep.subr.bf16.mxu1 %v6176_v54 }
0x1455   :  { %3917 = vmatpush3.bf16.msra.mxu0 %v3397_v8  ;;  %3937 = vmatpush3.bf16.msra.mxu1 %v3448_v9 }
0x1456   :  { %3918 = vmatprep.subr.bf16.mxu0 %v6176_v54  ;;  %3938 = vmatprep.subr.bf16.mxu1 %v6176_v54 }
0x1459   :  { %3919 = vmatpush3.bf16.msra.mxu0 %v3398_v50  ;;  %3939 = vmatpush3.bf16.msra.mxu1 %v3449_v13 }
0x145a   :  { %3920 = vmatprep.subr.bf16.mxu0 %v6176_v54  ;;  %3940 = vmatprep.subr.bf16.mxu1 %v6176_v54 }
0x145d   :  { %3921 = vmatpush3.bf16.msra.mxu0 %v3399_v21  ;;  %3941 = vmatpush3.bf16.msra.mxu1 %v3450_v30 }
0x145e   :  { %3922 = vmatprep.subr.bf16.mxu0 %v6176_v54  ;;  %3942 = vmatprep.subr.bf16.mxu1 %v6176_v54 }
0x1461   :  { %3923 = vmatpush3.bf16.msra.mxu0 %v3400_v14  ;;  %3943 = vmatpush3.bf16.msra.mxu1 %v3451_v56 }
0x1462   :  { %3924 = vmatprep.subr.bf16.mxu0 %v6176_v54  ;;  %3944 = vmatprep.subr.bf16.mxu1 %v6176_v54 }
0x1465   :  { %3925 = vmatpush3.bf16.msra.mxu0 %v3401_v41  ;;  %3945 = vmatpush3.bf16.msra.mxu1 %v3452_v59 }
0x1466   :  { %3926 = vmatprep.subr.bf16.mxu0 %v6176_v54  ;;  %3946 = vmatprep.subr.bf16.mxu1 %v6176_v54 }
0x1469   :  { %3927 = vmatpush3.bf16.msra.mxu0 %v3402_v1  ;;  %3947 = vmatpush3.bf16.msra.mxu1 %v3453_v2 }
0x146c   :  { %3929 = vmatmul.mubr.bf16.vlgmr.msra.gmra.mrb[104].mxu0 %v3393_v16  ;;  %3949 = vmatmul.mubr.bf16.vlgmr.msra.gmra.mrb[104].mxu1 %v3444_v60 }
0x151f   :  { %v3346_v19 = vpop.f32.mrb[100].mxu0  ;;  %v3386_v46 = vpop.f32.mrb[100].mxu1 }
0x1520   :  { %v3387_v20 = vadd.f32 %v3386_v46, %v3346_v19  ;;  %v3890_v53 = vpop.f32.mrb[101].mxu0  ;;  %v3910_v26 = vpop.f32.mrb[101].mxu1 }
0x1521   :  { %v3349_v28 = vpop.f32.mrb[102].mxu0  ;;  %v3389_v34 = vpop.f32.mrb[102].mxu1 }
0x1522   :  { %v3891_v63 = vpop.f32.mrb[103].mxu0  ;;  %v3911_v12 = vpop.f32.mrb[103].mxu1 }
0x153f   :  { %v3437_v5 = vpop.f32.mrb[104].mxu0  ;;  %v3488_v61 = vpop.f32.mrb[104].mxu1 }
0x1540   :  { %v3443_v29 = vadd.f32 %v3437_v5, %v3387_v20  ;;  %v3930_v58 = vpop.f32.mrb[105].mxu0  ;;  %v3950_v55 = vpop.f32.mrb[105].mxu1 }
0x1541   :  { %v3440_v43 = vpop.f32.mrb[106].mxu0  ;;  %v3491_v62 = vpop.f32.mrb[106].mxu1 }
0x1542   :  { %v3494_v36 = vadd.f32 %v3488_v61, %v3443_v29  ;;  %v3931_v22 = vpop.f32.mrb[107].mxu0  ;;  %v3951_v18 = vpop.f32.mrb[107].mxu1 }
0x1544   :  { %v3502_v10 = vadd.f32 %v3763_v39, %v3494_v36 }
0x1546   :  { %v3503_v32 = vmul.f32 %v3502_v10, %v6179_v25 }
0x1548   :  { %4347 = vtanh.f32 %v3503_v32 }
0x1552   :  { %v4348_v6 = vpop.eup %4347 }
0x1553   :  { %4519 = dma.done.wait [#allocation12 + $0x5], 1024 }
0x1554   :  { %4520 = vsyncadd [#allocation12 + $0x5], 4294966272  ;;  %3952 = vmatprep.subr.bf16.mxu0 %v6176_v54  ;;  %3968 = vmatprep.mubr.msk.bf16.mxu0 %vm4548_vm2, %v6176_v54  ;;  %v3509_v47 = vld [vmem:[#allocation7] sm:$0xff]  ;;  %v3510_v4 = vld [vmem:[#allocation7 + $0x8] sm:$0xff]  ;;  %v3508_v49 = vpack.c.bf16 %v4348_v6, %v4348_v6 }
0x1555   :  { %3953 = vmatpush3.bf16.msra.mxu0 %v3509_v47  ;;  %v3511_v33 = vld [vmem:[#allocation7 + $0x10] sm:$0xff]  ;;  %v3512_v27 = vld [vmem:[#allocation7 + $0x18] sm:$0xff]  ;;  %v3513_v31 = vld [vmem:[#allocation7 + $0x20] sm:$0xff] }
0x1556   :  { %3954 = vmatprep.subr.bf16.mxu0 %v6176_v54  ;;  %v3514_v11 = vld [vmem:[#allocation7 + $0x28] sm:$0xff]  ;;  %v3515_v35 = vld [vmem:[#allocation7 + $0x30] sm:$0xff]  ;;  %v3516_v48 = vld [vmem:[#allocation7 + $0x38] sm:$0xff] }
0x1557   :  { %v3764_v37 = vld [vmem:[%s6052_s15] ss:$0 sm:$0xff] }
0x1559   :  { %3955 = vmatpush3.bf16.msra.mxu0 %v3510_v4 }
0x155a   :  { %3956 = vmatprep.subr.bf16.mxu0 %v6176_v54 }
0x155d   :  { %3957 = vmatpush3.bf16.msra.mxu0 %v3511_v33 }
0x155e   :  { %3958 = vmatprep.subr.bf16.mxu0 %v6176_v54 }
0x1561   :  { %3959 = vmatpush3.bf16.msra.mxu0 %v3512_v27 }
0x1562   :  { %3960 = vmatprep.subr.bf16.mxu0 %v6176_v54 }
0x1565   :  { %3961 = vmatpush3.bf16.msra.mxu0 %v3513_v31 }
0x1566   :  { %3962 = vmatprep.subr.bf16.mxu0 %v6176_v54 }
0x1569   :  { %3963 = vmatpush3.bf16.msra.mxu0 %v3514_v11 }
0x156a   :  { %3964 = vmatprep.subr.bf16.mxu0 %v6176_v54 }
0x156d   :  { %3965 = vmatpush3.bf16.msra.mxu0 %v3515_v35 }
0x156e   :  { %3966 = vmatprep.subr.bf16.mxu0 %v6176_v54 }
0x1571   :  { %3967 = vmatpush3.bf16.msra.mxu0 %v3516_v48 }
0x1574   :  { %3969 = vmatmul.mubr.bf16.vlgmr.msra.gmra.mrb[108].mxu0 %v3508_v49 }
0x1647   :  { %v3558_v3 = vpop.f32.mrb[108].mxu0 }
0x1648   :  { %v3559_v51 = vadd.f32 %v3764_v37, %v3558_v3  ;;  %v3970_v40 = vpop.f32.mrb[109].mxu0 }
0x1649   :  { %v3561_v15 = vpop.f32.mrb[110].mxu0 }
0x164a   :  { %4349 = vtanh.f32 %v3559_v51  ;;  %v3971_v42 = vpop.f32.mrb[111].mxu0 }
0x1654   :  { %v4350_v52 = vpop.eup %4349 }
0x1655   :  { %4521 = dma.done.wait [#allocation12 + $0x6], 1024 }
0x1656   :  { %4522 = vsyncadd [#allocation12 + $0x6], 4294966272  ;;  %3972 = vmatprep.subr.bf16.mxu1 %v6176_v54  ;;  %3988 = vmatprep.mubr.msk.bf16.mxu1 %vm4548_vm2, %v6176_v54  ;;  %v3568_v57 = vld [vmem:[#allocation8] sm:$0xff]  ;;  %v3569_v45 = vld [vmem:[#allocation8 + $0x8] sm:$0xff]  ;;  %v3567_v8 = vpack.c.bf16 %v4350_v52, %v4350_v52  ;;  %s4553_s23 = smov [#allocation19]  }
0x1657   :  { %3973 = vmatpush3.bf16.msra.mxu1 %v3568_v57  ;;  %v3570_v17 = vld [vmem:[#allocation8 + $0x10] sm:$0xff]  ;;  %v3571_v38 = vld [vmem:[#allocation8 + $0x18] sm:$0xff]  ;;  %v3572_v24 = vld [vmem:[#allocation8 + $0x20] sm:$0xff]  ;;  %s3630_s3 = sshll.u32 %s4553_s23, 4  ;;  %s3631_s3 = int_to_ptr.vmem [resolvable:$true] %s3630_s3 }
0x1658   :  { %3974 = vmatprep.subr.bf16.mxu1 %v6176_v54  ;;  %v3573_v7 = vld [vmem:[#allocation8 + $0x28] sm:$0xff]  ;;  %v3574_v23 = vld [vmem:[#allocation8 + $0x30] sm:$0xff]  ;;  %v3575_v44 = vld [vmem:[#allocation8 + $0x38] sm:$0xff]  ;;  %s4483_s30 = scalar_lea.vmem %s3631_s3, 128  ;;  %p4488_p7 = scmp.lt.s32.totalorder %s3631_s3, %s3631_s3 }
0x1659   :  { %v3765_v9 = vld [vmem:[%s6054_s17] ss:$0 sm:$0xff]  ;;  %p4484_p6 = scmp.ne.s32.totalorder %s3631_s3, %s4483_s30  ;;  %p4489_p8 = scmp.lt.s32.totalorder %s4483_s30, %s4483_s30 }
0x165b   :  { %3975 = vmatpush3.bf16.msra.mxu1 %v3569_v45  ;;  %p4490_p9 = por %p4489_p8, %p4488_p7 }
0x165c   :  { %3976 = vmatprep.subr.bf16.mxu1 %v6176_v54 }
0x165d   :  { %p4491_p10 = pnand %p4490_p9, %p4484_p6 }
0x165f   :  { %3977 = vmatpush3.bf16.msra.mxu1 %v3570_v17 }
0x1660   :  { %3978 = vmatprep.subr.bf16.mxu1 %v6176_v54 }
0x1663   :  { %3979 = vmatpush3.bf16.msra.mxu1 %v3571_v38 }
0x1664   :  { %3980 = vmatprep.subr.bf16.mxu1 %v6176_v54 }
0x1667   :  { %3981 = vmatpush3.bf16.msra.mxu1 %v3572_v24 }
0x1668   :  { %3982 = vmatprep.subr.bf16.mxu1 %v6176_v54 }
0x166b   :  { %3983 = vmatpush3.bf16.msra.mxu1 %v3573_v7 }
0x166c   :  { %3984 = vmatprep.subr.bf16.mxu1 %v6176_v54 }
0x166f   :  { %3985 = vmatpush3.bf16.msra.mxu1 %v3574_v23 }
0x1670   :  { %3986 = vmatprep.subr.bf16.mxu1 %v6176_v54 }
0x1673   :  { %3987 = vmatpush3.bf16.msra.mxu1 %v3575_v44 }
0x1676   :  { %3989 = vmatmul.mubr.bf16.vlgmr.msra.gmra.mrb[108].mxu1 %v3567_v8 }
0x1749   :  { %v3617_v50 = vpop.f32.mrb[108].mxu1 }
0x174a   :  { %v3618_v13 = vadd.f32 %v3765_v9, %v3617_v50  ;;  %v3990_v21 = vpop.f32.mrb[109].mxu1 }
0x174b   :  { %v3620_v30 = vpop.f32.mrb[110].mxu1 }
0x174c   :  { %3623 = vst [vmem:[#allocation19] sm:$0xff] %v3618_v13  ;;  %v3991_v14 = vpop.f32.mrb[111].mxu1 }
0x174d   :  { %4494 = shalt.err (!%p4491_p10)
}
0x174e   :  { %s6180_s19 = sld [smem:[#allocation74_spill]] }
0x1754   :  { %s4495_s17 = scalar_lea.hbm %s6180_s19, 128 }
0x1755   :  { %p4496_p11 = scmp.ne.s32.totalorder %s6180_s19, %s4495_s17  ;;  %p4499_p12 = scmp.lt.u32.totalorder %s4495_s17, %s6180_s19 }
0x1757   :  { %p4501_p13 = pnand %p4499_p12, %p4496_p11 }
0x1759   :  { %4504 = shalt.err (!%p4501_p13)
}
0x175a   :  { %3633 = dma.vmem_to_hbm [thread:$0]  %s3631_s3, 128, %s6180_s19, [#allocation15]  }
0x175b   :  { %4523 = dma.done.wait [#allocation15], 128  }
0x175c   :  { %4524 = vsyncadd [#allocation15], 4294967168 }
0x175d   :  { %3637 = vsyncpa [#allocation14], 1 }
0x175e   :  { %3638 = vsyncpa [#allocation17], 1 }
0x175f   :  { %3639 = vsyncpa [#allocation15], 1 }
0x1760   :  { %3640 = vsyncmov [#allocation12] }
0x1763   :  { %s3641_s1 = vpop.sfrf %3640 }
0x1764   :  { %p3766_p0 = scmp.ne.s32.totalorder %s3641_s1, 0 }
0x1766   :  { %3645 = shalt.err (%p3766_p0)  }
0x1767   :  { %3647 = vsyncmov [#allocation12 + $0x1] }
0x176a   :  { %s3648_s20 = vpop.sfrf %3647 }
0x176b   :  { %p3767_p1 = scmp.ne.s32.totalorder %s3648_s20, 0 }
0x176d   :  { %3652 = shalt.err (%p3767_p1)  }
0x176e   :  { %3654 = vsyncmov [#allocation12 + $0x2] }
0x1771   :  { %s3655_s18 = vpop.sfrf %3654 }
0x1772   :  { %p3768_p2 = scmp.ne.s32.totalorder %s3655_s18, 0 }
0x1774   :  { %3659 = shalt.err (%p3768_p2)  }
0x1775   :  { %3661 = vsyncmov [#allocation12 + $0x3] }
0x1778   :  { %s3662_s21 = vpop.sfrf %3661 }
0x1779   :  { %p3769_p3 = scmp.ne.s32.totalorder %s3662_s21, 0 }
0x177b   :  { %3666 = shalt.err (%p3769_p3)  }
0x177c   :  { %3668 = vsyncmov [#allocation12 + $0x4] }
0x177f   :  { %s3669_s4 = vpop.sfrf %3668 }
0x1780   :  { %p3770_p4 = scmp.ne.s32.totalorder %s3669_s4, 0 }
0x1782   :  { %3673 = shalt.err (%p3770_p4)  }
0x1783   :  { %3675 = vsyncmov [#allocation12 + $0x5] }
0x1786   :  { %s3676_s22 = vpop.sfrf %3675 }
0x1787   :  { %p3771_p5 = scmp.ne.s32.totalorder %s3676_s22, 0 }
0x1789   :  { %3680 = shalt.err (%p3771_p5)  }
0x178a   :  { %3682 = vsyncmov [#allocation12 + $0x6] }
0x178d   :  { %s3683_s14 = vpop.sfrf %3682 }
0x178e   :  { %p3772_p6 = scmp.ne.s32.totalorder %s3683_s14, 0 }
0x1790   :  { %3687 = shalt.err (%p3772_p6)  }

</bundles_post_ra>
